<compile_context>
chip_gen: v6e
topology: v6e:2x2x1
jax: 0.10.0
libtpu: 0.0.40
codegen_flags: <defaults>
</compile_context>

<pallas_src>
import jax
import jax.numpy as jnp
import numpy as np
from jax import lax
from jax.experimental import pallas as pl
from jax.experimental.pallas import tpu as pltpu

EPS = 1e-5

# Static geometry implied by fc1(512) (H = 1024, W = 1).
H_IN, H1C, H1, H2, H3 = 1024, 146, 72, 14, 4
P1, P2 = 80, 16      # per-batch row blocks (multiples of 8) for layer-1 / layer-2 activations
SUB = 8              # trailing zero rows so shifted slices stay in bounds


# ---------------------------------------------------------------------------
# The single fused kernel
# ---------------------------------------------------------------------------
def _stftanet_kernel(pa_ref, pb_ref, pc_ref, w1_ref, b1_ref,
                     w2_ref, sel2_ref, sh2_ref,
                     w3_ref, sel3_ref, sh3_ref,
                     wfc_ref, bfc_ref, o_ref):
    f32 = jnp.float32

    def dot(a, b):
        return jnp.dot(a, b, preferred_element_type=f32)

    # ---- layer 1: conv(2->64, k9, s7, p1) + bias + ReLU, maxpool(3,2) fused ----
    # pa/pb/pc hold the im2col patches of the three pool phases (conv index
    # 2t+0 / 2t+1 / 2t+2) laid out in the padded per-batch row blocks of A1.
    w1 = w1_ref[...]
    lin = jnp.maximum(jnp.maximum(dot(pa_ref[...], w1), dot(pb_ref[...], w1)),
                      dot(pc_ref[...], w1))
    a1 = jnp.maximum(lin + b1_ref[...], 0.0)          # (P1*B+8, 64); pad rows stay 0

    # ---- layer 2: conv(64->256, k7, s5, p1) + BN + ReLU ----
    # stride-1 conv via contiguous row-shifted matmuls, then a one-hot
    # selection matmul applies stride 5 and the per-batch re-blocking.
    c1 = w1_ref.shape[1]                 # 64
    k2 = w2_ref.shape[0] // c1           # 7
    f2 = sel2_ref.shape[1]               # P1*B
    full2 = dot(a1[0:f2, :], w2_ref[0:c1, :])
    for k in range(1, k2):
        full2 = full2 + dot(a1[k:k + f2, :], w2_ref[k * c1:(k + 1) * c1, :])
    a2 = jnp.maximum(dot(sel2_ref[...], full2) + sh2_ref[...], 0.0)   # (P2*B+8, 256)

    # ---- layer 3: conv(256->128, k5, s3, p0) + BN + ReLU ----
    c2 = w2_ref.shape[1]                 # 256
    k3 = w3_ref.shape[0] // c2           # 5
    f3 = sel3_ref.shape[1]               # P2*B
    full3 = dot(a2[0:f3, :], w3_ref[0:c2, :])
    for k in range(1, k3):
        full3 = full3 + dot(a2[k:k + f3, :], w3_ref[k * c2:(k + 1) * c2, :])
    a3 = jnp.maximum(dot(sel3_ref[...], full3) + sh3_ref[...], 0.0)   # (H3*B, 128), rows (h, b)

    # ---- head: sigmoid + Linear(512 -> num_classes) ----
    sig = pl.reciprocal(1.0 + jnp.exp(-a3))           # sigmoid (exact reciprocal)
    c3 = w3_ref.shape[1]                 # 128
    h3 = wfc_ref.shape[0] // c3          # 4
    b = o_ref.shape[0]
    acc = jnp.broadcast_to(bfc_ref[...], o_ref.shape)
    for h in range(h3):
        acc = acc + dot(sig[h * b:(h + 1) * b, :], wfc_ref[h * c3:(h + 1) * c3, :])
    o_ref[...] = acc


# ---------------------------------------------------------------------------
# Parameter prep (outside jit): BN folding, weight reshapes, selection matrices
# ---------------------------------------------------------------------------
def prepare_params(p, B):
    s2 = p["g2"] / jnp.sqrt(p["v2"] + EPS)
    sh2 = p["b2"] * s2 + p["beta2"] - p["m2"] * s2
    s3 = p["g3"] / jnp.sqrt(p["v3"] + EPS)
    sh3 = p["b3"] * s3 + p["beta3"] - p["m3"] * s3

    # conv weights as (Cin*K, Cout) with k-major rows; BN scale folded in.
    w1 = p["w1"][..., 0].reshape(64, 2 * 9).T                                        # rows c*9+k
    w2 = jnp.transpose(p["w2"][..., 0] * s2[:, None, None], (2, 1, 0)).reshape(7 * 64, 256)
    w3 = jnp.transpose(p["w3"][..., 0] * s3[:, None, None], (2, 1, 0)).reshape(5 * 256, 128)
    nc = p["wfc"].shape[0]
    # fc weight re-indexed so torch's (C,H) flatten matches rows ordered h*128+c.
    wfcp = jnp.transpose(p["wfc"].reshape(nc, 128, H3), (2, 1, 0)).reshape(128 * H3, nc)

    r1, f2, r2, f3, r3 = P1 * B + SUB, P1 * B, P2 * B + SUB, P2 * B, H3 * B

    m1 = np.zeros((r1, 1), np.float32)                 # data-row mask for layer-1 bias
    sel2 = np.zeros((r2, f2), np.float32)              # stride-5 selection + re-blocking
    m2 = np.zeros((r2, 1), np.float32)                 # data-row mask for layer-2 shift
    sel3 = np.zeros((r3, f3), np.float32)              # stride-3 selection, rows = h*B+b
    for b in range(B):
        m1[P1 * b + 1:P1 * b + 1 + H1] = 1.0
        for t in range(H2):
            sel2[P2 * b + t, P1 * b + 5 * t] = 1.0
            m2[P2 * b + t] = 1.0
        for h in range(H3):
            sel3[h * B + b, P2 * b + 3 * h] = 1.0

    return dict(
        w1=w1, b1full=jnp.asarray(m1) * p["b1"][None, :],
        w2=w2, sel2=jnp.asarray(sel2), sh2full=jnp.asarray(m2) * sh2[None, :],
        w3=w3, sel3=jnp.asarray(sel3), sh3row=sh3[None, :],
        wfcp=wfcp, bfcrow=p["bfc"][None, :])


# ---------------------------------------------------------------------------
# Input prep (tiny plain-JAX glue): layer-1 im2col split into 3 pool phases
# ---------------------------------------------------------------------------
def _layer1_pool_patches(x, B):
    xs = x[..., 0]                                      # (B, 2, 1024)
    xpad = jnp.pad(xs, ((0, 0), (0, 0), (1, 1)))        # (B, 2, 1026)
    idx = 7 * jnp.arange(H1C)[:, None] + jnp.arange(9)[None, :]      # (146, 9)
    g = xpad[:, :, idx]                                 # (B, 2, 146, 9)
    pt = jnp.transpose(g, (0, 2, 1, 3)).reshape(B, H1C, 18)          # row = conv idx, col = c*9+k
    phases = []
    for ph in range(3):
        pp = pt[:, ph::2][:, :H1]                       # (B, 72, 18): conv index 2t+ph
        st = jnp.zeros((B, P1, 18), jnp.float32).at[:, 1:1 + H1].set(pp)
        st = jnp.pad(st.reshape(B * P1, 18), ((0, SUB), (0, 0)))     # (P1*B+8, 18)
        phases.append(st)
    return phases


def stftanet_forward(x, prep):
    B = x.shape[0]
    assert x.shape[1:] == (2, H_IN, 1), x.shape
    pa, pb, pc = _layer1_pool_patches(x, B)
    nc = prep["wfcp"].shape[1]
    # TODO(synk): Dropout(0.5) layers are identity at inference; training-mode
    # stochastic dropout is not implemented.
    return pl.pallas_call(
        _stftanet_kernel,
        out_shape=jax.ShapeDtypeStruct((B, nc), jnp.float32),
        in_specs=[pl.BlockSpec(memory_space=pltpu.MemorySpace.VMEM)] * 13,
        out_specs=pl.BlockSpec(memory_space=pltpu.MemorySpace.VMEM),
    )(pa, pb, pc, prep["w1"], prep["b1full"],
      prep["w2"], prep["sel2"], prep["sh2full"],
      prep["w3"], prep["sel3"], prep["sh3row"],
      prep["wfcp"], prep["bfcrow"])


# ---------------------------------------------------------------------------
# Pure-JAX reference (for correctness check)
# ---------------------------------------------------------------------------
def ref_forward(x, p):
    dn = ("NCHW", "OIHW", "NCHW")
    hp = lax.Precision.HIGHEST

    def bc(v):
        return v[None, :, None, None]

    y = lax.conv_general_dilated(x, p["w1"], (7, 1), ((1, 1), (0, 0)),
                                 dimension_numbers=dn, precision=hp) + bc(p["b1"])
    y = jnp.maximum(y, 0.0)
    y = lax.reduce_window(y, -jnp.inf, lax.max, (1, 1, 3, 1), (1, 1, 2, 1), "VALID")

    y = lax.conv_general_dilated(y, p["w2"], (5, 1), ((1, 1), (0, 0)),
                                 dimension_numbers=dn, precision=hp) + bc(p["b2"])
    y = (y - bc(p["m2"])) / jnp.sqrt(bc(p["v2"]) + EPS) * bc(p["g2"]) + bc(p["beta2"])
    y = jnp.maximum(y, 0.0)

    y = lax.conv_general_dilated(y, p["w3"], (3, 1), "VALID",
                                 dimension_numbers=dn, precision=hp) + bc(p["b3"])
    y = (y - bc(p["m3"])) / jnp.sqrt(bc(p["v3"]) + EPS) * bc(p["g3"]) + bc(p["beta3"])
    y = jnp.maximum(y, 0.0)

    y = jax.nn.sigmoid(y.reshape(y.shape[0], -1))
    return jnp.dot(y, p["wfc"].T, precision=hp) + p["bfc"]


# ---------------------------------------------------------------------------
def init_params(key):
    ks = jax.random.split(key, 16)
    f32 = jnp.float32
    p = {}
    p["w1"] = jax.random.normal(ks[0], (64, 2, 9, 1), f32) / np.sqrt(18.0)
    p["b1"] = 0.05 * jax.random.normal(ks[1], (64,), f32)
    p["w2"] = jax.random.normal(ks[2], (256, 64, 7, 1), f32) / np.sqrt(448.0)
    p["b2"] = 0.05 * jax.random.normal(ks[3], (256,), f32)
    p["g2"] = 1.0 + 0.1 * jax.random.normal(ks[4], (256,), f32)
    p["beta2"] = 0.05 * jax.random.normal(ks[5], (256,), f32)
    p["m2"] = 0.05 * jax.random.normal(ks[6], (256,), f32)
    p["v2"] = 1.0 + 0.3 * jax.random.uniform(ks[7], (256,), f32)
    p["w3"] = jax.random.normal(ks[8], (128, 256, 5, 1), f32) / np.sqrt(1280.0)
    p["b3"] = 0.05 * jax.random.normal(ks[9], (128,), f32)
    p["g3"] = 1.0 + 0.1 * jax.random.normal(ks[10], (128,), f32)
    p["beta3"] = 0.05 * jax.random.normal(ks[11], (128,), f32)
    p["m3"] = 0.05 * jax.random.normal(ks[12], (128,), f32)
    p["v3"] = 1.0 + 0.3 * jax.random.uniform(ks[13], (128,), f32)
    p["wfc"] = jax.random.normal(ks[14], (6, 512), f32) / np.sqrt(512.0)
    p["bfc"] = 0.05 * jax.random.normal(ks[15], (6,), f32)
    return p


if __name__ == "__main__":
    key = jax.random.PRNGKey(0)
    k_param, k_x = jax.random.split(key)
    params = init_params(k_param)

    # Input shape forced by fc1(512): (B=2, C=2, H=1024, W=1), NCHW like torch.
    x = jax.random.normal(k_x, (2, 2, 1024, 1), jnp.float32)

    prep = prepare_params(params, B=2)          # one-time, outside jit
    fwd = jax.jit(stftanet_forward)
    out = jax.block_until_ready(fwd(x, prep))
    assert out.shape == (2, 6), out.shape

    ref = ref_forward(x, params)
    np.testing.assert_allclose(np.asarray(out), np.asarray(ref), rtol=5e-3, atol=5e-3)

    print("KERNEL_OK")
</pallas_src>

<mosaic_0001>
module attributes {stable_mosaic.version = 11 : i64} {
  func.func @_stftanet_kernel(%arg0: memref<168x18xf32, #tpu.memory_space<vmem>>, %arg1: memref<168x18xf32, #tpu.memory_space<vmem>>, %arg2: memref<168x18xf32, #tpu.memory_space<vmem>>, %arg3: memref<18x64xf32, #tpu.memory_space<vmem>>, %arg4: memref<168x64xf32, #tpu.memory_space<vmem>>, %arg5: memref<448x256xf32, #tpu.memory_space<vmem>>, %arg6: memref<40x160xf32, #tpu.memory_space<vmem>>, %arg7: memref<40x256xf32, #tpu.memory_space<vmem>>, %arg8: memref<1280x128xf32, #tpu.memory_space<vmem>>, %arg9: memref<8x32xf32, #tpu.memory_space<vmem>>, %arg10: memref<1x128xf32, #tpu.memory_space<vmem>>, %arg11: memref<512x6xf32, #tpu.memory_space<vmem>>, %arg12: memref<1x6xf32, #tpu.memory_space<vmem>>, %arg13: memref<2x6xf32, #tpu.memory_space<vmem>>) attributes {dimension_semantics = [], scalar_prefetch = 0 : i64, scratch_operands = 0 : i64, tpu.core_type = #tpu.core_type<tc>} {
    %c0 = arith.constant 0 : index
    %c0_0 = arith.constant 0 : index
    %0 = vector.load %arg3[%c0, %c0_0] : memref<18x64xf32, #tpu.memory_space<vmem>>, vector<18x64xf32>
    %c0_1 = arith.constant 0 : index
    %c0_2 = arith.constant 0 : index
    %1 = vector.load %arg0[%c0_1, %c0_2] : memref<168x18xf32, #tpu.memory_space<vmem>>, vector<168x18xf32>
    %cst = arith.constant dense<0.000000e+00> : vector<168x64xf32>
    %2 = tpu.matmul %1, %0, %cst {dimension_numbers = #tpu.dot_dimension_numbers<[1], [0], [0], [1], [0, 0, 1, 1], [], []>} : vector<168x18xf32>, vector<18x64xf32>, vector<168x64xf32> -> vector<168x64xf32>
    %c0_3 = arith.constant 0 : index
    %c0_4 = arith.constant 0 : index
    %3 = vector.load %arg1[%c0_3, %c0_4] : memref<168x18xf32, #tpu.memory_space<vmem>>, vector<168x18xf32>
    %cst_5 = arith.constant dense<0.000000e+00> : vector<168x64xf32>
    %4 = tpu.matmul %3, %0, %cst_5 {dimension_numbers = #tpu.dot_dimension_numbers<[1], [0], [0], [1], [0, 0, 1, 1], [], []>} : vector<168x18xf32>, vector<18x64xf32>, vector<168x64xf32> -> vector<168x64xf32>
    %5 = arith.maximumf %2, %4 : vector<168x64xf32>
    %c0_6 = arith.constant 0 : index
    %c0_7 = arith.constant 0 : index
    %6 = vector.load %arg2[%c0_6, %c0_7] : memref<168x18xf32, #tpu.memory_space<vmem>>, vector<168x18xf32>
    %cst_8 = arith.constant dense<0.000000e+00> : vector<168x64xf32>
    %7 = tpu.matmul %6, %0, %cst_8 {dimension_numbers = #tpu.dot_dimension_numbers<[1], [0], [0], [1], [0, 0, 1, 1], [], []>} : vector<168x18xf32>, vector<18x64xf32>, vector<168x64xf32> -> vector<168x64xf32>
    %8 = arith.maximumf %5, %7 : vector<168x64xf32>
    %c0_9 = arith.constant 0 : index
    %c0_10 = arith.constant 0 : index
    %9 = vector.load %arg4[%c0_9, %c0_10] : memref<168x64xf32, #tpu.memory_space<vmem>>, vector<168x64xf32>
    %10 = arith.addf %8, %9 : vector<168x64xf32>
    %cst_11 = arith.constant 0.000000e+00 : f32
    %11 = vector.broadcast %cst_11 : f32 to vector<168x64xf32>
    %12 = arith.maximumf %10, %11 : vector<168x64xf32>
    %13 = vector.extract_strided_slice %12 {offsets = [0, 0], sizes = [160, 64], strides = [1, 1]} : vector<168x64xf32> to vector<160x64xf32>
    %c0_12 = arith.constant 0 : index
    %c0_13 = arith.constant 0 : index
    %14 = vector.load %arg5[%c0_12, %c0_13] : memref<448x256xf32, #tpu.memory_space<vmem>>, vector<64x256xf32>
    %cst_14 = arith.constant dense<0.000000e+00> : vector<160x256xf32>
    %15 = tpu.matmul %13, %14, %cst_14 {dimension_numbers = #tpu.dot_dimension_numbers<[1], [0], [0], [1], [0, 0, 1, 1], [], []>} : vector<160x64xf32>, vector<64x256xf32>, vector<160x256xf32> -> vector<160x256xf32>
    %16 = vector.extract_strided_slice %12 {offsets = [1, 0], sizes = [160, 64], strides = [1, 1]} : vector<168x64xf32> to vector<160x64xf32>
    %c64 = arith.constant 64 : index
    %c0_15 = arith.constant 0 : index
    %17 = vector.load %arg5[%c64, %c0_15] : memref<448x256xf32, #tpu.memory_space<vmem>>, vector<64x256xf32>
    %cst_16 = arith.constant dense<0.000000e+00> : vector<160x256xf32>
    %18 = tpu.matmul %16, %17, %cst_16 {dimension_numbers = #tpu.dot_dimension_numbers<[1], [0], [0], [1], [0, 0, 1, 1], [], []>} : vector<160x64xf32>, vector<64x256xf32>, vector<160x256xf32> -> vector<160x256xf32>
    %19 = arith.addf %15, %18 : vector<160x256xf32>
    %20 = vector.extract_strided_slice %12 {offsets = [2, 0], sizes = [160, 64], strides = [1, 1]} : vector<168x64xf32> to vector<160x64xf32>
    %c128 = arith.constant 128 : index
    %c0_17 = arith.constant 0 : index
    %21 = vector.load %arg5[%c128, %c0_17] : memref<448x256xf32, #tpu.memory_space<vmem>>, vector<64x256xf32>
    %cst_18 = arith.constant dense<0.000000e+00> : vector<160x256xf32>
    %22 = tpu.matmul %20, %21, %cst_18 {dimension_numbers = #tpu.dot_dimension_numbers<[1], [0], [0], [1], [0, 0, 1, 1], [], []>} : vector<160x64xf32>, vector<64x256xf32>, vector<160x256xf32> -> vector<160x256xf32>
    %23 = arith.addf %19, %22 : vector<160x256xf32>
    %24 = vector.extract_strided_slice %12 {offsets = [3, 0], sizes = [160, 64], strides = [1, 1]} : vector<168x64xf32> to vector<160x64xf32>
    %c192 = arith.constant 192 : index
    %c0_19 = arith.constant 0 : index
    %25 = vector.load %arg5[%c192, %c0_19] : memref<448x256xf32, #tpu.memory_space<vmem>>, vector<64x256xf32>
    %cst_20 = arith.constant dense<0.000000e+00> : vector<160x256xf32>
    %26 = tpu.matmul %24, %25, %cst_20 {dimension_numbers = #tpu.dot_dimension_numbers<[1], [0], [0], [1], [0, 0, 1, 1], [], []>} : vector<160x64xf32>, vector<64x256xf32>, vector<160x256xf32> -> vector<160x256xf32>
    %27 = arith.addf %23, %26 : vector<160x256xf32>
    %28 = vector.extract_strided_slice %12 {offsets = [4, 0], sizes = [160, 64], strides = [1, 1]} : vector<168x64xf32> to vector<160x64xf32>
    %c256 = arith.constant 256 : index
    %c0_21 = arith.constant 0 : index
    %29 = vector.load %arg5[%c256, %c0_21] : memref<448x256xf32, #tpu.memory_space<vmem>>, vector<64x256xf32>
    %cst_22 = arith.constant dense<0.000000e+00> : vector<160x256xf32>
    %30 = tpu.matmul %28, %29, %cst_22 {dimension_numbers = #tpu.dot_dimension_numbers<[1], [0], [0], [1], [0, 0, 1, 1], [], []>} : vector<160x64xf32>, vector<64x256xf32>, vector<160x256xf32> -> vector<160x256xf32>
    %31 = arith.addf %27, %30 : vector<160x256xf32>
    %32 = vector.extract_strided_slice %12 {offsets = [5, 0], sizes = [160, 64], strides = [1, 1]} : vector<168x64xf32> to vector<160x64xf32>
    %c320 = arith.constant 320 : index
    %c0_23 = arith.constant 0 : index
    %33 = vector.load %arg5[%c320, %c0_23] : memref<448x256xf32, #tpu.memory_space<vmem>>, vector<64x256xf32>
    %cst_24 = arith.constant dense<0.000000e+00> : vector<160x256xf32>
    %34 = tpu.matmul %32, %33, %cst_24 {dimension_numbers = #tpu.dot_dimension_numbers<[1], [0], [0], [1], [0, 0, 1, 1], [], []>} : vector<160x64xf32>, vector<64x256xf32>, vector<160x256xf32> -> vector<160x256xf32>
    %35 = arith.addf %31, %34 : vector<160x256xf32>
    %36 = vector.extract_strided_slice %12 {offsets = [6, 0], sizes = [160, 64], strides = [1, 1]} : vector<168x64xf32> to vector<160x64xf32>
    %c384 = arith.constant 384 : index
    %c0_25 = arith.constant 0 : index
    %37 = vector.load %arg5[%c384, %c0_25] : memref<448x256xf32, #tpu.memory_space<vmem>>, vector<64x256xf32>
    %cst_26 = arith.constant dense<0.000000e+00> : vector<160x256xf32>
    %38 = tpu.matmul %36, %37, %cst_26 {dimension_numbers = #tpu.dot_dimension_numbers<[1], [0], [0], [1], [0, 0, 1, 1], [], []>} : vector<160x64xf32>, vector<64x256xf32>, vector<160x256xf32> -> vector<160x256xf32>
    %39 = arith.addf %35, %38 : vector<160x256xf32>
    %c0_27 = arith.constant 0 : index
    %c0_28 = arith.constant 0 : index
    %40 = vector.load %arg6[%c0_27, %c0_28] : memref<40x160xf32, #tpu.memory_space<vmem>>, vector<40x160xf32>
    %cst_29 = arith.constant dense<0.000000e+00> : vector<40x256xf32>
    %41 = tpu.matmul %40, %39, %cst_29 {dimension_numbers = #tpu.dot_dimension_numbers<[1], [0], [0], [1], [0, 0, 1, 1], [], []>} : vector<40x160xf32>, vector<160x256xf32>, vector<40x256xf32> -> vector<40x256xf32>
    %c0_30 = arith.constant 0 : index
    %c0_31 = arith.constant 0 : index
    %42 = vector.load %arg7[%c0_30, %c0_31] : memref<40x256xf32, #tpu.memory_space<vmem>>, vector<40x256xf32>
    %43 = arith.addf %41, %42 : vector<40x256xf32>
    %cst_32 = arith.constant 0.000000e+00 : f32
    %44 = vector.broadcast %cst_32 : f32 to vector<40x256xf32>
    %45 = arith.maximumf %43, %44 : vector<40x256xf32>
    %46 = vector.extract_strided_slice %45 {offsets = [0, 0], sizes = [32, 256], strides = [1, 1]} : vector<40x256xf32> to vector<32x256xf32>
    %c0_33 = arith.constant 0 : index
    %c0_34 = arith.constant 0 : index
    %47 = vector.load %arg8[%c0_33, %c0_34] : memref<1280x128xf32, #tpu.memory_space<vmem>>, vector<256x128xf32>
    %cst_35 = arith.constant dense<0.000000e+00> : vector<32x128xf32>
    %48 = tpu.matmul %46, %47, %cst_35 {dimension_numbers = #tpu.dot_dimension_numbers<[1], [0], [0], [1], [0, 0, 1, 1], [], []>} : vector<32x256xf32>, vector<256x128xf32>, vector<32x128xf32> -> vector<32x128xf32>
    %49 = vector.extract_strided_slice %45 {offsets = [1, 0], sizes = [32, 256], strides = [1, 1]} : vector<40x256xf32> to vector<32x256xf32>
    %c256_36 = arith.constant 256 : index
    %c0_37 = arith.constant 0 : index
    %50 = vector.load %arg8[%c256_36, %c0_37] : memref<1280x128xf32, #tpu.memory_space<vmem>>, vector<256x128xf32>
    %cst_38 = arith.constant dense<0.000000e+00> : vector<32x128xf32>
    %51 = tpu.matmul %49, %50, %cst_38 {dimension_numbers = #tpu.dot_dimension_numbers<[1], [0], [0], [1], [0, 0, 1, 1], [], []>} : vector<32x256xf32>, vector<256x128xf32>, vector<32x128xf32> -> vector<32x128xf32>
    %52 = arith.addf %48, %51 : vector<32x128xf32>
    %53 = vector.extract_strided_slice %45 {offsets = [2, 0], sizes = [32, 256], strides = [1, 1]} : vector<40x256xf32> to vector<32x256xf32>
    %c512 = arith.constant 512 : index
    %c0_39 = arith.constant 0 : index
    %54 = vector.load %arg8[%c512, %c0_39] : memref<1280x128xf32, #tpu.memory_space<vmem>>, vector<256x128xf32>
    %cst_40 = arith.constant dense<0.000000e+00> : vector<32x128xf32>
    %55 = tpu.matmul %53, %54, %cst_40 {dimension_numbers = #tpu.dot_dimension_numbers<[1], [0], [0], [1], [0, 0, 1, 1], [], []>} : vector<32x256xf32>, vector<256x128xf32>, vector<32x128xf32> -> vector<32x128xf32>
    %56 = arith.addf %52, %55 : vector<32x128xf32>
    %57 = vector.extract_strided_slice %45 {offsets = [3, 0], sizes = [32, 256], strides = [1, 1]} : vector<40x256xf32> to vector<32x256xf32>
    %c768 = arith.constant 768 : index
    %c0_41 = arith.constant 0 : index
    %58 = vector.load %arg8[%c768, %c0_41] : memref<1280x128xf32, #tpu.memory_space<vmem>>, vector<256x128xf32>
    %cst_42 = arith.constant dense<0.000000e+00> : vector<32x128xf32>
    %59 = tpu.matmul %57, %58, %cst_42 {dimension_numbers = #tpu.dot_dimension_numbers<[1], [0], [0], [1], [0, 0, 1, 1], [], []>} : vector<32x256xf32>, vector<256x128xf32>, vector<32x128xf32> -> vector<32x128xf32>
    %60 = arith.addf %56, %59 : vector<32x128xf32>
    %61 = vector.extract_strided_slice %45 {offsets = [4, 0], sizes = [32, 256], strides = [1, 1]} : vector<40x256xf32> to vector<32x256xf32>
    %c1024 = arith.constant 1024 : index
    %c0_43 = arith.constant 0 : index
    %62 = vector.load %arg8[%c1024, %c0_43] : memref<1280x128xf32, #tpu.memory_space<vmem>>, vector<256x128xf32>
    %cst_44 = arith.constant dense<0.000000e+00> : vector<32x128xf32>
    %63 = tpu.matmul %61, %62, %cst_44 {dimension_numbers = #tpu.dot_dimension_numbers<[1], [0], [0], [1], [0, 0, 1, 1], [], []>} : vector<32x256xf32>, vector<256x128xf32>, vector<32x128xf32> -> vector<32x128xf32>
    %64 = arith.addf %60, %63 : vector<32x128xf32>
    %c0_45 = arith.constant 0 : index
    %c0_46 = arith.constant 0 : index
    %65 = vector.load %arg9[%c0_45, %c0_46] : memref<8x32xf32, #tpu.memory_space<vmem>>, vector<8x32xf32>
    %cst_47 = arith.constant dense<0.000000e+00> : vector<8x128xf32>
    %66 = tpu.matmul %65, %64, %cst_47 {dimension_numbers = #tpu.dot_dimension_numbers<[1], [0], [0], [1], [0, 0, 1, 1], [], []>} : vector<8x32xf32>, vector<32x128xf32>, vector<8x128xf32> -> vector<8x128xf32>
    %c0_48 = arith.constant 0 : index
    %c0_49 = arith.constant 0 : index
    %67 = vector.load %arg10[%c0_48, %c0_49] : memref<1x128xf32, #tpu.memory_space<vmem>>, vector<1x128xf32>
    %68 = vector.broadcast %67 : vector<1x128xf32> to vector<8x128xf32>
    %69 = arith.addf %66, %68 : vector<8x128xf32>
    %cst_50 = arith.constant 0.000000e+00 : f32
    %70 = vector.broadcast %cst_50 : f32 to vector<8x128xf32>
    %71 = arith.maximumf %69, %70 : vector<8x128xf32>
    %cst_51 = arith.constant 0.000000e+00 : f32
    %72 = vector.broadcast %cst_51 : f32 to vector<8x128xf32>
    %73 = arith.subf %72, %71 : vector<8x128xf32>
    %74 = math.exp %73 : vector<8x128xf32>
    %cst_52 = arith.constant 1.000000e+00 : f32
    %75 = vector.broadcast %cst_52 : f32 to vector<8x128xf32>
    %76 = arith.addf %75, %74 : vector<8x128xf32>
    %77 = tpu.reciprocal %76 : vector<8x128xf32> -> vector<8x128xf32>
    %c0_53 = arith.constant 0 : index
    %c0_54 = arith.constant 0 : index
    %78 = vector.load %arg12[%c0_53, %c0_54] : memref<1x6xf32, #tpu.memory_space<vmem>>, vector<1x6xf32>
    %79 = vector.shape_cast %78 : vector<1x6xf32> to vector<1x6xf32>
    %80 = vector.broadcast %79 : vector<1x6xf32> to vector<2x6xf32>
    %81 = vector.extract_strided_slice %77 {offsets = [0, 0], sizes = [2, 128], strides = [1, 1]} : vector<8x128xf32> to vector<2x128xf32>
    %c0_55 = arith.constant 0 : index
    %c0_56 = arith.constant 0 : index
    %82 = vector.load %arg11[%c0_55, %c0_56] : memref<512x6xf32, #tpu.memory_space<vmem>>, vector<128x6xf32>
    %cst_57 = arith.constant dense<0.000000e+00> : vector<2x6xf32>
    %83 = tpu.matmul %81, %82, %cst_57 {dimension_numbers = #tpu.dot_dimension_numbers<[1], [0], [0], [1], [0, 0, 1, 1], [], []>} : vector<2x128xf32>, vector<128x6xf32>, vector<2x6xf32> -> vector<2x6xf32>
    %84 = arith.addf %80, %83 : vector<2x6xf32>
    %85 = vector.extract_strided_slice %77 {offsets = [2, 0], sizes = [2, 128], strides = [1, 1]} : vector<8x128xf32> to vector<2x128xf32>
    %c128_58 = arith.constant 128 : index
    %c0_59 = arith.constant 0 : index
    %86 = vector.load %arg11[%c128_58, %c0_59] : memref<512x6xf32, #tpu.memory_space<vmem>>, vector<128x6xf32>
    %cst_60 = arith.constant dense<0.000000e+00> : vector<2x6xf32>
    %87 = tpu.matmul %85, %86, %cst_60 {dimension_numbers = #tpu.dot_dimension_numbers<[1], [0], [0], [1], [0, 0, 1, 1], [], []>} : vector<2x128xf32>, vector<128x6xf32>, vector<2x6xf32> -> vector<2x6xf32>
    %88 = arith.addf %84, %87 : vector<2x6xf32>
    %89 = vector.extract_strided_slice %77 {offsets = [4, 0], sizes = [2, 128], strides = [1, 1]} : vector<8x128xf32> to vector<2x128xf32>
    %c256_61 = arith.constant 256 : index
    %c0_62 = arith.constant 0 : index
    %90 = vector.load %arg11[%c256_61, %c0_62] : memref<512x6xf32, #tpu.memory_space<vmem>>, vector<128x6xf32>
    %cst_63 = arith.constant dense<0.000000e+00> : vector<2x6xf32>
    %91 = tpu.matmul %89, %90, %cst_63 {dimension_numbers = #tpu.dot_dimension_numbers<[1], [0], [0], [1], [0, 0, 1, 1], [], []>} : vector<2x128xf32>, vector<128x6xf32>, vector<2x6xf32> -> vector<2x6xf32>
    %92 = arith.addf %88, %91 : vector<2x6xf32>
    %93 = vector.extract_strided_slice %77 {offsets = [6, 0], sizes = [2, 128], strides = [1, 1]} : vector<8x128xf32> to vector<2x128xf32>
    %c384_64 = arith.constant 384 : index
    %c0_65 = arith.constant 0 : index
    %94 = vector.load %arg11[%c384_64, %c0_65] : memref<512x6xf32, #tpu.memory_space<vmem>>, vector<128x6xf32>
    %cst_66 = arith.constant dense<0.000000e+00> : vector<2x6xf32>
    %95 = tpu.matmul %93, %94, %cst_66 {dimension_numbers = #tpu.dot_dimension_numbers<[1], [0], [0], [1], [0, 0, 1, 1], [], []>} : vector<2x128xf32>, vector<128x6xf32>, vector<2x6xf32> -> vector<2x6xf32>
    %96 = arith.addf %92, %95 : vector<2x6xf32>
    %c0_67 = arith.constant 0 : index
    %c0_68 = arith.constant 0 : index
    %97 = vector.load %arg13[%c0_67, %c0_68] : memref<2x6xf32, #tpu.memory_space<vmem>>, vector<2x6xf32>
    tpu.vector_store %arg13[%c0_67, %c0_68], %96 {strides = array<i32>} : memref<2x6xf32, #tpu.memory_space<vmem>>, vector<2x6xf32>,
    return
  }
}

</mosaic_0001>

<bundles_post_ra>
// kernel: stftanet_forward.1
= control target key start
LH: loop header
LB: loop body
LE: loop exit
PB: predicated region body
PF: predicated region fallthrough
CT: control target
= control target key end

     0   :  { %vm133_vm0 = vcmask 1041408   ;;  %v8785_v1 = vmov 0.0   ;;  %vm5370_vm1 = vmmov 0   ;;  %vm69_vm2 = vcmask 146432   ;;  %s8771_s0 = inlined_call_operand.vmem [shape: f32[168,18], index: 0, kind: input, shape index: {}]   ;;  %s8772_s1 = inlined_call_operand.vmem [shape: f32[168,18], index: 1, kind: input, shape index: {}]   ;;  %s8773_s2 = inlined_call_operand.vmem [shape: f32[168,18], index: 2, kind: input, shape index: {}]   ;;  %s8774_s3 = inlined_call_operand.vmem [shape: f32[18,64], index: 3, kind: input, shape index: {}]   ;;  %s8775_s4 = inlined_call_operand.vmem [shape: f32[168,64], index: 4, kind: input, shape index: {}]   ;;  %s8776_s5 = inlined_call_operand.vmem [shape: f32[448,256], index: 5, kind: input, shape index: {}]   ;;  %s8777_s6 = inlined_call_operand.vmem [shape: f32[40,160], index: 6, kind: input, shape index: {}]   ;;  %s8778_s7 = inlined_call_operand.vmem [shape: f32[40,256], index: 7, kind: input, shape index: {}]   ;;  %s8779_s8 = inlined_call_operand.vmem [shape: f32[1280,128], index: 8, kind: input, shape index: {}]   ;;  %s8780_s9 = inlined_call_operand.vmem [shape: f32[8,32], index: 9, kind: input, shape index: {}]   ;;  %s8781_s10 = inlined_call_operand.vmem [shape: f32[1,128], index: 10, kind: input, shape index: {}]   ;;  %s8782_s11 = inlined_call_operand.vmem [shape: f32[512,6], index: 11, kind: input, shape index: {}]   ;;  %s8783_s12 = inlined_call_operand.vmem [shape: f32[1,6], index: 12, kind: input, shape index: {}]   ;;  %s8784_s13 = inlined_call_operand.hbm [shape: f32[2,6], index: 13, kind: output, shape index: {}]  }
   0x1   :  { %v5445_v0 = vld [vmem:[%s8774_s3 + $0x10] sm:$0x3]  ;;  %4976 = vmatprep.subr.mxu0 %v8785_v1  ;;  %v5451_v2 = vld [vmem:[%s8774_s3 + $0x8] sm:$0xff]  ;;  %5334 = vmatprep.subr.mxu1 %v8785_v1  ;;  %v5462_v3 = vld [vmem:[%s8774_s3] sm:$0xff] }
   0x2   :  { %4977 = vmatpush3.msk.msra.mxu0 %vm133_vm0, %v5445_v0  ;;  %4982 = vmatprep.mubr.msk.f32.mxu0 %vm5370_vm1, %v8785_v1  ;;  %v48_v4 = vld [vmem:[%s8771_s0] sm:$0xff]  ;;  %v308_v5 = vld [vmem:[%s8772_s1 + $0x8] sm:$0xff]  ;;  %v309_v7 = vld [vmem:[%s8772_s1 + $0x10] sm:$0xff] }
   0x3   :  { %4978 = vmatprep.subr.mxu0 %v8785_v1  ;;  %5337 = vmatpush3.msk.msra.mxu1 %vm133_vm0, %v5445_v0  ;;  %v49_v6 = vld [vmem:[%s8771_s0 + $0x8] sm:$0xff]  ;;  %v50_v8 = vld [vmem:[%s8771_s0 + $0x10] sm:$0xff]  ;;  %v310_v9 = vld [vmem:[%s8772_s1 + $0x18] sm:$0xff] }
   0x4   :  { %4979 = vmatpush3.msra.mxu0 %v5451_v2  ;;  %5335 = vmatprep.subr.mxu1 %v8785_v1  ;;  %v51_v10 = vld [vmem:[%s8771_s0 + $0x18] sm:$0xff]  ;;  %v311_v11 = vld [vmem:[%s8772_s1 + $0x20] sm:$0xff] }
   0x5   :  { %4980 = vmatprep.subr.mxu0 %v8785_v1  ;;  %5338 = vmatpush3.msra.mxu1 %v5451_v2 }
   0x6   :  { %4981 = vmatpush3.msra.mxu0 %v5462_v3  ;;  %5336 = vmatprep.subr.mxu1 %v8785_v1 }
   0x7   :  { %4983 = vmatmul.mubr.msk.f32.vlgmr.msra.gmra.mxu0 %vm69_vm2, %v48_v4  ;;  %5339 = vmatpush3.msra.mxu1 %v5462_v3 }
   0x8   :  { %4985 = vmatprep.mubr.msk.f32.mxu0 %vm5370_vm1, %v8785_v1  ;;  %5054 = vmatprep.mubr.msk.f32.mxu1 %vm5370_vm1, %v8785_v1 }
   0x9   :  { %5055 = vmatmul.mubr.msk.f32.vlgmr.msra.gmra.mxu1 %vm69_vm2, %v308_v5  ;;  %5045 = vmatprep.subr.mxu0 %v8785_v1 }
   0xa   :  { %5057 = vmatprep.mubr.msk.f32.mxu1 %vm5370_vm1, %v8785_v1  ;;  %5046 = vmatpush3.msk.msra.mxu0 %vm133_vm0, %v5445_v0 }
   0xb   :  { %4986 = vmatmul.mubr.msk.f32.gmra.mxu0 %vm69_vm2, %v49_v6  ;;  %5047 = vmatprep.subr.mxu0 %v8785_v1 }
   0xc   :  { %4988 = vmatprep.mubr.msk.f32.mxu0 %vm5370_vm1, %v8785_v1  ;;  %5048 = vmatpush3.msra.mxu0 %v5451_v2 }
   0xd   :  { %5058 = vmatmul.mubr.msk.f32.gmra.mxu1 %vm69_vm2, %v309_v7  ;;  %5049 = vmatprep.subr.mxu0 %v8785_v1 }
   0xe   :  { %5060 = vmatprep.mubr.msk.f32.mxu1 %vm5370_vm1, %v8785_v1  ;;  %5050 = vmatpush3.msra.mxu0 %v5462_v3 }
   0xf   :  { %4989 = vmatmul.mubr.msk.f32.gmra.mxu0 %vm69_vm2, %v50_v8  ;;  %5114 = vmatprep.subr.mxu0 %v8785_v1 }
  0x10   :  { %4991 = vmatprep.mubr.msk.f32.mxu0 %vm5370_vm1, %v8785_v1 }
  0x11   :  { %5061 = vmatmul.mubr.msk.f32.gmra.mxu1 %vm69_vm2, %v310_v9 }
  0x12   :  { %5063 = vmatprep.mubr.msk.f32.mxu1 %vm5370_vm1, %v8785_v1 }
  0x13   :  { %4992 = vmatmul.mubr.msk.f32.gmra.mxu0 %vm69_vm2, %v51_v10 }
  0x14   :  { %18 = vsyncpa [#allocation3], 0  ;;  %4994 = vmatprep.mubr.msk.f32.mxu0 %vm5370_vm1, %v8785_v1  ;;  %v52_v12 = vld [vmem:[%s8771_s0 + $0x20] sm:$0xff]  ;;  %v312_v13 = vld [vmem:[%s8772_s1 + $0x28] sm:$0xff]  ;;  %vm973_vm3 = vcmask 1046528   ;;  %vm1015_vm4 = vcmask 523264  }
  0x15   :  { %5064 = vmatmul.mubr.msk.f32.gmra.mxu1 %vm69_vm2, %v311_v11  ;;  %v53_v14 = vld [vmem:[%s8771_s0 + $0x28] sm:$0xff]  ;;  %v313_v15 = vld [vmem:[%s8772_s1 + $0x30] sm:$0xff]  ;;  %v314_v17 = vld [vmem:[%s8772_s1 + $0x38] sm:$0xff]  ;;  %vm1482_vm5 = vcmask 1045504   ;;  %vm2128_vm6 = vcmask 1043456   ;;  %vm1805_vm7 = vcmask 1044480  }
  0x16   :  { %5066 = vmatprep.mubr.msk.f32.mxu1 %vm5370_vm1, %v8785_v1  ;;  %v54_v16 = vld [vmem:[%s8771_s0 + $0x30] sm:$0xff]  ;;  %v55_v18 = vld [vmem:[%s8771_s0 + $0x38] sm:$0xff]  ;;  %v315_v19 = vld [vmem:[%s8772_s1 + $0x40] sm:$0xff]  ;;  %vm2451_vm8 = vcmask 1042432   ;;  %vm3100_vm9 = vcmask 261120   ;;  %s5371_s14 = smov [#allocation2]  }
  0x17   :  { %4995 = vmatmul.mubr.msk.f32.gmra.mxu0 %vm69_vm2, %v52_v12  ;;  %v56_v20 = vld [vmem:[%s8771_s0 + $0x40] sm:$0xff]  ;;  %v316_v21 = vld [vmem:[%s8772_s1 + $0x48] sm:$0xff]  ;;  %v317_v23 = vld [vmem:[%s8772_s1 + $0x50] sm:$0xff]  ;;  %s4389_s15 = sshll.u32 %s5371_s14, 4  ;;  %vm4381_vm10 = vcmask 41984   ;;  %s4390_s15 = int_to_ptr.vmem [resolvable:$true] %s4389_s15 }
  0x18   :  { %4997 = vmatprep.mubr.msk.f32.mxu0 %vm5370_vm1, %v8785_v1  ;;  %v57_v22 = vld [vmem:[%s8771_s0 + $0x48] sm:$0xff]  ;;  %v58_v24 = vld [vmem:[%s8771_s0 + $0x50] sm:$0xff]  ;;  %v318_v25 = vld [vmem:[%s8772_s1 + $0x58] sm:$0xff]  ;;  %p5352_p1 = scmp.lt.s32.totalorder %s4390_s15, %s4390_s15 }
  0x19   :  { %5067 = vmatmul.mubr.msk.f32.gmra.mxu1 %vm69_vm2, %v312_v13  ;;  %v59_v26 = vld [vmem:[%s8771_s0 + $0x58] sm:$0xff]  ;;  %v319_v27 = vld [vmem:[%s8772_s1 + $0x60] sm:$0xff]  ;;  %v320_v29 = vld [vmem:[%s8772_s1 + $0x68] sm:$0xff] }
  0x1a   :  { %5069 = vmatprep.mubr.msk.f32.mxu1 %vm5370_vm1, %v8785_v1  ;;  %v60_v28 = vld [vmem:[%s8771_s0 + $0x60] sm:$0xff]  ;;  %v61_v30 = vld [vmem:[%s8771_s0 + $0x68] sm:$0xff]  ;;  %v321_v31 = vld [vmem:[%s8772_s1 + $0x70] sm:$0xff] }
  0x1b   :  { %4998 = vmatmul.mubr.msk.f32.gmra.mxu0 %vm69_vm2, %v53_v14  ;;  %v62_v32 = vld [vmem:[%s8771_s0 + $0x70] sm:$0xff]  ;;  %v322_v33 = vld [vmem:[%s8772_s1 + $0x78] sm:$0xff]  ;;  %v323_v35 = vld [vmem:[%s8772_s1 + $0x80] sm:$0xff] }
  0x1c   :  { %5000 = vmatprep.mubr.msk.f32.mxu0 %vm5370_vm1, %v8785_v1  ;;  %v63_v34 = vld [vmem:[%s8771_s0 + $0x78] sm:$0xff]  ;;  %v64_v36 = vld [vmem:[%s8771_s0 + $0x80] sm:$0xff]  ;;  %v324_v37 = vld [vmem:[%s8772_s1 + $0x88] sm:$0xff] }
  0x1d   :  { %5070 = vmatmul.mubr.msk.f32.gmra.mxu1 %vm69_vm2, %v313_v15  ;;  %v65_v38 = vld [vmem:[%s8771_s0 + $0x88] sm:$0xff]  ;;  %v325_v39 = vld [vmem:[%s8772_s1 + $0x90] sm:$0xff]  ;;  %v326_v41 = vld [vmem:[%s8772_s1 + $0x98] sm:$0xff] }
  0x1e   :  { %5072 = vmatprep.mubr.msk.f32.mxu1 %vm5370_vm1, %v8785_v1  ;;  %v66_v40 = vld [vmem:[%s8771_s0 + $0x90] sm:$0xff]  ;;  %v67_v42 = vld [vmem:[%s8771_s0 + $0x98] sm:$0xff]  ;;  %v327_v43 = vld [vmem:[%s8772_s1 + $0xa0] sm:$0xff] }
  0x1f   :  { %5001 = vmatmul.mubr.msk.f32.gmra.mxu0 %vm69_vm2, %v54_v16  ;;  %v68_v44 = vld [vmem:[%s8771_s0 + $0xa0] sm:$0xff]  ;;  %v583_v47 = vld [vmem:[%s8773_s2 + $0x8] sm:$0xff]  ;;  %v584_v48 = vld [vmem:[%s8773_s2 + $0x10] sm:$0xff] }
  0x20   :  { %5003 = vmatprep.mubr.msk.f32.mxu0 %vm5370_vm1, %v8785_v1  ;;  %v307_v45 = vld [vmem:[%s8772_s1] sm:$0xff]  ;;  %v585_v49 = vld [vmem:[%s8773_s2 + $0x18] sm:$0xff]  ;;  %v587_v51 = vld [vmem:[%s8773_s2 + $0x28] sm:$0xff] }
  0x21   :  { %5073 = vmatmul.mubr.msk.f32.gmra.mxu1 %vm69_vm2, %v314_v17  ;;  %v582_v46 = vld [vmem:[%s8773_s2] sm:$0xff]  ;;  %v588_v52 = vld [vmem:[%s8773_s2 + $0x30] sm:$0xff]  ;;  %v589_v53 = vld [vmem:[%s8773_s2 + $0x38] sm:$0xff] }
  0x22   :  { %5075 = vmatprep.mubr.msk.f32.mxu1 %vm5370_vm1, %v8785_v1  ;;  %v586_v50 = vld [vmem:[%s8773_s2 + $0x20] sm:$0xff]  ;;  %v591_v55 = vld [vmem:[%s8773_s2 + $0x48] sm:$0xff]  ;;  %v951_v56 = vld [vmem:[%s8776_s5 + $0xf8] sm:$0xff] }
  0x23   :  { %5004 = vmatmul.mubr.msk.f32.gmra.mxu0 %vm69_vm2, %v55_v18  ;;  %v590_v54 = vld [vmem:[%s8773_s2 + $0x40] sm:$0xff]  ;;  %v592_v57 = vld [vmem:[%s8773_s2 + $0x50] sm:$0xff]  ;;  %1072 = vmatprep.subr.mxu1 %v951_v56  ;;  %v593_v59 = vld [vmem:[%s8773_s2 + $0x58] sm:$0xff] }
  0x24   :  { %5006 = vmatprep.mubr.msk.f32.mxu0 %vm5370_vm1, %v8785_v1  ;;  %v950_v58 = vld [vmem:[%s8776_s5 + $0xf0] sm:$0xff]  ;;  %v594_v60 = vld [vmem:[%s8773_s2 + $0x60] sm:$0xff]  ;;  %v949_v61 = vld [vmem:[%s8776_s5 + $0xe8] sm:$0xff] }
  0x25   :  { %5076 = vmatmul.mubr.msk.f32.gmra.mxu1 %vm69_vm2, %v315_v19  ;;  %v948_v62 = vld [vmem:[%s8776_s5 + $0xe0] sm:$0xff]  ;;  %v595_v63 = vld [vmem:[%s8773_s2 + $0x68] sm:$0xff]  ;;  %v946_v4 = vld [vmem:[%s8776_s5 + $0xd0] sm:$0xff] }
  0x26   :  { %5078 = vmatprep.mubr.msk.f32.mxu1 %vm5370_vm1, %v8785_v1  ;;  %1073 = vmatpush1.msra.mxu1 %v950_v58  ;;  %v1481_v5 = vld [vmem:[%s8776_s5 + $0x178] sm:$0xff]  ;;  %v1480_v6 = vld [vmem:[%s8776_s5 + $0x170] sm:$0xff]  ;;  %v598_v7 = vld [vmem:[%s8773_s2 + $0x80] sm:$0xff] }
  0x27   :  { %5007 = vmatmul.mubr.msk.f32.gmra.mxu0 %vm69_vm2, %v56_v20  ;;  %1074 = vmatprep.subr.mxu1 %v949_v61  ;;  %v1479_v8 = vld [vmem:[%s8776_s5 + $0x168] sm:$0xff]  ;;  %v1478_v9 = vld [vmem:[%s8776_s5 + $0x160] sm:$0xff]  ;;  %v1477_v11 = vld [vmem:[%s8776_s5 + $0x158] sm:$0xff] }
  0x28   :  { %5009 = vmatprep.mubr.msk.f32.mxu0 %vm5370_vm1, %v8785_v1  ;;  %1075 = vmatpush1.msra.mxu1 %v948_v62  ;;  %v599_v10 = vld [vmem:[%s8773_s2 + $0x88] sm:$0xff]  ;;  %v1476_v12 = vld [vmem:[%s8776_s5 + $0x150] sm:$0xff]  ;;  %v944_v15 = vld [vmem:[%s8776_s5 + $0xc0] sm:$0xff] }
  0x29   :  { %5079 = vmatmul.mubr.msk.f32.gmra.mxu1 %vm69_vm2, %v316_v21  ;;  %v945_v13 = vld [vmem:[%s8776_s5 + $0xc8] sm:$0xff]  ;;  %v1474_v16 = vld [vmem:[%s8776_s5 + $0x140] sm:$0xff]  ;;  %v600_v17 = vld [vmem:[%s8773_s2 + $0x90] sm:$0xff] }
  0x2a   :  { %5081 = vmatprep.mubr.msk.f32.mxu1 %vm5370_vm1, %v8785_v1  ;;  %v1475_v14 = vld [vmem:[%s8776_s5 + $0x148] sm:$0xff]  ;;  %v943_v18 = vld [vmem:[%s8776_s5 + $0xb8] sm:$0xff]  ;;  %v942_v20 = vld [vmem:[%s8776_s5 + $0xb0] sm:$0xff] }
  0x2b   :  { %5010 = vmatmul.mubr.msk.f32.gmra.mxu0 %vm69_vm2, %v57_v22  ;;  %v1473_v19 = vld [vmem:[%s8776_s5 + $0x138] sm:$0xff]  ;;  %v1472_v21 = vld [vmem:[%s8776_s5 + $0x130] sm:$0xff]  ;;  %v941_v22 = vld [vmem:[%s8776_s5 + $0xa8] sm:$0xff] }
  0x2c   :  { %5012 = vmatprep.mubr.msk.f32.mxu0 %vm5370_vm1, %v8785_v1 }
  0x2d   :  { %5082 = vmatmul.mubr.msk.f32.gmra.mxu1 %vm69_vm2, %v317_v23  ;;  %v1471_v23 = vld [vmem:[%s8776_s5 + $0x128] sm:$0xff] }
  0x2e   :  { %5084 = vmatprep.mubr.msk.f32.mxu1 %vm5370_vm1, %v8785_v1 }
  0x2f   :  { %5013 = vmatmul.mubr.msk.f32.gmra.mxu0 %vm69_vm2, %v58_v24  ;;  %v940_v24 = vld [vmem:[%s8776_s5 + $0xa0] sm:$0xff] }
  0x30   :  { %5015 = vmatprep.mubr.msk.f32.mxu0 %vm5370_vm1, %v8785_v1 }
  0x31   :  { %5085 = vmatmul.mubr.msk.f32.gmra.mxu1 %vm69_vm2, %v318_v25  ;;  %v1470_v25 = vld [vmem:[%s8776_s5 + $0x120] sm:$0xff] }
  0x32   :  { %5087 = vmatprep.mubr.msk.f32.mxu1 %vm5370_vm1, %v8785_v1 }
  0x33   :  { %5016 = vmatmul.mubr.msk.f32.gmra.mxu0 %vm69_vm2, %v59_v26  ;;  %v601_v26 = vld [vmem:[%s8773_s2 + $0x98] sm:$0xff] }
  0x34   :  { %5018 = vmatprep.mubr.msk.f32.mxu0 %vm5370_vm1, %v8785_v1 }
  0x35   :  { %5088 = vmatmul.mubr.msk.f32.gmra.mxu1 %vm69_vm2, %v319_v27  ;;  %v939_v27 = vld [vmem:[%s8776_s5 + $0x98] sm:$0xff] }
  0x36   :  { %5090 = vmatprep.mubr.msk.f32.mxu1 %vm5370_vm1, %v8785_v1 }
  0x37   :  { %5019 = vmatmul.mubr.msk.f32.gmra.mxu0 %vm69_vm2, %v60_v28  ;;  %v1469_v28 = vld [vmem:[%s8776_s5 + $0x118] sm:$0xff] }
  0x38   :  { %5021 = vmatprep.mubr.msk.f32.mxu0 %vm5370_vm1, %v8785_v1 }
  0x39   :  { %5091 = vmatmul.mubr.msk.f32.gmra.mxu1 %vm69_vm2, %v320_v29  ;;  %v938_v29 = vld [vmem:[%s8776_s5 + $0x90] sm:$0xff] }
  0x3a   :  { %5093 = vmatprep.mubr.msk.f32.mxu1 %vm5370_vm1, %v8785_v1 }
  0x3b   :  { %5022 = vmatmul.mubr.msk.f32.gmra.mxu0 %vm69_vm2, %v61_v30  ;;  %v1468_v30 = vld [vmem:[%s8776_s5 + $0x110] sm:$0xff] }
  0x3c   :  { %5024 = vmatprep.mubr.msk.f32.mxu0 %vm5370_vm1, %v8785_v1 }
  0x3d   :  { %5094 = vmatmul.mubr.msk.f32.gmra.mxu1 %vm69_vm2, %v321_v31  ;;  %v937_v31 = vld [vmem:[%s8776_s5 + $0x88] sm:$0xff] }
  0x3e   :  { %5096 = vmatprep.mubr.msk.f32.mxu1 %vm5370_vm1, %v8785_v1 }
  0x3f   :  { %5025 = vmatmul.mubr.msk.f32.gmra.mxu0 %vm69_vm2, %v62_v32  ;;  %v1467_v32 = vld [vmem:[%s8776_s5 + $0x108] sm:$0xff] }
  0x40   :  { %5027 = vmatprep.mubr.msk.f32.mxu0 %vm5370_vm1, %v8785_v1 }
  0x41   :  { %5097 = vmatmul.mubr.msk.f32.gmra.mxu1 %vm69_vm2, %v322_v33  ;;  %v602_v33 = vld [vmem:[%s8773_s2 + $0xa0] sm:$0xff] }
  0x42   :  { %5099 = vmatprep.mubr.msk.f32.mxu1 %vm5370_vm1, %v8785_v1 }
  0x43   :  { %5028 = vmatmul.mubr.msk.f32.gmra.mxu0 %vm69_vm2, %v63_v34  ;;  %v936_v34 = vld [vmem:[%s8776_s5 + $0x80] sm:$0xff] }
  0x44   :  { %5030 = vmatprep.mubr.msk.f32.mxu0 %vm5370_vm1, %v8785_v1 }
  0x45   :  { %5100 = vmatmul.mubr.msk.f32.gmra.mxu1 %vm69_vm2, %v323_v35  ;;  %v1466_v35 = vld [vmem:[%s8776_s5 + $0x100] sm:$0xff] }
  0x46   :  { %5102 = vmatprep.mubr.msk.f32.mxu1 %vm5370_vm1, %v8785_v1 }
  0x47   :  { %5031 = vmatmul.mubr.msk.f32.gmra.mxu0 %vm69_vm2, %v64_v36 }
  0x48   :  { %5033 = vmatprep.mubr.msk.f32.mxu0 %vm5370_vm1, %v8785_v1 }
  0x49   :  { %5103 = vmatmul.mubr.msk.f32.gmra.mxu1 %vm69_vm2, %v324_v37 }
  0x4a   :  { %5105 = vmatprep.mubr.msk.f32.mxu1 %vm5370_vm1, %v8785_v1 }
  0x4b   :  { %5034 = vmatmul.mubr.msk.f32.gmra.mxu0 %vm69_vm2, %v65_v38 }
  0x4c   :  { %5036 = vmatprep.mubr.msk.f32.mxu0 %vm5370_vm1, %v8785_v1 }
  0x4d   :  { %5106 = vmatmul.mubr.msk.f32.gmra.mxu1 %vm69_vm2, %v325_v39 }
  0x4e   :  { %5108 = vmatprep.mubr.msk.f32.mxu1 %vm5370_vm1, %v8785_v1 }
  0x4f   :  { %5037 = vmatmul.mubr.msk.f32.gmra.mxu0 %vm69_vm2, %v66_v40 }
  0x50   :  { %5039 = vmatprep.mubr.msk.f32.mxu0 %vm5370_vm1, %v8785_v1 }
  0x51   :  { %5109 = vmatmul.mubr.msk.f32.gmra.mxu1 %vm69_vm2, %v326_v41 }
  0x52   :  { %5111 = vmatprep.mubr.msk.f32.mxu1 %vm5370_vm1, %v8785_v1 }
  0x53   :  { %5040 = vmatmul.mubr.msk.f32.gmra.mxu0 %vm69_vm2, %v67_v42 }
  0x54   :  { %5042 = vmatprep.mubr.msk.f32.mxu0 %vm5370_vm1, %v8785_v1 }
  0x55   :  { %5112 = vmatmul.mubr.msk.f32.gmra.mxu1 %vm69_vm2, %v327_v43 }
  0x56   :  { %1120 = vmatprep.mubr.f32.mxu1 %v8785_v1 }
  0x57   :  { %5043 = vmatmul.mubr.msk.f32.gmra.mxu0 %vm69_vm2, %v68_v44 }
  0x58   :  { %5051 = vmatprep.mubr.msk.f32.mxu0 %vm5370_vm1, %v8785_v1 }
  0x5b   :  { %5052 = vmatmul.mubr.msk.f32.vlgmr.msra.gmra.mxu0 %vm69_vm2, %v307_v45 }
  0x5c   :  { %5115 = vmatpush3.msk.msra.mxu0 %vm133_vm0, %v5445_v0  ;;  %5120 = vmatprep.mubr.msk.f32.mxu0 %vm5370_vm1, %v8785_v1  ;;  %v596_v0 = vld [vmem:[%s8773_s2 + $0x70] sm:$0xff] }
  0x5d   :  { %5116 = vmatprep.subr.mxu0 %v8785_v1 }
  0x5e   :  { %5117 = vmatpush3.msra.mxu0 %v5451_v2  ;;  %v947_v2 = vld [vmem:[%s8776_s5 + $0xd8] sm:$0xff] }
  0x5f   :  { %5118 = vmatprep.subr.mxu0 %v8785_v1  ;;  %1076 = vmatprep.subr.mxu1 %v947_v2 }
  0x60   :  { %5119 = vmatpush3.msra.mxu0 %v5462_v3  ;;  %v597_v3 = vld [vmem:[%s8773_s2 + $0x78] sm:$0xff]  ;;  %1077 = vmatpush1.msra.mxu1 %v946_v4 }
  0x61   :  { %5121 = vmatmul.mubr.msk.f32.vlgmr.msra.gmra.mxu0 %vm69_vm2, %v582_v46  ;;  %1580 = vmatprep.subr.mxu0 %v1481_v5 }
  0x62   :  { %5123 = vmatprep.mubr.msk.f32.mxu0 %vm5370_vm1, %v8785_v1  ;;  %1581 = vmatpush1.msra.mxu0 %v1480_v6 }
  0x63   :  { %1582 = vmatprep.subr.mxu0 %v1479_v8  ;;  %1078 = vmatprep.subr.mxu1 %v945_v13 }
  0x64   :  { %1583 = vmatpush1.msra.mxu0 %v1478_v9  ;;  %1079 = vmatpush1.msra.mxu1 %v944_v15 }
  0x65   :  { %5124 = vmatmul.mubr.msk.f32.gmra.mxu0 %vm69_vm2, %v583_v47  ;;  %1584 = vmatprep.subr.mxu0 %v1477_v11 }
  0x66   :  { %5126 = vmatprep.mubr.msk.f32.mxu0 %vm5370_vm1, %v8785_v1  ;;  %1585 = vmatpush1.msra.mxu0 %v1476_v12 }
  0x67   :  { %1586 = vmatprep.subr.mxu0 %v1475_v14  ;;  %1080 = vmatprep.subr.mxu1 %v943_v18 }
  0x68   :  { %1587 = vmatpush1.msra.mxu0 %v1474_v16  ;;  %1081 = vmatpush1.msra.mxu1 %v942_v20 }
  0x69   :  { %5127 = vmatmul.mubr.msk.f32.gmra.mxu0 %vm69_vm2, %v584_v48  ;;  %1588 = vmatprep.subr.mxu0 %v1473_v19 }
  0x6a   :  { %5129 = vmatprep.mubr.msk.f32.mxu0 %vm5370_vm1, %v8785_v1  ;;  %1589 = vmatpush1.msra.mxu0 %v1472_v21 }
  0x6b   :  { %1082 = vmatprep.subr.mxu1 %v941_v22  ;;  %1590 = vmatprep.subr.mxu0 %v1471_v23 }
  0x6c   :  { %1083 = vmatpush1.msra.mxu1 %v940_v24  ;;  %1591 = vmatpush1.msra.mxu0 %v1470_v25  ;;  %v2127_v24 = vld [vmem:[%s8776_s5 + $0x278] sm:$0xff] }
  0x6d   :  { %5130 = vmatmul.mubr.msk.f32.gmra.mxu0 %vm69_vm2, %v585_v49  ;;  %1084 = vmatprep.subr.mxu1 %v939_v27 }
  0x6e   :  { %5132 = vmatprep.mubr.msk.f32.mxu0 %vm5370_vm1, %v8785_v1  ;;  %1592 = vmatprep.subr.mxu0 %v1469_v28 }
  0x6f   :  { %1085 = vmatpush1.msra.mxu1 %v938_v29  ;;  %1593 = vmatpush1.msra.mxu0 %v1468_v30 }
  0x70   :  { %1086 = vmatprep.subr.mxu1 %v937_v31  ;;  %1594 = vmatprep.subr.mxu0 %v1467_v32 }
  0x71   :  { %5133 = vmatmul.mubr.msk.f32.gmra.mxu0 %vm69_vm2, %v586_v50  ;;  %1087 = vmatpush1.msra.mxu1 %v936_v34 }
  0x72   :  { %5135 = vmatprep.mubr.msk.f32.mxu0 %vm5370_vm1, %v8785_v1  ;;  %1595 = vmatpush1.msra.mxu0 %v1466_v35 }
  0x73   :  { %2226 = vmatprep.subr.mxu0 %v2127_v24 }
  0x75   :  { %5136 = vmatmul.mubr.msk.f32.gmra.mxu0 %vm69_vm2, %v587_v51 }
  0x76   :  { %5138 = vmatprep.mubr.msk.f32.mxu0 %vm5370_vm1, %v8785_v1 }
  0x79   :  { %5139 = vmatmul.mubr.msk.f32.gmra.mxu0 %vm69_vm2, %v588_v52 }
  0x7a   :  { %5141 = vmatprep.mubr.msk.f32.mxu0 %vm5370_vm1, %v8785_v1 }
  0x7d   :  { %5142 = vmatmul.mubr.msk.f32.gmra.mxu0 %vm69_vm2, %v589_v53 }
  0x7e   :  { %5144 = vmatprep.mubr.msk.f32.mxu0 %vm5370_vm1, %v8785_v1 }
  0x81   :  { %5145 = vmatmul.mubr.msk.f32.gmra.mxu0 %vm69_vm2, %v590_v54 }
  0x82   :  { %5147 = vmatprep.mubr.msk.f32.mxu0 %vm5370_vm1, %v8785_v1 }
  0x85   :  { %5148 = vmatmul.mubr.msk.f32.gmra.mxu0 %vm69_vm2, %v591_v55 }
  0x86   :  { %5150 = vmatprep.mubr.msk.f32.mxu0 %vm5370_vm1, %v8785_v1 }
  0x89   :  { %5151 = vmatmul.mubr.msk.f32.gmra.mxu0 %vm69_vm2, %v592_v57 }
  0x8a   :  { %5153 = vmatprep.mubr.msk.f32.mxu0 %vm5370_vm1, %v8785_v1 }
  0x8d   :  { %5154 = vmatmul.mubr.msk.f32.gmra.mxu0 %vm69_vm2, %v593_v59  ;;  %v935_v59 = vld [vmem:[%s8776_s5 + $0x78] sm:$0xff] }
  0x8e   :  { %5156 = vmatprep.mubr.msk.f32.mxu0 %vm5370_vm1, %v8785_v1  ;;  %1297 = vmatprep.subr.mxu1 %v935_v59 }
  0x91   :  { %5157 = vmatmul.mubr.msk.f32.gmra.mxu0 %vm69_vm2, %v594_v60 }
  0x92   :  { %5159 = vmatprep.mubr.msk.f32.mxu0 %vm5370_vm1, %v8785_v1 }
  0x95   :  { %5160 = vmatmul.mubr.msk.f32.gmra.mxu0 %vm69_vm2, %v595_v63 }
  0x96   :  { %5162 = vmatprep.mubr.msk.f32.mxu0 %vm5370_vm1, %v8785_v1 }
  0x99   :  { %5163 = vmatmul.mubr.msk.f32.gmra.mxu0 %vm69_vm2, %v596_v0 }
  0x9a   :  { %5165 = vmatprep.mubr.msk.f32.mxu0 %vm5370_vm1, %v8785_v1 }
  0x9d   :  { %5166 = vmatmul.mubr.msk.f32.gmra.mxu0 %vm69_vm2, %v597_v3 }
  0x9e   :  { %5168 = vmatprep.mubr.msk.f32.mxu0 %vm5370_vm1, %v8785_v1 }
  0xa1   :  { %5169 = vmatmul.mubr.msk.f32.gmra.mxu0 %vm69_vm2, %v598_v7 }
  0xa2   :  { %5171 = vmatprep.mubr.msk.f32.mxu0 %vm5370_vm1, %v8785_v1 }
  0xa5   :  { %5172 = vmatmul.mubr.msk.f32.gmra.mxu0 %vm69_vm2, %v599_v10 }
  0xa6   :  { %5174 = vmatprep.mubr.msk.f32.mxu0 %vm5370_vm1, %v8785_v1 }
  0xa9   :  { %5175 = vmatmul.mubr.msk.f32.gmra.mxu0 %vm69_vm2, %v600_v17 }
  0xaa   :  { %5177 = vmatprep.mubr.msk.f32.mxu0 %vm5370_vm1, %v8785_v1 }
  0xad   :  { %5178 = vmatmul.mubr.msk.f32.gmra.mxu0 %vm69_vm2, %v601_v26 }
  0xae   :  { %5180 = vmatprep.mubr.msk.f32.mxu0 %vm5370_vm1, %v8785_v1 }
  0xb1   :  { %5181 = vmatmul.mubr.msk.f32.gmra.mxu0 %vm69_vm2, %v602_v33 }
  0xb2   :  { %1628 = vmatprep.mubr.f32.mxu0 %v8785_v1 }
  0xc7   :  { %v5961_v36 = vpop.f32.mrf.mxu0 }
  0xc9   :  { %v4984_v37 = vpop.f32.mrf.mxu0  ;;  %v5963_v38 = vpop.f32.mrf.mxu1 }
  0xcb   :  { %v5965_v39 = vpop.f32.mrf.mxu0  ;;  %v5056_v40 = vpop.f32.mrf.mxu1 }
  0xcc   :  { %v562_v41 = vmax.f32 %v5965_v39, %v5963_v38 }
  0xcd   :  { %v4987_v42 = vpop.f32.mrf.mxu0  ;;  %v5969_v43 = vpop.f32.mrf.mxu1 }
  0xcf   :  { %v5971_v44 = vpop.f32.mrf.mxu0  ;;  %v5059_v45 = vpop.f32.mrf.mxu1 }
  0xd0   :  { %v563_v46 = vmax.f32 %v5971_v44, %v5969_v43 }
  0xd1   :  { %v4990_v47 = vpop.f32.mrf.mxu0  ;;  %v5975_v48 = vpop.f32.mrf.mxu1 }
  0xd3   :  { %v5977_v49 = vpop.f32.mrf.mxu0  ;;  %v5062_v50 = vpop.f32.mrf.mxu1 }
  0xd4   :  { %v564_v51 = vmax.f32 %v5977_v49, %v5975_v48  ;;  %v933_v48 = vld [vmem:[%s8776_s5 + $0x68] sm:$0xff] }
  0xd5   :  { %v4993_v52 = vpop.f32.mrf.mxu0  ;;  %v5981_v53 = vpop.f32.mrf.mxu1  ;;  %v2125_v49 = vld [vmem:[%s8776_s5 + $0x268] sm:$0xff] }
  0xd7   :  { %v5983_v54 = vpop.f32.mrf.mxu0  ;;  %v5065_v55 = vpop.f32.mrf.mxu1 }
  0xd8   :  { %v565_v56 = vmax.f32 %v5983_v54, %v5981_v53  ;;  %v931_v53 = vld [vmem:[%s8776_s5 + $0x58] sm:$0xff] }
  0xd9   :  { %v4996_v57 = vpop.f32.mrf.mxu0  ;;  %v5987_v58 = vpop.f32.mrf.mxu1  ;;  %v2123_v54 = vld [vmem:[%s8776_s5 + $0x258] sm:$0xff] }
  0xdb   :  { %v5992_v60 = vpop.f32.mrf.mxu0  ;;  %v5068_v61 = vpop.f32.mrf.mxu1 }
  0xdc   :  { %v566_v62 = vmax.f32 %v5992_v60, %v5987_v58  ;;  %v929_v58 = vld [vmem:[%s8776_s5 + $0x48] sm:$0xff] }
  0xdd   :  { %v4999_v63 = vpop.f32.mrf.mxu0  ;;  %v5996_v0 = vpop.f32.mrf.mxu1  ;;  %v2121_v60 = vld [vmem:[%s8776_s5 + $0x248] sm:$0xff] }
  0xdf   :  { %v5998_v2 = vpop.f32.mrf.mxu0  ;;  %v5071_v3 = vpop.f32.mrf.mxu1 }
  0xe0   :  { %v567_v4 = vmax.f32 %v5998_v2, %v5996_v0  ;;  %v927_v0 = vld [vmem:[%s8776_s5 + $0x38] sm:$0xff] }
  0xe1   :  { %v5002_v5 = vpop.f32.mrf.mxu0  ;;  %v6002_v6 = vpop.f32.mrf.mxu1  ;;  %v2119_v2 = vld [vmem:[%s8776_s5 + $0x238] sm:$0xff] }
  0xe3   :  { %v6004_v7 = vpop.f32.mrf.mxu0  ;;  %v5074_v8 = vpop.f32.mrf.mxu1 }
  0xe4   :  { %v568_v9 = vmax.f32 %v6004_v7, %v6002_v6  ;;  %v925_v6 = vld [vmem:[%s8776_s5 + $0x28] sm:$0xff] }
  0xe5   :  { %v5005_v10 = vpop.f32.mrf.mxu0  ;;  %v6008_v11 = vpop.f32.mrf.mxu1  ;;  %v2117_v7 = vld [vmem:[%s8776_s5 + $0x228] sm:$0xff] }
  0xe7   :  { %v6010_v12 = vpop.f32.mrf.mxu0  ;;  %v5077_v13 = vpop.f32.mrf.mxu1 }
  0xe8   :  { %v569_v14 = vmax.f32 %v6010_v12, %v6008_v11  ;;  %v923_v11 = vld [vmem:[%s8776_s5 + $0x18] sm:$0xff] }
  0xe9   :  { %v5008_v15 = vpop.f32.mrf.mxu0  ;;  %v6014_v16 = vpop.f32.mrf.mxu1  ;;  %v2115_v12 = vld [vmem:[%s8776_s5 + $0x218] sm:$0xff] }
  0xeb   :  { %v6016_v17 = vpop.f32.mrf.mxu0  ;;  %v5080_v18 = vpop.f32.mrf.mxu1 }
  0xec   :  { %v570_v19 = vmax.f32 %v6016_v17, %v6014_v16  ;;  %v921_v16 = vld [vmem:[%s8776_s5 + $0x8] sm:$0xff] }
  0xed   :  { %v5011_v20 = vpop.f32.mrf.mxu0  ;;  %v6020_v21 = vpop.f32.mrf.mxu1  ;;  %v2113_v17 = vld [vmem:[%s8776_s5 + $0x208] sm:$0xff] }
  0xef   :  { %v6022_v22 = vpop.f32.mrf.mxu0  ;;  %v5083_v23 = vpop.f32.mrf.mxu1 }
  0xf0   :  { %v571_v25 = vmax.f32 %v6022_v22, %v6020_v21  ;;  %v1804_v21 = vld [vmem:[%s8776_s5 + $0x1f8] sm:$0xff] }
  0xf1   :  { %v5014_v26 = vpop.f32.mrf.mxu0  ;;  %v6029_v27 = vpop.f32.mrf.mxu1  ;;  %v2773_v22 = vld [vmem:[%s8776_s5 + $0x378] sm:$0xff] }
  0xf3   :  { %v6031_v28 = vpop.f32.mrf.mxu0  ;;  %v5086_v29 = vpop.f32.mrf.mxu1 }
  0xf5   :  { %v5017_v31 = vpop.f32.mrf.mxu0  ;;  %v6035_v32 = vpop.f32.mrf.mxu1 }
  0xf7   :  { %v6037_v33 = vpop.f32.mrf.mxu0  ;;  %v5089_v34 = vpop.f32.mrf.mxu1 }
  0xf9   :  { %v5020_v37 = vpop.f32.mrf.mxu0  ;;  %v6041_v40 = vpop.f32.mrf.mxu1 }
  0xfb   :  { %v6043_v42 = vpop.f32.mrf.mxu0  ;;  %v5092_v45 = vpop.f32.mrf.mxu1 }
  0xfd   :  { %v5023_v50 = vpop.f32.mrf.mxu0  ;;  %v6047_v52 = vpop.f32.mrf.mxu1 }
  0xff   :  { %v6049_v55 = vpop.f32.mrf.mxu0  ;;  %v5095_v57 = vpop.f32.mrf.mxu1 }
 0x101   :  { %v5026_v61 = vpop.f32.mrf.mxu0  ;;  %v6053_v63 = vpop.f32.mrf.mxu1 }
 0x103   :  { %v6055_v3 = vpop.f32.mrf.mxu0  ;;  %v5098_v5 = vpop.f32.mrf.mxu1 }
 0x105   :  { %v5029_v10 = vpop.f32.mrf.mxu0  ;;  %v6059_v13 = vpop.f32.mrf.mxu1 }
 0x107   :  { %v6061_v15 = vpop.f32.mrf.mxu0  ;;  %v5101_v18 = vpop.f32.mrf.mxu1 }
 0x109   :  { %v5032_v23 = vpop.f32.mrf.mxu0  ;;  %v6065_v24 = vpop.f32.mrf.mxu1 }
 0x10b   :  { %v6067_v26 = vpop.f32.mrf.mxu0  ;;  %v5104_v29 = vpop.f32.mrf.mxu1 }
 0x10d   :  { %v5035_v34 = vpop.f32.mrf.mxu0  ;;  %v6071_v37 = vpop.f32.mrf.mxu1 }
 0x10f   :  { %v6073_v45 = vpop.f32.mrf.mxu0  ;;  %v5107_v50 = vpop.f32.mrf.mxu1 }
 0x111   :  { %v5038_v61 = vpop.f32.mrf.mxu0  ;;  %v6077_v5 = vpop.f32.mrf.mxu1 }
 0x113   :  { %v6079_v10 = vpop.f32.mrf.mxu0  ;;  %v5110_v18 = vpop.f32.mrf.mxu1 }
 0x114   :  { %v857_v18 = vld [vmem:[%s8775_s4] sm:$0xff] }
 0x115   :  { %v5041_v29 = vpop.f32.mrf.mxu0  ;;  %v6083_v31 = vpop.f32.mrf.mxu1 }
 0x117   :  { %v6085_v34 = vpop.f32.mrf.mxu0  ;;  %v5113_v20 = vpop.f32.mrf.mxu1 }
 0x118   :  { %v858_v20 = vld [vmem:[%s8775_s4 + $0x8] sm:$0xff] }
 0x119   :  { %v5044_v8 = vpop.f32.mrf.mxu0 }
 0x11b   :  { %v457_v57 = vpop.f32.mrf.mxu0 }
 0x11c   :  { %v561_v59 = vmax.f32 %v5961_v36, %v457_v57 }
 0x11d   :  { %v5053_v61 = vpop.f32.mrf.mxu0 }
 0x121   :  { %v732_v47 = vpop.f32.mrf.mxu0 }
 0x122   :  { %v836_v23 = vmax.f32 %v561_v59, %v732_v47  ;;  %v859_v47 = vld [vmem:[%s8775_s4 + $0x10] sm:$0xff] }
 0x123   :  { %v5122_v29 = vpop.f32.mrf.mxu0 }
 0x124   :  { %v878_v35 = vadd.f32 %v857_v18, %v836_v23 }
 0x125   :  { %v737_v30 = vpop.f32.mrf.mxu0 }
 0x126   :  { %v837_v8 = vmax.f32 %v562_v41, %v737_v30  ;;  %v6099_v61 = vmax.f32 %v878_v35, 0.0 }
 0x127   :  { %v5125_v36 = vpop.f32.mrf.mxu0 }
 0x128   :  { %v879_v57 = vadd.f32 %v858_v20, %v837_v8  ;;  %v974_v38 = vrot.slane %v6099_v61, 1  ;;  %v1483_v30 = vrot.slane %v6099_v61, 2  ;;  %v860_v20 = vld [vmem:[%s8775_s4 + $0x18] sm:$0xff]  ;;  %v934_v8 = vld [vmem:[%s8776_s5 + $0x70] sm:$0xff] }
 0x129   :  { %v742_v50 = vpop.f32.mrf.mxu0  ;;  %v2126_v36 = vld [vmem:[%s8776_s5 + $0x270] sm:$0xff] }
 0x12a   :  { %v6104_v59 = vmax.f32 %v879_v57, 0.0  ;;  %v838_v23 = vmax.f32 %v563_v46, %v742_v50 }
 0x12b   :  { %v5128_v18 = vpop.f32.mrf.mxu0 }
 0x12c   :  { %v880_v39 = vadd.f32 %v859_v47, %v838_v23  ;;  %v975_v41 = vrot.slane %v6104_v59, 1  ;;  %v1484_v35 = vrot.slane %v6104_v59, 2 }
 0x12d   :  { %v747_v29 = vpop.f32.mrf.mxu0 }
 0x12e   :  { %v6116_v43 = vmax.f32 %v880_v39, 0.0  ;;  %v839_v44 = vmax.f32 %v564_v51, %v747_v29  ;;  %v976_v46 = vsel %vm973_vm3, %v974_v38, %v975_v41  ;;  %v1485_v50 = vsel %vm1482_vm5, %v1483_v30, %v1484_v35  ;;  %v861_v38 = vld [vmem:[%s8775_s4 + $0x20] sm:$0xff] }
 0x12f   :  { %v5131_v57 = vpop.f32.mrf.mxu0  ;;  %4463 = vmatmul.mubr.msk.f32.vlgmr.msra.gmra.mxu1 %vm1015_vm4, %v976_v46  ;;  %4503 = vmatmul.mubr.msk.f32.vlgmr.msra.gmra.mxu0 %vm1015_vm4, %v1485_v50  ;;  %v2124_v46 = vld [vmem:[%s8776_s5 + $0x260] sm:$0xff] }
 0x130   :  { %v881_v51 = vadd.f32 %v860_v20, %v839_v44  ;;  %1126 = vmatprep.mubr.f32.mxu1 %v8785_v1  ;;  %1634 = vmatprep.mubr.f32.mxu0 %v8785_v1  ;;  %v977_v47 = vrot.slane %v6116_v43, 1  ;;  %v1486_v23 = vrot.slane %v6116_v43, 2  ;;  %v932_v44 = vld [vmem:[%s8776_s5 + $0x60] sm:$0xff] }
 0x131   :  { %v752_v18 = vpop.f32.mrf.mxu0  ;;  %1298 = vmatpush1.msra.mxu1 %v934_v8  ;;  %2227 = vmatpush1.msra.mxu0 %v2126_v36  ;;  %v862_v36 = vld [vmem:[%s8775_s4 + $0x28] sm:$0xff] }
 0x132   :  { %v6144_v39 = vmax.f32 %v881_v51, 0.0  ;;  %v840_v30 = vmax.f32 %v565_v56, %v752_v18  ;;  %v978_v29 = vsel %vm973_vm3, %v975_v41, %v977_v47  ;;  %v1487_v20 = vsel %vm1482_vm5, %v1484_v35, %v1486_v23  ;;  %1299 = vmatprep.subr.mxu1 %v933_v48  ;;  %2228 = vmatprep.subr.mxu0 %v2125_v49  ;;  %v930_v18 = vld [vmem:[%s8776_s5 + $0x50] sm:$0xff] }
 0x133   :  { %v5134_v50 = vpop.f32.mrf.mxu0  ;;  %4464 = vmatmul.mubr.msk.f32.gmra.mxu1 %vm1015_vm4, %v978_v29  ;;  %4504 = vmatmul.mubr.msk.f32.gmra.mxu0 %vm1015_vm4, %v1487_v20  ;;  %v863_v20 = vld [vmem:[%s8775_s4 + $0x30] sm:$0xff] }
 0x134   :  { %v882_v56 = vadd.f32 %v861_v38, %v840_v30  ;;  %1132 = vmatprep.mubr.f32.mxu1 %v8785_v1  ;;  %1640 = vmatprep.mubr.f32.mxu0 %v8785_v1  ;;  %v979_v41 = vrot.slane %v6144_v39, 1  ;;  %v1488_v35 = vrot.slane %v6144_v39, 2  ;;  %v2122_v38 = vld [vmem:[%s8776_s5 + $0x250] sm:$0xff] }
 0x135   :  { %v757_v8 = vpop.f32.mrf.mxu0  ;;  %1300 = vmatpush1.msra.mxu1 %v932_v44  ;;  %2229 = vmatpush1.msra.mxu0 %v2124_v46 }
 0x136   :  { %v6172_v57 = vmax.f32 %v882_v56, 0.0  ;;  %v841_v48 = vmax.f32 %v566_v62, %v757_v8  ;;  %v980_v49 = vsel %vm973_vm3, %v977_v47, %v979_v41  ;;  %v1489_v51 = vsel %vm1482_vm5, %v1486_v23, %v1488_v35  ;;  %1301 = vmatprep.subr.mxu1 %v931_v53  ;;  %2230 = vmatprep.subr.mxu0 %v2123_v54  ;;  %v928_v54 = vld [vmem:[%s8776_s5 + $0x40] sm:$0xff] }
 0x137   :  { %v5137_v30 = vpop.f32.mrf.mxu0  ;;  %4465 = vmatmul.mubr.msk.f32.gmra.mxu1 %vm1015_vm4, %v980_v49  ;;  %4505 = vmatmul.mubr.msk.f32.gmra.mxu0 %vm1015_vm4, %v1489_v51  ;;  %v2120_v56 = vld [vmem:[%s8776_s5 + $0x240] sm:$0xff] }
 0x138   :  { %v883_v62 = vadd.f32 %v862_v36, %v841_v48  ;;  %1138 = vmatprep.mubr.f32.mxu1 %v8785_v1  ;;  %1646 = vmatprep.mubr.f32.mxu0 %v8785_v1  ;;  %v981_v47 = vrot.slane %v6172_v57, 1  ;;  %v1490_v23 = vrot.slane %v6172_v57, 2  ;;  %v864_v48 = vld [vmem:[%s8775_s4 + $0x38] sm:$0xff]  ;;  %v926_v30 = vld [vmem:[%s8776_s5 + $0x30] sm:$0xff] }
 0x139   :  { %v762_v29 = vpop.f32.mrf.mxu0  ;;  %1302 = vmatpush1.msra.mxu1 %v930_v18  ;;  %2231 = vmatpush1.msra.mxu0 %v2122_v38 }
 0x13a   :  { %v6200_v44 = vmax.f32 %v883_v62, 0.0  ;;  %v842_v46 = vmax.f32 %v567_v4, %v762_v29  ;;  %v982_v50 = vsel %vm973_vm3, %v979_v41, %v981_v47  ;;  %v1491_v53 = vsel %vm1482_vm5, %v1488_v35, %v1490_v23  ;;  %1303 = vmatprep.subr.mxu1 %v929_v58  ;;  %2232 = vmatprep.subr.mxu0 %v2121_v60  ;;  %v2118_v58 = vld [vmem:[%s8776_s5 + $0x230] sm:$0xff]  ;;  %v865_v29 = vld [vmem:[%s8775_s4 + $0x40] sm:$0xff] }
 0x13b   :  { %v5140_v8 = vpop.f32.mrf.mxu0  ;;  %4466 = vmatmul.mubr.msk.f32.gmra.mxu1 %vm1015_vm4, %v982_v50  ;;  %4506 = vmatmul.mubr.msk.f32.gmra.mxu0 %vm1015_vm4, %v1491_v53 }
 0x13c   :  { %v884_v4 = vadd.f32 %v863_v20, %v842_v46  ;;  %1144 = vmatprep.mubr.f32.mxu1 %v8785_v1  ;;  %1652 = vmatprep.mubr.f32.mxu0 %v8785_v1  ;;  %v983_v41 = vrot.slane %v6200_v44, 1  ;;  %v1492_v35 = vrot.slane %v6200_v44, 2 }
 0x13d   :  { %v767_v36 = vpop.f32.mrf.mxu0  ;;  %1304 = vmatpush1.msra.mxu1 %v928_v54  ;;  %2233 = vmatpush1.msra.mxu0 %v2120_v56  ;;  %v924_v54 = vld [vmem:[%s8776_s5 + $0x20] sm:$0xff] }
 0x13e   :  { %v6228_v49 = vmax.f32 %v884_v4, 0.0  ;;  %v843_v51 = vmax.f32 %v568_v9, %v767_v36  ;;  %v984_v18 = vsel %vm973_vm3, %v981_v47, %v983_v41  ;;  %v1493_v38 = vsel %vm1482_vm5, %v1490_v23, %v1492_v35  ;;  %1305 = vmatprep.subr.mxu1 %v927_v0  ;;  %2234 = vmatprep.subr.mxu0 %v2119_v2  ;;  %v2116_v56 = vld [vmem:[%s8776_s5 + $0x220] sm:$0xff] }
 0x13f   :  { %v5143_v60 = vpop.f32.mrf.mxu0  ;;  %4467 = vmatmul.mubr.msk.f32.gmra.mxu1 %vm1015_vm4, %v984_v18  ;;  %4507 = vmatmul.mubr.msk.f32.gmra.mxu0 %vm1015_vm4, %v1493_v38  ;;  %v922_v18 = vld [vmem:[%s8776_s5 + $0x10] sm:$0xff] }
 0x140   :  { %v885_v9 = vadd.f32 %v864_v48, %v843_v51  ;;  %1150 = vmatprep.mubr.f32.mxu1 %v8785_v1  ;;  %1658 = vmatprep.mubr.f32.mxu0 %v8785_v1  ;;  %v985_v62 = vrot.slane %v6228_v49, 1  ;;  %v1494_v47 = vrot.slane %v6228_v49, 2  ;;  %v2114_v38 = vld [vmem:[%s8776_s5 + $0x210] sm:$0xff] }
 0x141   :  { %v772_v23 = vpop.f32.mrf.mxu0  ;;  %1306 = vmatpush1.msra.mxu1 %v926_v30  ;;  %2235 = vmatpush1.msra.mxu0 %v2118_v58 }
 0x142   :  { %v6256_v20 = vmax.f32 %v885_v9, 0.0  ;;  %v844_v46 = vmax.f32 %v569_v14, %v772_v23  ;;  %v986_v50 = vsel %vm973_vm3, %v983_v41, %v985_v62  ;;  %v1495_v53 = vsel %vm1482_vm5, %v1492_v35, %v1494_v47  ;;  %1307 = vmatprep.subr.mxu1 %v925_v6  ;;  %2236 = vmatprep.subr.mxu0 %v2117_v7  ;;  %v866_v41 = vld [vmem:[%s8775_s4 + $0x48] sm:$0xff]  ;;  %v867_v7 = vld [vmem:[%s8775_s4 + $0x50] sm:$0xff] }
 0x143   :  { %v5146_v8 = vpop.f32.mrf.mxu0  ;;  %4468 = vmatmul.mubr.msk.f32.gmra.mxu1 %vm1015_vm4, %v986_v50  ;;  %4508 = vmatmul.mubr.msk.f32.gmra.mxu0 %vm1015_vm4, %v1495_v53 }
 0x144   :  { %v886_v14 = vadd.f32 %v865_v29, %v844_v46  ;;  %1156 = vmatprep.mubr.f32.mxu1 %v8785_v1  ;;  %1664 = vmatprep.mubr.f32.mxu0 %v8785_v1  ;;  %v987_v0 = vrot.slane %v6256_v20, 1  ;;  %v1496_v2 = vrot.slane %v6256_v20, 2  ;;  %v920_v29 = vld [vmem:[%s8776_s5] sm:$0xff]  ;;  %v868_v8 = vld [vmem:[%s8775_s4 + $0x58] sm:$0xff] }
 0x145   :  { %v777_v4 = vpop.f32.mrf.mxu0  ;;  %1308 = vmatpush1.msra.mxu1 %v924_v54  ;;  %2237 = vmatpush1.msra.mxu0 %v2116_v56  ;;  %v2112_v46 = vld [vmem:[%s8776_s5 + $0x200] sm:$0xff] }
 0x146   :  { %v6284_v35 = vmax.f32 %v886_v14, 0.0  ;;  %v845_v36 = vmax.f32 %v570_v19, %v777_v4  ;;  %v988_v48 = vsel %vm973_vm3, %v985_v62, %v987_v0  ;;  %v1497_v51 = vsel %vm1482_vm5, %v1494_v47, %v1496_v2  ;;  %1309 = vmatprep.subr.mxu1 %v923_v11  ;;  %2238 = vmatprep.subr.mxu0 %v2115_v12 }
 0x147   :  { %v5149_v30 = vpop.f32.mrf.mxu0  ;;  %4469 = vmatmul.mubr.msk.f32.gmra.mxu1 %vm1015_vm4, %v988_v48  ;;  %4509 = vmatmul.mubr.msk.f32.gmra.mxu0 %vm1015_vm4, %v1497_v51  ;;  %v8787_v12 = vmax.f32 %v6031_v28, %v6029_v27  ;;  %v869_v48 = vld [vmem:[%s8775_s4 + $0x60] sm:$0xff] }
 0x148   :  { %v887_v19 = vadd.f32 %v866_v41, %v845_v36  ;;  %1162 = vmatprep.mubr.f32.mxu1 %v8785_v1  ;;  %1670 = vmatprep.mubr.f32.mxu0 %v8785_v1  ;;  %v989_v58 = vrot.slane %v6284_v35, 1  ;;  %v1498_v60 = vrot.slane %v6284_v35, 2 }
 0x149   :  { %v782_v6 = vpop.f32.mrf.mxu0  ;;  %1310 = vmatpush1.msra.mxu1 %v922_v18  ;;  %2239 = vmatpush1.msra.mxu0 %v2114_v38  ;;  %v8788_v18 = vmax.f32 %v6037_v33, %v6035_v32  ;;  %v870_v33 = vld [vmem:[%s8775_s4 + $0x68] sm:$0xff] }
 0x14a   :  { %v6312_v9 = vmax.f32 %v887_v19, 0.0  ;;  %v846_v62 = vmax.f32 %v571_v25, %v782_v6  ;;  %v990_v47 = vsel %vm973_vm3, %v987_v0, %v989_v58  ;;  %v1499_v23 = vsel %vm1482_vm5, %v1496_v2, %v1498_v60  ;;  %1311 = vmatprep.subr.mxu1 %v921_v16  ;;  %2240 = vmatprep.subr.mxu0 %v2113_v17 }
 0x14b   :  { %v5152_v50 = vpop.f32.mrf.mxu0  ;;  %4470 = vmatmul.mubr.msk.f32.gmra.mxu1 %vm1015_vm4, %v990_v47  ;;  %4510 = vmatmul.mubr.msk.f32.gmra.mxu0 %vm1015_vm4, %v1499_v23 }
 0x14c   :  { %v888_v25 = vadd.f32 %v867_v7, %v846_v62  ;;  %1168 = vmatprep.mubr.f32.mxu1 %v8785_v1  ;;  %1676 = vmatprep.mubr.f32.mxu0 %v8785_v1  ;;  %v991_v53 = vrot.slane %v6312_v9, 1  ;;  %v1500_v54 = vrot.slane %v6312_v9, 2  ;;  %v8789_v7 = vmax.f32 %v6043_v42, %v6041_v40  ;;  %v871_v42 = vld [vmem:[%s8775_s4 + $0x70] sm:$0xff] }
 0x14d   :  { %v787_v56 = vpop.f32.mrf.mxu0  ;;  %1312 = vmatpush1.msra.mxu1 %v920_v29  ;;  %2241 = vmatpush1.msra.mxu0 %v2112_v46 }
 0x14e   :  { %v6340_v11 = vmax.f32 %v888_v25, 0.0  ;;  %v847_v14 = vmax.f32 %v8787_v12, %v787_v56  ;;  %v992_v0 = vsel %vm973_vm3, %v989_v58, %v991_v53  ;;  %v1501_v2 = vsel %vm1482_vm5, %v1498_v60, %v1500_v54  ;;  %1903 = vmatprep.subr.mxu1 %v1804_v21  ;;  %2871 = vmatprep.subr.mxu0 %v2773_v22 }
 0x14f   :  { %v5155_v4 = vpop.f32.mrf.mxu0  ;;  %4471 = vmatmul.mubr.msk.f32.gmra.mxu1 %vm1015_vm4, %v992_v0  ;;  %4511 = vmatmul.mubr.msk.f32.gmra.mxu0 %vm1015_vm4, %v1501_v2  ;;  %v8790_v25 = vmax.f32 %v6049_v55, %v6047_v52  ;;  %v872_v55 = vld [vmem:[%s8775_s4 + $0x78] sm:$0xff] }
 0x150   :  { %v889_v41 = vadd.f32 %v868_v8, %v847_v14  ;;  %1174 = vmatprep.mubr.f32.mxu1 %v8785_v1  ;;  %1682 = vmatprep.mubr.f32.mxu0 %v8785_v1  ;;  %v993_v36 = vrot.slane %v6340_v11, 1  ;;  %v1502_v27 = vrot.slane %v6340_v11, 2  ;;  %v8791_v4 = vmax.f32 %v6055_v3, %v6053_v63  ;;  %v873_v3 = vld [vmem:[%s8775_s4 + $0x80] sm:$0xff] }
 0x151   :  { %v792_v28 = vpop.f32.mrf.mxu0 }
 0x152   :  { %v6356_v51 = vmax.f32 %v889_v41, 0.0  ;;  %v848_v38 = vmax.f32 %v8788_v18, %v792_v28  ;;  %v994_v30 = vsel %vm973_vm3, %v991_v53, %v993_v36  ;;  %v1503_v16 = vsel %vm1482_vm5, %v1500_v54, %v1502_v27 }
 0x153   :  { %v5158_v17 = vpop.f32.mrf.mxu0  ;;  %4472 = vmatmul.mubr.msk.f32.gmra.mxu1 %vm1015_vm4, %v994_v30  ;;  %4512 = vmatmul.mubr.msk.f32.gmra.mxu0 %vm1015_vm4, %v1503_v16  ;;  %v8792_v16 = vmax.f32 %v6061_v15, %v6059_v13  ;;  %v874_v15 = vld [vmem:[%s8775_s4 + $0x88] sm:$0xff] }
 0x154   :  { %v890_v19 = vadd.f32 %v869_v48, %v848_v38  ;;  %1180 = vmatprep.mubr.f32.mxu1 %v8785_v1  ;;  %1688 = vmatprep.mubr.f32.mxu0 %v8785_v1  ;;  %v995_v58 = vrot.slane %v6356_v51, 1  ;;  %v1504_v60 = vrot.slane %v6356_v51, 2 }
 0x155   :  { %v797_v32 = vpop.f32.mrf.mxu0 }
 0x156   :  { %v6372_v6 = vmax.f32 %v890_v19, 0.0  ;;  %v849_v62 = vmax.f32 %v8789_v7, %v797_v32  ;;  %v996_v47 = vsel %vm973_vm3, %v993_v36, %v995_v58  ;;  %v1505_v23 = vsel %vm1482_vm5, %v1502_v27, %v1504_v60 }
 0x157   :  { %v5161_v29 = vpop.f32.mrf.mxu0  ;;  %4473 = vmatmul.mubr.msk.f32.gmra.mxu1 %vm1015_vm4, %v996_v47  ;;  %4513 = vmatmul.mubr.msk.f32.gmra.mxu0 %vm1015_vm4, %v1505_v23  ;;  %v8793_v47 = vmax.f32 %v6067_v26, %v6065_v24  ;;  %v875_v26 = vld [vmem:[%s8775_s4 + $0x90] sm:$0xff] }
 0x158   :  { %v891_v46 = vadd.f32 %v870_v33, %v849_v62  ;;  %1186 = vmatprep.mubr.f32.mxu1 %v8785_v1  ;;  %1694 = vmatprep.mubr.f32.mxu0 %v8785_v1  ;;  %v997_v50 = vrot.slane %v6372_v6, 1  ;;  %v1506_v21 = vrot.slane %v6372_v6, 2 }
 0x159   :  { %v802_v40 = vpop.f32.mrf.mxu0 }
 0x15a   :  { %v6388_v22 = vmax.f32 %v891_v46, 0.0  ;;  %v850_v53 = vmax.f32 %v8790_v25, %v802_v40  ;;  %v998_v54 = vsel %vm973_vm3, %v995_v58, %v997_v50  ;;  %v1507_v56 = vsel %vm1482_vm5, %v1504_v60, %v1506_v21 }
 0x15b   :  { %v5164_v8 = vpop.f32.mrf.mxu0  ;;  %4474 = vmatmul.mubr.msk.f32.gmra.mxu1 %vm1015_vm4, %v998_v54  ;;  %4514 = vmatmul.mubr.msk.f32.gmra.mxu0 %vm1015_vm4, %v1507_v56 }
 0x15c   :  { %v892_v12 = vadd.f32 %v871_v42, %v850_v53  ;;  %1192 = vmatprep.mubr.f32.mxu1 %v8785_v1  ;;  %1700 = vmatprep.mubr.f32.mxu0 %v8785_v1  ;;  %v999_v14 = vrot.slane %v6388_v22, 1  ;;  %v1508_v0 = vrot.slane %v6388_v22, 2  ;;  %v8794_v53 = vmax.f32 %v6073_v45, %v6071_v37  ;;  %v876_v45 = vld [vmem:[%s8775_s4 + $0x98] sm:$0xff] }
 0x15d   :  { %v807_v52 = vpop.f32.mrf.mxu0 }
 0x15e   :  { %v6404_v2 = vmax.f32 %v892_v12, 0.0  ;;  %v851_v41 = vmax.f32 %v8791_v4, %v807_v52  ;;  %v1000_v36 = vsel %vm973_vm3, %v997_v50, %v999_v14  ;;  %v1509_v27 = vsel %vm1482_vm5, %v1506_v21, %v1508_v0 }
 0x15f   :  { %v5167_v28 = vpop.f32.mrf.mxu0  ;;  %4475 = vmatmul.mubr.msk.f32.gmra.mxu1 %vm1015_vm4, %v1000_v36  ;;  %4515 = vmatmul.mubr.msk.f32.gmra.mxu0 %vm1015_vm4, %v1509_v27  ;;  %v8795_v4 = vmax.f32 %v6079_v10, %v6077_v5  ;;  %v877_v10 = vld [vmem:[%s8775_s4 + $0xa0] sm:$0xff]  ;;  %s5347_s4 = scalar_lea.vmem %s4390_s15, 32 }
 0x160   :  { %v893_v48 = vadd.f32 %v872_v55, %v851_v41  ;;  %1198 = vmatprep.mubr.f32.mxu1 %v8785_v1  ;;  %1706 = vmatprep.mubr.f32.mxu0 %v8785_v1  ;;  %v1001_v18 = vrot.slane %v6404_v2, 1  ;;  %v1510_v38 = vrot.slane %v6404_v2, 2  ;;  %p5348_p0 = scmp.ne.s32.totalorder %s4390_s15, %s5347_s4  ;;  %p5353_p2 = scmp.lt.s32.totalorder %s5347_s4, %s5347_s4 }
 0x161   :  { %v812_v63 = vpop.f32.mrf.mxu0 }
 0x162   :  { %v6420_v30 = vmax.f32 %v893_v48, 0.0  ;;  %v852_v17 = vmax.f32 %v8792_v16, %v812_v63  ;;  %v1002_v19 = vsel %vm973_vm3, %v999_v14, %v1001_v18  ;;  %v1511_v58 = vsel %vm1482_vm5, %v1508_v0, %v1510_v38  ;;  %p5354_p3 = por %p5353_p2, %p5352_p1 }
 0x163   :  { %v5170_v60 = vpop.f32.mrf.mxu0  ;;  %4476 = vmatmul.mubr.msk.f32.gmra.mxu1 %vm1015_vm4, %v1002_v19  ;;  %4516 = vmatmul.mubr.msk.f32.gmra.mxu0 %vm1015_vm4, %v1511_v58 }
 0x164   :  { %v894_v32 = vadd.f32 %v873_v3, %v852_v17  ;;  %1204 = vmatprep.mubr.f32.mxu1 %v8785_v1  ;;  %1712 = vmatprep.mubr.f32.mxu0 %v8785_v1  ;;  %v1003_v33 = vrot.slane %v6420_v30, 1  ;;  %v1512_v7 = vrot.slane %v6420_v30, 2  ;;  %v8796_v3 = vmax.f32 %v6085_v34, %v6083_v31  ;;  %p5355_p4 = pnand %p5354_p3, %p5348_p0 }
 0x165   :  { %v817_v13 = vpop.f32.mrf.mxu0 }
 0x166   :  { %v6436_v62 = vmax.f32 %v894_v32, 0.0  ;;  %v853_v23 = vmax.f32 %v8793_v47, %v817_v13  ;;  %v1004_v29 = vsel %vm973_vm3, %v1001_v18, %v1003_v33  ;;  %v1513_v46 = vsel %vm1482_vm5, %v1510_v38, %v1512_v7 }
 0x167   :  { %v5173_v50 = vpop.f32.mrf.mxu0  ;;  %4477 = vmatmul.mubr.msk.f32.gmra.mxu1 %vm1015_vm4, %v1004_v29  ;;  %4517 = vmatmul.mubr.msk.f32.gmra.mxu0 %vm1015_vm4, %v1513_v46  ;;  %v2130_v29 = vrot.slane %v6104_v59, 4  ;;  %v2129_v46 = vrot.slane %v6099_v61, 4 }
 0x168   :  { %v895_v21 = vadd.f32 %v874_v15, %v853_v23  ;;  %1210 = vmatprep.mubr.f32.mxu1 %v8785_v1  ;;  %1718 = vmatprep.mubr.f32.mxu0 %v8785_v1  ;;  %v1005_v40 = vrot.slane %v6436_v62, 1  ;;  %v1514_v42 = vrot.slane %v6436_v62, 2 }
 0x169   :  { %v822_v24 = vpop.f32.mrf.mxu0  ;;  %v2131_v50 = vsel %vm2128_vm6, %v2129_v46, %v2130_v29  ;;  %v2759_v46 = vld [vmem:[%s8776_s5 + $0x308] sm:$0xff] }
 0x16a   :  { %v6452_v25 = vmax.f32 %v895_v21, 0.0  ;;  %v854_v54 = vmax.f32 %v8794_v53, %v822_v24  ;;  %v1006_v56 = vsel %vm973_vm3, %v1003_v33, %v1005_v40  ;;  %v1515_v8 = vsel %vm1482_vm5, %v1512_v7, %v1514_v42  ;;  %v1802_v24 = vld [vmem:[%s8776_s5 + $0x1e8] sm:$0xff] }
 0x16b   :  { %v5176_v12 = vpop.f32.mrf.mxu0  ;;  %4478 = vmatmul.mubr.msk.f32.gmra.mxu1 %vm1015_vm4, %v1006_v56  ;;  %4518 = vmatmul.mubr.msk.f32.gmra.mxu0 %vm1015_vm4, %v1515_v8  ;;  %v2132_v21 = vrot.slane %v6116_v43, 4  ;;  %v1801_v56 = vld [vmem:[%s8776_s5 + $0x1e0] sm:$0xff] }
 0x16c   :  { %v896_v14 = vadd.f32 %v875_v26, %v854_v54  ;;  %1216 = vmatprep.mubr.f32.mxu1 %v8785_v1  ;;  %1724 = vmatprep.mubr.f32.mxu0 %v8785_v1  ;;  %v1007_v0 = vrot.slane %v6452_v25, 1  ;;  %v1516_v52 = vrot.slane %v6452_v25, 2  ;;  %v2771_v26 = vld [vmem:[%s8776_s5 + $0x368] sm:$0xff]  ;;  %v2134_v54 = vrot.slane %v6144_v39, 4  ;;  %v2770_v8 = vld [vmem:[%s8776_s5 + $0x360] sm:$0xff]  ;;  %v1800_v12 = vld [vmem:[%s8776_s5 + $0x1d8] sm:$0xff] }
 0x16d   :  { %v827_v37 = vpop.f32.mrf.mxu0  ;;  %v2133_v53 = vsel %vm2128_vm6, %v2130_v29, %v2132_v21  ;;  %v1790_v29 = vld [vmem:[%s8776_s5 + $0x188] sm:$0xff] }
 0x16e   :  { %v6468_v55 = vmax.f32 %v896_v14, 0.0  ;;  %v855_v41 = vmax.f32 %v8795_v4, %v827_v37  ;;  %v1008_v36 = vsel %vm973_vm3, %v1005_v40, %v1007_v0  ;;  %v1517_v27 = vsel %vm1482_vm5, %v1514_v42, %v1516_v52  ;;  %v1803_v40 = vld [vmem:[%s8776_s5 + $0x1f0] sm:$0xff]  ;;  %v2769_v14 = vld [vmem:[%s8776_s5 + $0x358] sm:$0xff]  ;;  %v1798_v4 = vld [vmem:[%s8776_s5 + $0x1c8] sm:$0xff] }
 0x16f   :  { %v5179_v28 = vpop.f32.mrf.mxu0  ;;  %4479 = vmatmul.mubr.msk.f32.gmra.mxu1 %vm1015_vm4, %v1008_v36  ;;  %4519 = vmatmul.mubr.msk.f32.gmra.mxu0 %vm1015_vm4, %v1517_v27  ;;  %v2772_v42 = vld [vmem:[%s8776_s5 + $0x370] sm:$0xff]  ;;  %v2138_v27 = vrot.slane %v6200_v44, 4 }
 0x170   :  { %v897_v48 = vadd.f32 %v876_v45, %v855_v41  ;;  %1222 = vmatprep.mubr.f32.mxu1 %v8785_v1  ;;  %1730 = vmatprep.mubr.f32.mxu0 %v8785_v1  ;;  %v1009_v18 = vrot.slane %v6468_v55, 1  ;;  %v1518_v38 = vrot.slane %v6468_v55, 2  ;;  %v1799_v37 = vld [vmem:[%s8776_s5 + $0x1d0] sm:$0xff]  ;;  %v2767_v41 = vld [vmem:[%s8776_s5 + $0x348] sm:$0xff]  ;;  %v1797_v28 = vld [vmem:[%s8776_s5 + $0x1c0] sm:$0xff] }
 0x171   :  { %v832_v5 = vpop.f32.mrf.mxu0  ;;  %v2768_v45 = vld [vmem:[%s8776_s5 + $0x350] sm:$0xff] }
 0x172   :  { %v6484_v63 = vmax.f32 %v897_v48, 0.0  ;;  %v856_v16 = vmax.f32 %v8796_v3, %v832_v5  ;;  %v1010_v17 = vsel %vm973_vm3, %v1007_v0, %v1009_v18  ;;  %v1519_v19 = vsel %vm1482_vm5, %v1516_v52, %v1518_v38  ;;  %v2766_v48 = vld [vmem:[%s8776_s5 + $0x340] sm:$0xff]  ;;  %v1795_v3 = vld [vmem:[%s8776_s5 + $0x1b0] sm:$0xff] }
 0x173   :  { %v5182_v58 = vpop.f32.mrf.mxu0  ;;  %4480 = vmatmul.mubr.msk.f32.gmra.mxu1 %vm1015_vm4, %v1010_v17  ;;  %4520 = vmatmul.mubr.msk.f32.gmra.mxu0 %vm1015_vm4, %v1519_v19  ;;  %v2135_v0 = vsel %vm2128_vm6, %v2132_v21, %v2134_v54  ;;  %v2136_v52 = vrot.slane %v6172_v57, 4  ;;  %v1794_v17 = vld [vmem:[%s8776_s5 + $0x1a8] sm:$0xff]  ;;  %v2146_v21 = vrot.slane %v6312_v9, 4 }
 0x174   :  { %v898_v60 = vadd.f32 %v877_v10, %v856_v16  ;;  %1228 = vmatprep.mubr.f32.mxu1 %v8785_v1  ;;  %1736 = vmatprep.mubr.f32.mxu0 %v8785_v1  ;;  %v1011_v32 = vrot.slane %v6484_v63, 1  ;;  %v1520_v33 = vrot.slane %v6484_v63, 2  ;;  %v2140_v10 = vrot.slane %v6228_v49, 4  ;;  %v2764_v16 = vld [vmem:[%s8776_s5 + $0x330] sm:$0xff]  ;;  %v2763_v19 = vld [vmem:[%s8776_s5 + $0x328] sm:$0xff] }
 0x175   :  { %v2137_v36 = vsel %vm2128_vm6, %v2134_v54, %v2136_v52  ;;  %v2139_v5 = vsel %vm2128_vm6, %v2136_v52, %v2138_v27 }
 0x176   :  { %v6497_v31 = vmax.f32 %v898_v60, 0.0  ;;  %v1012_v34 = vsel %vm973_vm3, %v1009_v18, %v1011_v32  ;;  %v1521_v7 = vsel %vm1482_vm5, %v1518_v38, %v1520_v33  ;;  %v1796_v18 = vld [vmem:[%s8776_s5 + $0x1b8] sm:$0xff]  ;;  %v2141_v58 = vsel %vm2128_vm6, %v2138_v27, %v2140_v10 }
 0x177   :  { %4481 = vmatmul.mubr.msk.f32.gmra.mxu1 %vm1015_vm4, %v1012_v34  ;;  %4521 = vmatmul.mubr.msk.f32.gmra.mxu0 %vm1015_vm4, %v1521_v7  ;;  %v2765_v38 = vld [vmem:[%s8776_s5 + $0x338] sm:$0xff]  ;;  %v2142_v60 = vrot.slane %v6256_v20, 4 }
 0x178   :  { %1234 = vmatprep.mubr.f32.mxu1 %v8785_v1  ;;  %1742 = vmatprep.mubr.f32.mxu0 %v8785_v1  ;;  %v1013_v13 = vrot.slane %v6497_v31, 1  ;;  %v1522_v15 = vrot.slane %v6497_v31, 2  ;;  %v1792_v34 = vld [vmem:[%s8776_s5 + $0x198] sm:$0xff] }
 0x179   :  { %v2761_v7 = vld [vmem:[%s8776_s5 + $0x318] sm:$0xff] }
 0x17a   :  { %v1014_v47 = vsel %vm973_vm3, %v1011_v32, %v1013_v13  ;;  %v1523_v23 = vsel %vm1482_vm5, %v1520_v33, %v1522_v15  ;;  %v1793_v32 = vld [vmem:[%s8776_s5 + $0x1a0] sm:$0xff]  ;;  %v2143_v13 = vsel %vm2128_vm6, %v2140_v10, %v2142_v60  ;;  %v2144_v15 = vrot.slane %v6284_v35, 4 }
 0x17b   :  { %4482 = vmatmul.mubr.msk.f32.gmra.mxu1 %vm1015_vm4, %v1014_v47  ;;  %4522 = vmatmul.mubr.msk.f32.gmra.mxu0 %vm1015_vm4, %v1523_v23  ;;  %v2762_v33 = vld [vmem:[%s8776_s5 + $0x320] sm:$0xff]  ;;  %v1791_v47 = vld [vmem:[%s8776_s5 + $0x190] sm:$0xff] }
 0x17c   :  { %1345 = vmatprep.mubr.f32.mxu1 %v8785_v1  ;;  %2274 = vmatprep.mubr.f32.mxu0 %v8785_v1  ;;  %v2760_v23 = vld [vmem:[%s8776_s5 + $0x310] sm:$0xff] }
 0x17f   :  { %4483 = vmatmul.mubr.msk.f32.vlgmr.msra.gmra.mxu1 %vm1015_vm4, %v6099_v61  ;;  %4543 = vmatmul.mubr.msk.f32.vlgmr.msra.gmra.mxu0 %vm1015_vm4, %v2131_v50  ;;  %v2145_v50 = vsel %vm2128_vm6, %v2142_v60, %v2144_v15  ;;  %v2774_v60 = vrot.slane %v6099_v61, 6 }
 0x180   :  { %1351 = vmatprep.mubr.f32.mxu1 %v8785_v1  ;;  %2280 = vmatprep.mubr.f32.mxu0 %v8785_v1 }
 0x181   :  { %1904 = vmatpush1.msra.mxu1 %v1803_v40  ;;  %2872 = vmatpush1.msra.mxu0 %v2772_v42  ;;  %v1789_v40 = vld [vmem:[%s8776_s5 + $0x180] sm:$0xff] }
 0x182   :  { %1905 = vmatprep.subr.mxu1 %v1802_v24  ;;  %2873 = vmatprep.subr.mxu0 %v2771_v26  ;;  %v2758_v42 = vld [vmem:[%s8776_s5 + $0x300] sm:$0xff]  ;;  %v2450_v24 = vld [vmem:[%s8776_s5 + $0x2f8] sm:$0xff]  ;;  %v2147_v26 = vsel %vm2128_vm6, %v2144_v15, %v2146_v21  ;;  %v2448_v15 = vld [vmem:[%s8776_s5 + $0x2e8] sm:$0xff] }
 0x183   :  { %4484 = vmatmul.mubr.msk.f32.gmra.mxu1 %vm1015_vm4, %v6104_v59  ;;  %4544 = vmatmul.mubr.msk.f32.gmra.mxu0 %vm1015_vm4, %v2133_v53  ;;  %v2148_v53 = vrot.slane %v6340_v11, 4 }
 0x184   :  { %1357 = vmatprep.mubr.f32.mxu1 %v8785_v1  ;;  %2286 = vmatprep.mubr.f32.mxu0 %v8785_v1 }
 0x185   :  { %1906 = vmatpush1.msra.mxu1 %v1801_v56  ;;  %2874 = vmatpush1.msra.mxu0 %v2770_v8  ;;  %v2149_v54 = vsel %vm2128_vm6, %v2146_v21, %v2148_v53  ;;  %v2150_v56 = vrot.slane %v6356_v51, 4  ;;  %v2446_v21 = vld [vmem:[%s8776_s5 + $0x2d8] sm:$0xff] }
 0x186   :  { %1907 = vmatprep.subr.mxu1 %v1800_v12  ;;  %2875 = vmatprep.subr.mxu0 %v2769_v14  ;;  %v2152_v12 = vrot.slane %v6372_v6, 4 }
 0x187   :  { %4485 = vmatmul.mubr.msk.f32.gmra.mxu1 %vm1015_vm4, %v6116_v43  ;;  %4545 = vmatmul.mubr.msk.f32.gmra.mxu0 %vm1015_vm4, %v2135_v0  ;;  %v2151_v8 = vsel %vm2128_vm6, %v2148_v53, %v2150_v56  ;;  %v2154_v0 = vrot.slane %v6388_v22, 4  ;;  %v2445_v53 = vld [vmem:[%s8776_s5 + $0x2d0] sm:$0xff] }
 0x188   :  { %1363 = vmatprep.mubr.f32.mxu1 %v8785_v1  ;;  %2292 = vmatprep.mubr.f32.mxu0 %v8785_v1  ;;  %v2153_v14 = vsel %vm2128_vm6, %v2150_v56, %v2152_v12 }
 0x189   :  { %1908 = vmatpush1.msra.mxu1 %v1799_v37  ;;  %2876 = vmatpush1.msra.mxu0 %v2768_v45  ;;  %v2155_v52 = vsel %vm2128_vm6, %v2152_v12, %v2154_v0  ;;  %v2156_v37 = vrot.slane %v6404_v2, 4  ;;  %v1815_v12 = vrot.slane %v6200_v44, 3 }
 0x18a   :  { %1909 = vmatprep.subr.mxu1 %v1798_v4  ;;  %2877 = vmatprep.subr.mxu0 %v2767_v41  ;;  %v2158_v4 = vrot.slane %v6420_v30, 4 }
 0x18b   :  { %4486 = vmatmul.mubr.msk.f32.gmra.mxu1 %vm1015_vm4, %v6144_v39  ;;  %4546 = vmatmul.mubr.msk.f32.gmra.mxu0 %vm1015_vm4, %v2137_v36  ;;  %v2157_v45 = vsel %vm2128_vm6, %v2154_v0, %v2156_v37  ;;  %v2160_v36 = vrot.slane %v6436_v62, 4  ;;  %v2443_v0 = vld [vmem:[%s8776_s5 + $0x2c0] sm:$0xff] }
 0x18c   :  { %1369 = vmatprep.mubr.f32.mxu1 %v8785_v1  ;;  %2298 = vmatprep.mubr.f32.mxu0 %v8785_v1  ;;  %v2159_v41 = vsel %vm2128_vm6, %v2156_v37, %v2158_v4 }
 0x18d   :  { %1910 = vmatpush1.msra.mxu1 %v1797_v28  ;;  %2878 = vmatpush1.msra.mxu0 %v2766_v48  ;;  %v2161_v27 = vsel %vm2128_vm6, %v2158_v4, %v2160_v36  ;;  %v2162_v28 = vrot.slane %v6452_v25, 4  ;;  %v1817_v4 = vrot.slane %v6228_v49, 3 }
 0x18e   :  { %1911 = vmatprep.subr.mxu1 %v1796_v18  ;;  %2879 = vmatprep.subr.mxu0 %v2765_v38  ;;  %v2164_v18 = vrot.slane %v6468_v55, 4 }
 0x18f   :  { %4487 = vmatmul.mubr.msk.f32.gmra.mxu1 %vm1015_vm4, %v6172_v57  ;;  %4547 = vmatmul.mubr.msk.f32.gmra.mxu0 %vm1015_vm4, %v2139_v5  ;;  %v2163_v48 = vsel %vm2128_vm6, %v2160_v36, %v2162_v28  ;;  %v2166_v5 = vrot.slane %v6484_v63, 4  ;;  %v2441_v36 = vld [vmem:[%s8776_s5 + $0x2b0] sm:$0xff] }
 0x190   :  { %1375 = vmatprep.mubr.f32.mxu1 %v8785_v1  ;;  %2304 = vmatprep.mubr.f32.mxu0 %v8785_v1  ;;  %v2165_v38 = vsel %vm2128_vm6, %v2162_v28, %v2164_v18  ;;  %v1818_v28 = vsel %vm1805_vm7, %v1815_v12, %v1817_v4 }
 0x191   :  { %1912 = vmatpush1.msra.mxu1 %v1795_v3  ;;  %2880 = vmatpush1.msra.mxu0 %v2764_v16  ;;  %v2167_v10 = vsel %vm2128_vm6, %v2164_v18, %v2166_v5  ;;  %v2168_v3 = vrot.slane %v6497_v31, 4  ;;  %v1819_v18 = vrot.slane %v6256_v20, 3 }
 0x192   :  { %1913 = vmatprep.subr.mxu1 %v1794_v17  ;;  %2881 = vmatprep.subr.mxu0 %v2763_v19  ;;  %v1807_v17 = vrot.slane %v6104_v59, 3  ;;  %v2775_v19 = vrot.slane %v6104_v59, 6 }
 0x193   :  { %4488 = vmatmul.mubr.msk.f32.gmra.mxu1 %vm1015_vm4, %v6200_v44  ;;  %4548 = vmatmul.mubr.msk.f32.gmra.mxu0 %vm1015_vm4, %v2141_v58  ;;  %v2169_v16 = vsel %vm2128_vm6, %v2166_v5, %v2168_v3  ;;  %v1806_v58 = vrot.slane %v6099_v61, 3  ;;  %v2439_v5 = vld [vmem:[%s8776_s5 + $0x2a0] sm:$0xff]  ;;  %v1820_v3 = vsel %vm1805_vm7, %v1817_v4, %v1819_v18 }
 0x194   :  { %1381 = vmatprep.mubr.f32.mxu1 %v8785_v1  ;;  %2310 = vmatprep.mubr.f32.mxu0 %v8785_v1 }
 0x195   :  { %1914 = vmatpush1.msra.mxu1 %v1793_v32  ;;  %2882 = vmatpush1.msra.mxu0 %v2762_v33  ;;  %v1808_v32 = vsel %vm1805_vm7, %v1806_v58, %v1807_v17  ;;  %v2776_v33 = vsel %vm133_vm0, %v2774_v60, %v2775_v19  ;;  %v2437_v58 = vld [vmem:[%s8776_s5 + $0x290] sm:$0xff]  ;;  %v2436_v60 = vld [vmem:[%s8776_s5 + $0x288] sm:$0xff] }
 0x196   :  { %1915 = vmatprep.subr.mxu1 %v1792_v34  ;;  %2883 = vmatprep.subr.mxu0 %v2761_v7  ;;  %v1809_v34 = vrot.slane %v6116_v43, 3  ;;  %v2777_v7 = vrot.slane %v6116_v43, 6 }
 0x197   :  { %4489 = vmatmul.mubr.msk.f32.gmra.mxu1 %vm1015_vm4, %v6228_v49  ;;  %4549 = vmatmul.mubr.msk.f32.gmra.mxu0 %vm1015_vm4, %v2143_v13  ;;  %v2449_v13 = vld [vmem:[%s8776_s5 + $0x2f0] sm:$0xff] }
 0x198   :  { %1387 = vmatprep.mubr.f32.mxu1 %v8785_v1  ;;  %2316 = vmatprep.mubr.f32.mxu0 %v8785_v1 }
 0x199   :  { %1916 = vmatpush1.msra.mxu1 %v1791_v47  ;;  %2884 = vmatpush1.msra.mxu0 %v2760_v23  ;;  %v1810_v47 = vsel %vm1805_vm7, %v1807_v17, %v1809_v34  ;;  %v2778_v23 = vsel %vm133_vm0, %v2775_v19, %v2777_v7  ;;  %v1821_v17 = vrot.slane %v6284_v35, 3  ;;  %v2789_v19 = vrot.slane %v6284_v35, 6 }
 0x19a   :  { %1917 = vmatprep.subr.mxu1 %v1790_v29  ;;  %2885 = vmatprep.subr.mxu0 %v2759_v46  ;;  %v1811_v29 = vrot.slane %v6144_v39, 3  ;;  %v2779_v46 = vrot.slane %v6144_v39, 6 }
 0x19b   :  { %4490 = vmatmul.mubr.msk.f32.gmra.mxu1 %vm1015_vm4, %v6256_v20  ;;  %4550 = vmatmul.mubr.msk.f32.gmra.mxu0 %vm1015_vm4, %v2145_v50  ;;  %v2447_v50 = vld [vmem:[%s8776_s5 + $0x2e0] sm:$0xff] }
 0x19c   :  { %1393 = vmatprep.mubr.f32.mxu1 %v8785_v1  ;;  %2322 = vmatprep.mubr.f32.mxu0 %v8785_v1 }
 0x19d   :  { %1918 = vmatpush1.msra.mxu1 %v1789_v40  ;;  %2886 = vmatpush1.msra.mxu0 %v2758_v42  ;;  %v1812_v40 = vsel %vm1805_vm7, %v1809_v34, %v1811_v29  ;;  %v2780_v42 = vsel %vm133_vm0, %v2777_v7, %v2779_v46  ;;  %v1823_v34 = vrot.slane %v6312_v9, 3  ;;  %v2791_v7 = vrot.slane %v6312_v9, 6 }
 0x19e   :  { %2549 = vmatprep.subr.mxu1 %v2450_v24  ;;  %v1813_v24 = vrot.slane %v6172_v57, 3 }
 0x19f   :  { %4491 = vmatmul.mubr.msk.f32.gmra.mxu1 %vm1015_vm4, %v6284_v35  ;;  %4551 = vmatmul.mubr.msk.f32.gmra.mxu0 %vm1015_vm4, %v2147_v26  ;;  %v2781_v26 = vrot.slane %v6172_v57, 6 }
 0x1a0   :  { %1399 = vmatprep.mubr.f32.mxu1 %v8785_v1  ;;  %2328 = vmatprep.mubr.f32.mxu0 %v8785_v1  ;;  %v1814_v56 = vsel %vm1805_vm7, %v1811_v29, %v1813_v24  ;;  %v1816_v37 = vsel %vm1805_vm7, %v1813_v24, %v1815_v12  ;;  %v2793_v29 = vrot.slane %v6340_v11, 6 }
 0x1a2   :  { %v2794_v24 = vsel %vm133_vm0, %v2791_v7, %v2793_v29 }
 0x1a3   :  { %4492 = vmatmul.mubr.msk.f32.gmra.mxu1 %vm1015_vm4, %v6312_v9  ;;  %4552 = vmatmul.mubr.msk.f32.gmra.mxu0 %vm1015_vm4, %v2149_v54  ;;  %v2444_v54 = vld [vmem:[%s8776_s5 + $0x2c8] sm:$0xff] }
 0x1a4   :  { %1405 = vmatprep.mubr.f32.mxu1 %v8785_v1  ;;  %2334 = vmatprep.mubr.f32.mxu0 %v8785_v1 }
 0x1a7   :  { %4493 = vmatmul.mubr.msk.f32.gmra.mxu1 %vm1015_vm4, %v6340_v11  ;;  %4553 = vmatmul.mubr.msk.f32.gmra.mxu0 %vm1015_vm4, %v2151_v8  ;;  %v2782_v8 = vsel %vm133_vm0, %v2779_v46, %v2781_v26 }
 0x1a8   :  { %1411 = vmatprep.mubr.f32.mxu1 %v8785_v1  ;;  %2340 = vmatprep.mubr.f32.mxu0 %v8785_v1 }
 0x1ab   :  { %4494 = vmatmul.mubr.msk.f32.gmra.mxu1 %vm1015_vm4, %v6356_v51  ;;  %4554 = vmatmul.mubr.msk.f32.gmra.mxu0 %vm1015_vm4, %v2153_v14  ;;  %v2783_v14 = vrot.slane %v6200_v44, 6 }
 0x1ac   :  { %1417 = vmatprep.mubr.f32.mxu1 %v8785_v1  ;;  %2346 = vmatprep.mubr.f32.mxu0 %v8785_v1 }
 0x1af   :  { %4495 = vmatmul.mubr.msk.f32.gmra.mxu1 %vm1015_vm4, %v6372_v6  ;;  %4555 = vmatmul.mubr.msk.f32.gmra.mxu0 %vm1015_vm4, %v2155_v52  ;;  %v2442_v52 = vld [vmem:[%s8776_s5 + $0x2b8] sm:$0xff] }
 0x1b0   :  { %1423 = vmatprep.mubr.f32.mxu1 %v8785_v1  ;;  %2352 = vmatprep.mubr.f32.mxu0 %v8785_v1 }
 0x1b3   :  { %4496 = vmatmul.mubr.msk.f32.gmra.mxu1 %vm1015_vm4, %v6388_v22  ;;  %4556 = vmatmul.mubr.msk.f32.gmra.mxu0 %vm1015_vm4, %v2157_v45  ;;  %v2784_v45 = vsel %vm133_vm0, %v2781_v26, %v2783_v14  ;;  %v1827_v26 = vrot.slane %v6356_v51, 3 }
 0x1b4   :  { %1429 = vmatprep.mubr.f32.mxu1 %v8785_v1  ;;  %2358 = vmatprep.mubr.f32.mxu0 %v8785_v1 }
 0x1b7   :  { %4497 = vmatmul.mubr.msk.f32.gmra.mxu1 %vm1015_vm4, %v6404_v2  ;;  %4557 = vmatmul.mubr.msk.f32.gmra.mxu0 %vm1015_vm4, %v2159_v41  ;;  %v2785_v41 = vrot.slane %v6228_v49, 6 }
 0x1b8   :  { %1435 = vmatprep.mubr.f32.mxu1 %v8785_v1  ;;  %2364 = vmatprep.mubr.f32.mxu0 %v8785_v1 }
 0x1bb   :  { %4498 = vmatmul.mubr.msk.f32.gmra.mxu1 %vm1015_vm4, %v6420_v30  ;;  %4558 = vmatmul.mubr.msk.f32.gmra.mxu0 %vm1015_vm4, %v2161_v27  ;;  %v2440_v27 = vld [vmem:[%s8776_s5 + $0x2a8] sm:$0xff] }
 0x1bc   :  { %1441 = vmatprep.mubr.f32.mxu1 %v8785_v1  ;;  %2370 = vmatprep.mubr.f32.mxu0 %v8785_v1 }
 0x1bf   :  { %4499 = vmatmul.mubr.msk.f32.gmra.mxu1 %vm1015_vm4, %v6436_v62  ;;  %4559 = vmatmul.mubr.msk.f32.gmra.mxu0 %vm1015_vm4, %v2163_v48  ;;  %v2786_v48 = vsel %vm133_vm0, %v2783_v14, %v2785_v41 }
 0x1c0   :  { %1447 = vmatprep.mubr.f32.mxu1 %v8785_v1  ;;  %2376 = vmatprep.mubr.f32.mxu0 %v8785_v1 }
 0x1c3   :  { %4500 = vmatmul.mubr.msk.f32.gmra.mxu1 %vm1015_vm4, %v6452_v25  ;;  %4560 = vmatmul.mubr.msk.f32.gmra.mxu0 %vm1015_vm4, %v2165_v38  ;;  %v2787_v38 = vrot.slane %v6256_v20, 6 }
 0x1c4   :  { %1453 = vmatprep.mubr.f32.mxu1 %v8785_v1  ;;  %2382 = vmatprep.mubr.f32.mxu0 %v8785_v1 }
 0x1c7   :  { %4501 = vmatmul.mubr.msk.f32.gmra.mxu1 %vm1015_vm4, %v6468_v55  ;;  %4561 = vmatmul.mubr.msk.f32.gmra.mxu0 %vm1015_vm4, %v2167_v10  ;;  %v2438_v10 = vld [vmem:[%s8776_s5 + $0x298] sm:$0xff] }
 0x1c8   :  { %1459 = vmatprep.mubr.f32.mxu1 %v8785_v1  ;;  %2388 = vmatprep.mubr.f32.mxu0 %v8785_v1 }
 0x1cb   :  { %4502 = vmatmul.mubr.msk.f32.gmra.mxu1 %vm1015_vm4, %v6484_v63  ;;  %4562 = vmatmul.mubr.msk.f32.gmra.mxu0 %vm1015_vm4, %v2169_v16  ;;  %v2788_v16 = vsel %vm133_vm0, %v2785_v41, %v2787_v38 }
 0x1cc   :  { %1951 = vmatprep.mubr.f32.mxu1 %v8785_v1  ;;  %2919 = vmatprep.mubr.f32.mxu0 %v8785_v1 }
 0x1cf   :  { %4523 = vmatmul.mubr.msk.f32.vlgmr.msra.gmra.mxu1 %vm1015_vm4, %v1808_v32  ;;  %4583 = vmatmul.mubr.msk.f32.vlgmr.msra.gmra.mxu0 %vm1015_vm4, %v2776_v33  ;;  %v1822_v32 = vsel %vm1805_vm7, %v1819_v18, %v1821_v17  ;;  %v2790_v33 = vsel %vm133_vm0, %v2787_v38, %v2789_v19  ;;  %v2799_v18 = vrot.slane %v6388_v22, 6 }
 0x1d0   :  { %1957 = vmatprep.mubr.f32.mxu1 %v8785_v1  ;;  %2925 = vmatprep.mubr.f32.mxu0 %v8785_v1 }
 0x1d1   :  { %2550 = vmatpush1.msra.mxu1 %v2449_v13  ;;  %v2435_v13 = vld [vmem:[%s8776_s5 + $0x280] sm:$0xff] }
 0x1d2   :  { %2551 = vmatprep.subr.mxu1 %v2448_v15  ;;  %v1824_v15 = vsel %vm1805_vm7, %v1821_v17, %v1823_v34 }
 0x1d3   :  { %4524 = vmatmul.mubr.msk.f32.gmra.mxu1 %vm1015_vm4, %v1810_v47  ;;  %4584 = vmatmul.mubr.msk.f32.gmra.mxu0 %vm1015_vm4, %v2778_v23  ;;  %v2792_v47 = vsel %vm133_vm0, %v2789_v19, %v2791_v7  ;;  %v1825_v23 = vrot.slane %v6340_v11, 3  ;;  %v1833_v19 = vrot.slane %v6404_v2, 3 }
 0x1d4   :  { %1963 = vmatprep.mubr.f32.mxu1 %v8785_v1  ;;  %2931 = vmatprep.mubr.f32.mxu0 %v8785_v1 }
 0x1d5   :  { %2552 = vmatpush1.msra.mxu1 %v2447_v50  ;;  %v1828_v14 = vsel %vm1805_vm7, %v1825_v23, %v1827_v26 }
 0x1d6   :  { %2553 = vmatprep.subr.mxu1 %v2446_v21 }
 0x1d7   :  { %4525 = vmatmul.mubr.msk.f32.gmra.mxu1 %vm1015_vm4, %v1812_v40  ;;  %4585 = vmatmul.mubr.msk.f32.gmra.mxu0 %vm1015_vm4, %v2780_v42  ;;  %v1826_v42 = vsel %vm1805_vm7, %v1823_v34, %v1825_v23 }
 0x1d8   :  { %1969 = vmatprep.mubr.f32.mxu1 %v8785_v1  ;;  %2937 = vmatprep.mubr.f32.mxu0 %v8785_v1 }
 0x1d9   :  { %2554 = vmatpush1.msra.mxu1 %v2445_v53  ;;  %v2795_v53 = vrot.slane %v6356_v51, 6 }
 0x1da   :  { %2555 = vmatprep.subr.mxu1 %v2444_v54 }
 0x1db   :  { %4526 = vmatmul.mubr.msk.f32.gmra.mxu1 %vm1015_vm4, %v1814_v56  ;;  %4586 = vmatmul.mubr.msk.f32.gmra.mxu0 %vm1015_vm4, %v2782_v8 }
 0x1dc   :  { %1975 = vmatprep.mubr.f32.mxu1 %v8785_v1  ;;  %2943 = vmatprep.mubr.f32.mxu0 %v8785_v1 }
 0x1dd   :  { %2556 = vmatpush1.msra.mxu1 %v2443_v0  ;;  %v2796_v0 = vsel %vm133_vm0, %v2793_v29, %v2795_v53 }
 0x1de   :  { %2557 = vmatprep.subr.mxu1 %v2442_v52  ;;  %v1829_v52 = vrot.slane %v6372_v6, 3 }
 0x1df   :  { %4527 = vmatmul.mubr.msk.f32.gmra.mxu1 %vm1015_vm4, %v1816_v37  ;;  %4587 = vmatmul.mubr.msk.f32.gmra.mxu0 %vm1015_vm4, %v2784_v45  ;;  %v2797_v37 = vrot.slane %v6372_v6, 6 }
 0x1e0   :  { %1981 = vmatprep.mubr.f32.mxu1 %v8785_v1  ;;  %2949 = vmatprep.mubr.f32.mxu0 %v8785_v1 }
 0x1e1   :  { %2558 = vmatpush1.msra.mxu1 %v2441_v36  ;;  %v2800_v17 = vsel %vm133_vm0, %v2797_v37, %v2799_v18 }
 0x1e2   :  { %2559 = vmatprep.subr.mxu1 %v2440_v27  ;;  %v1830_v27 = vsel %vm1805_vm7, %v1827_v26, %v1829_v52 }
 0x1e3   :  { %4528 = vmatmul.mubr.msk.f32.gmra.mxu1 %vm1015_vm4, %v1818_v28  ;;  %4588 = vmatmul.mubr.msk.f32.gmra.mxu0 %vm1015_vm4, %v2786_v48  ;;  %v2798_v28 = vsel %vm133_vm0, %v2795_v53, %v2797_v37  ;;  %v1831_v48 = vrot.slane %v6388_v22, 3 }
 0x1e4   :  { %1987 = vmatprep.mubr.f32.mxu1 %v8785_v1  ;;  %2955 = vmatprep.mubr.f32.mxu0 %v8785_v1 }
 0x1e5   :  { %2560 = vmatpush1.msra.mxu1 %v2439_v5  ;;  %v1834_v7 = vsel %vm1805_vm7, %v1831_v48, %v1833_v19 }
 0x1e6   :  { %2561 = vmatprep.subr.mxu1 %v2438_v10 }
 0x1e7   :  { %4529 = vmatmul.mubr.msk.f32.gmra.mxu1 %vm1015_vm4, %v1820_v3  ;;  %4589 = vmatmul.mubr.msk.f32.gmra.mxu0 %vm1015_vm4, %v2788_v16  ;;  %v1832_v16 = vsel %vm1805_vm7, %v1829_v52, %v1831_v48 }
 0x1e8   :  { %1993 = vmatprep.mubr.f32.mxu1 %v8785_v1  ;;  %2961 = vmatprep.mubr.f32.mxu0 %v8785_v1 }
 0x1e9   :  { %2562 = vmatpush1.msra.mxu1 %v2437_v58  ;;  %v2801_v58 = vrot.slane %v6404_v2, 6 }
 0x1ea   :  { %2563 = vmatprep.subr.mxu1 %v2436_v60 }
 0x1eb   :  { %4530 = vmatmul.mubr.msk.f32.gmra.mxu1 %vm1015_vm4, %v1822_v32  ;;  %4590 = vmatmul.mubr.msk.f32.gmra.mxu0 %vm1015_vm4, %v2790_v33 }
 0x1ec   :  { %1999 = vmatprep.mubr.f32.mxu1 %v8785_v1  ;;  %2967 = vmatprep.mubr.f32.mxu0 %v8785_v1 }
 0x1ed   :  { %2564 = vmatpush1.msra.mxu1 %v2435_v13  ;;  %v2802_v13 = vsel %vm133_vm0, %v2799_v18, %v2801_v58 }
 0x1ef   :  { %v6864_v46 = vpop.f32.mrf.mxu1  ;;  %v6866_v50 = vpop.f32.mrf.mxu0  ;;  %4531 = vmatmul.mubr.msk.f32.gmra.mxu1 %vm1015_vm4, %v1824_v15  ;;  %4591 = vmatmul.mubr.msk.f32.gmra.mxu0 %vm1015_vm4, %v2792_v47  ;;  %v1835_v15 = vrot.slane %v6420_v30, 3  ;;  %v2803_v47 = vrot.slane %v6420_v30, 6 }
 0x1f0   :  { %2005 = vmatprep.mubr.f32.mxu1 %v8785_v1  ;;  %2973 = vmatprep.mubr.f32.mxu0 %v8785_v1 }
 0x1f1   :  { %v6872_v21 = vpop.f32.mrf.mxu1  ;;  %v6874_v40 = vpop.f32.mrf.mxu0  ;;  %v1836_v26 = vsel %vm1805_vm7, %v1833_v19, %v1835_v15  ;;  %v2804_v53 = vsel %vm133_vm0, %v2801_v58, %v2803_v47 }
 0x1f3   :  { %v6880_v54 = vpop.f32.mrf.mxu1  ;;  %v6882_v56 = vpop.f32.mrf.mxu0  ;;  %4532 = vmatmul.mubr.msk.f32.gmra.mxu1 %vm1015_vm4, %v1826_v42  ;;  %4592 = vmatmul.mubr.msk.f32.gmra.mxu0 %vm1015_vm4, %v2794_v24 }
 0x1f4   :  { %2011 = vmatprep.mubr.f32.mxu1 %v8785_v1  ;;  %2979 = vmatprep.mubr.f32.mxu0 %v8785_v1 }
 0x1f5   :  { %v6888_v8 = vpop.f32.mrf.mxu1  ;;  %v6890_v12 = vpop.f32.mrf.mxu0 }
 0x1f7   :  { %v6896_v45 = vpop.f32.mrf.mxu1  ;;  %v6898_v4 = vpop.f32.mrf.mxu0  ;;  %4533 = vmatmul.mubr.msk.f32.gmra.mxu1 %vm1015_vm4, %v1828_v14  ;;  %4593 = vmatmul.mubr.msk.f32.gmra.mxu0 %vm1015_vm4, %v2796_v0  ;;  %v1837_v14 = vrot.slane %v6436_v62, 3  ;;  %v2805_v0 = vrot.slane %v6436_v62, 6 }
 0x1f8   :  { %2017 = vmatprep.mubr.f32.mxu1 %v8785_v1  ;;  %2985 = vmatprep.mubr.f32.mxu0 %v8785_v1 }
 0x1f9   :  { %v6904_v41 = vpop.f32.mrf.mxu1  ;;  %v6906_v36 = vpop.f32.mrf.mxu0  ;;  %v1838_v48 = vsel %vm1805_vm7, %v1835_v15, %v1837_v14  ;;  %v2806_v18 = vsel %vm133_vm0, %v2803_v47, %v2805_v0 }
 0x1fb   :  { %v6912_v38 = vpop.f32.mrf.mxu1  ;;  %v6914_v5 = vpop.f32.mrf.mxu0  ;;  %4534 = vmatmul.mubr.msk.f32.gmra.mxu1 %vm1015_vm4, %v1830_v27  ;;  %4594 = vmatmul.mubr.msk.f32.gmra.mxu0 %vm1015_vm4, %v2798_v28 }
 0x1fc   :  { %2023 = vmatprep.mubr.f32.mxu1 %v8785_v1  ;;  %2991 = vmatprep.mubr.f32.mxu0 %v8785_v1 }
 0x1fd   :  { %v6920_v10 = vpop.f32.mrf.mxu1  ;;  %v6922_v3 = vpop.f32.mrf.mxu0 }
 0x1ff   :  { %v6928_v60 = vpop.f32.mrf.mxu1  ;;  %v6930_v32 = vpop.f32.mrf.mxu0  ;;  %4535 = vmatmul.mubr.msk.f32.gmra.mxu1 %vm1015_vm4, %v1832_v16  ;;  %4595 = vmatmul.mubr.msk.f32.gmra.mxu0 %vm1015_vm4, %v2800_v17  ;;  %v1839_v16 = vrot.slane %v6452_v25, 3  ;;  %v2807_v17 = vrot.slane %v6452_v25, 6 }
 0x200   :  { %2029 = vmatprep.mubr.f32.mxu1 %v8785_v1  ;;  %2997 = vmatprep.mubr.f32.mxu0 %v8785_v1 }
 0x201   :  { %v6936_v33 = vpop.f32.mrf.mxu1  ;;  %v6938_v34 = vpop.f32.mrf.mxu0  ;;  %v1840_v15 = vsel %vm1805_vm7, %v1837_v14, %v1839_v16  ;;  %v2808_v47 = vsel %vm133_vm0, %v2805_v0, %v2807_v17 }
 0x202   :  { %8797 = vst [vmem:[#allocation5_spill] sm:$0xff] %v6936_v33  ;;  %8798 = vst [vmem:[#allocation6_spill] sm:$0xff] %v6938_v34 }
 0x203   :  { %v6944_v23 = vpop.f32.mrf.mxu1  ;;  %v6946_v29 = vpop.f32.mrf.mxu0  ;;  %4536 = vmatmul.mubr.msk.f32.gmra.mxu1 %vm1015_vm4, %v1834_v7  ;;  %4596 = vmatmul.mubr.msk.f32.gmra.mxu0 %vm1015_vm4, %v2802_v13 }
 0x204   :  { %2035 = vmatprep.mubr.f32.mxu1 %v8785_v1  ;;  %3003 = vmatprep.mubr.f32.mxu0 %v8785_v1 }
 0x205   :  { %v6952_v42 = vpop.f32.mrf.mxu1  ;;  %v6954_v24 = vpop.f32.mrf.mxu0 }
 0x206   :  { %8799 = vst [vmem:[#allocation7_spill] sm:$0xff] %v6952_v42  ;;  %8800 = vst [vmem:[#allocation8_spill] sm:$0xff] %v6954_v24  ;;  %v2813_v42 = vrot.slane %v6497_v31, 6 }
 0x207   :  { %v6960_v52 = vpop.f32.mrf.mxu1  ;;  %v6962_v37 = vpop.f32.mrf.mxu0  ;;  %4537 = vmatmul.mubr.msk.f32.gmra.mxu1 %vm1015_vm4, %v1836_v26  ;;  %4597 = vmatmul.mubr.msk.f32.gmra.mxu0 %vm1015_vm4, %v2804_v53  ;;  %v1841_v26 = vrot.slane %v6468_v55, 3  ;;  %v2809_v53 = vrot.slane %v6468_v55, 6 }
 0x208   :  { %2041 = vmatprep.mubr.f32.mxu1 %v8785_v1  ;;  %3009 = vmatprep.mubr.f32.mxu0 %v8785_v1 }
 0x209   :  { %v6968_v27 = vpop.f32.mrf.mxu1  ;;  %v6970_v28 = vpop.f32.mrf.mxu0  ;;  %v1842_v0 = vsel %vm1805_vm7, %v1839_v16, %v1841_v26 }
 0x20a   :  { %8801 = vst [vmem:[#allocation9_spill] sm:$0xff] %v6968_v27  ;;  %8802 = vst [vmem:[#allocation10_spill] sm:$0xff] %v6970_v28  ;;  %v2810_v28 = vsel %vm133_vm0, %v2807_v17, %v2809_v53 }
 0x20b   :  { %v6976_v19 = vpop.f32.mrf.mxu1  ;;  %v6978_v58 = vpop.f32.mrf.mxu0  ;;  %4538 = vmatmul.mubr.msk.f32.gmra.mxu1 %vm1015_vm4, %v1838_v48  ;;  %4598 = vmatmul.mubr.msk.f32.gmra.mxu0 %vm1015_vm4, %v2806_v18 }
 0x20c   :  { %2047 = vmatprep.mubr.f32.mxu1 %v8785_v1  ;;  %3015 = vmatprep.mubr.f32.mxu0 %v8785_v1 }
 0x20d   :  { %v6984_v7 = vpop.f32.mrf.mxu1  ;;  %v6986_v13 = vpop.f32.mrf.mxu0 }
 0x20e   :  { %8803 = vst [vmem:[#allocation11_spill] sm:$0xff] %v6984_v7  ;;  %8804 = vst [vmem:[#allocation12_spill] sm:$0xff] %v6986_v13  ;;  %v1843_v13 = vrot.slane %v6484_v63, 3  ;;  %v2811_v7 = vrot.slane %v6484_v63, 6 }
 0x20f   :  { %v6992_v24 = vpop.f32.mrf.mxu1  ;;  %v6994_v48 = vpop.f32.mrf.mxu0  ;;  %4539 = vmatmul.mubr.msk.f32.gmra.mxu1 %vm1015_vm4, %v1840_v15  ;;  %4599 = vmatmul.mubr.msk.f32.gmra.mxu0 %vm1015_vm4, %v2808_v47 }
 0x210   :  { %2053 = vmatprep.mubr.f32.mxu1 %v8785_v1  ;;  %3021 = vmatprep.mubr.f32.mxu0 %v8785_v1  ;;  %v1844_v17 = vsel %vm1805_vm7, %v1841_v26, %v1843_v13 }
 0x211   :  { %v7000_v18 = vpop.f32.mrf.mxu1  ;;  %v7002_v14 = vpop.f32.mrf.mxu0 }
 0x212   :  { %8805 = vst [vmem:[#allocation13_spill] sm:$0xff] %v7000_v18  ;;  %8806 = vst [vmem:[#allocation14_spill] sm:$0xff] %v7002_v14  ;;  %v2812_v14 = vsel %vm133_vm0, %v2809_v53, %v2811_v7  ;;  %v1845_v18 = vrot.slane %v6497_v31, 3 }
 0x213   :  { %v7008_v27 = vpop.f32.mrf.mxu1  ;;  %v7010_v15 = vpop.f32.mrf.mxu0  ;;  %4540 = vmatmul.mubr.msk.f32.gmra.mxu1 %vm1015_vm4, %v1842_v0  ;;  %4600 = vmatmul.mubr.msk.f32.gmra.mxu0 %vm1015_vm4, %v2810_v28 }
 0x214   :  { %2059 = vmatprep.mubr.f32.mxu1 %v8785_v1  ;;  %3027 = vmatprep.mubr.f32.mxu0 %v8785_v1  ;;  %v1846_v53 = vsel %vm1805_vm7, %v1843_v13, %v1845_v18 }
 0x215   :  { %v7016_v47 = vpop.f32.mrf.mxu1  ;;  %v7018_v16 = vpop.f32.mrf.mxu0 }
 0x216   :  { %8807 = vst [vmem:[#allocation15_spill] sm:$0xff] %v7016_v47  ;;  %8808 = vst [vmem:[#allocation16_spill] sm:$0xff] %v7018_v16  ;;  %v2814_v16 = vsel %vm133_vm0, %v2811_v7, %v2813_v42  ;;  %v2453_v47 = vrot.slane %v6104_v59, 5  ;;  %v2455_v59 = vrot.slane %v6116_v43, 5 }
 0x217   :  { %v7024_v34 = vpop.f32.mrf.mxu1  ;;  %v7026_v0 = vpop.f32.mrf.mxu0  ;;  %4541 = vmatmul.mubr.msk.f32.gmra.mxu1 %vm1015_vm4, %v1844_v17  ;;  %4601 = vmatmul.mubr.msk.f32.gmra.mxu0 %vm1015_vm4, %v2812_v14  ;;  %v2452_v14 = vrot.slane %v6099_v61, 5 }
 0x218   :  { %8809 = vst [vmem:[#allocation17_spill] sm:$0xff] %v7026_v0  ;;  %2065 = vmatprep.mubr.f32.mxu1 %v8785_v1  ;;  %3033 = vmatprep.mubr.f32.mxu0 %v8785_v1  ;;  %v2456_v61 = vsel %vm2451_vm8, %v2453_v47, %v2455_v59 }
 0x219   :  { %v7032_v28 = vpop.f32.mrf.mxu1  ;;  %v7034_v26 = vpop.f32.mrf.mxu0  ;;  %v2454_v42 = vsel %vm2451_vm8, %v2452_v14, %v2453_v47 }
 0x21a   :  { %8810 = vst [vmem:[#allocation18_spill] sm:$0xff] %v7032_v28  ;;  %8811 = vst [vmem:[#allocation19_spill] sm:$0xff] %v7034_v26  ;;  %v2457_v26 = vrot.slane %v6144_v39, 5 }
 0x21b   :  { %v7039_v33 = vpop.f32.mrf.mxu1  ;;  %v7041_v0 = vpop.f32.mrf.mxu0  ;;  %4542 = vmatmul.mubr.msk.f32.gmra.mxu1 %vm1015_vm4, %v1846_v53  ;;  %4602 = vmatmul.mubr.msk.f32.gmra.mxu0 %vm1015_vm4, %v2814_v16 }
 0x21c   :  { %2597 = vmatprep.mubr.f32.mxu1 %v8785_v1  ;;  %v2458_v28 = vsel %vm2451_vm8, %v2455_v59, %v2457_v26 }
 0x21d   :  { %v7047_v17 = vpop.f32.mrf.mxu1  ;;  %v7049_v13 = vpop.f32.mrf.mxu0 }
 0x21e   :  { %8812 = vst [vmem:[#allocation20_spill] sm:$0xff] %v7047_v17  ;;  %8813 = vst [vmem:[#allocation21_spill] sm:$0xff] %v7049_v13 }
 0x21f   :  { %v7053_v7 = vpop.f32.mrf.mxu1  ;;  %v7055_v18 = vpop.f32.mrf.mxu0  ;;  %4563 = vmatmul.mubr.msk.f32.vlgmr.msra.gmra.mxu1 %vm1015_vm4, %v2454_v42 }
 0x220   :  { %2603 = vmatprep.mubr.f32.mxu1 %v8785_v1 }
 0x221   :  { %v7059_v16 = vpop.f32.mrf.mxu1  ;;  %v7061_v53 = vpop.f32.mrf.mxu0 }
 0x222   :  { %8814 = vst [vmem:[#allocation22_spill] sm:$0xff] %v7059_v16  ;;  %8815 = vst [vmem:[#allocation23_spill] sm:$0xff] %v7061_v53  ;;  %v2459_v53 = vrot.slane %v6172_v57, 5 }
 0x223   :  { %v7065_v13 = vpop.f32.mrf.mxu1  ;;  %v7067_v14 = vpop.f32.mrf.mxu0  ;;  %4564 = vmatmul.mubr.msk.f32.gmra.mxu1 %vm1015_vm4, %v2456_v61 }
 0x224   :  { %8816 = vst [vmem:[#allocation24_spill] sm:$0xff] %v7067_v14  ;;  %2609 = vmatprep.mubr.f32.mxu1 %v8785_v1  ;;  %v2460_v16 = vsel %vm2451_vm8, %v2457_v26, %v2459_v53 }
 0x225   :  { %v7071_v43 = vpop.f32.mrf.mxu1  ;;  %v7073_v42 = vpop.f32.mrf.mxu0 }
 0x226   :  { %8817 = vst [vmem:[#allocation25_spill] sm:$0xff] %v7071_v43  ;;  %8818 = vst [vmem:[#allocation26_spill] sm:$0xff] %v7073_v42  ;;  %v2461_v42 = vrot.slane %v6200_v44, 5 }
 0x227   :  { %v7077_v17 = vpop.f32.mrf.mxu1  ;;  %v7079_v47 = vpop.f32.mrf.mxu0  ;;  %4565 = vmatmul.mubr.msk.f32.gmra.mxu1 %vm1015_vm4, %v2458_v28 }
 0x228   :  { %8819 = vst [vmem:[#allocation27_spill] sm:$0xff] %v7079_v47  ;;  %2615 = vmatprep.mubr.f32.mxu1 %v8785_v1 }
 0x229   :  { %v7083_v39 = vpop.f32.mrf.mxu1  ;;  %v7085_v61 = vpop.f32.mrf.mxu0 }
 0x22a   :  { %8820 = vst [vmem:[#allocation28_spill] sm:$0xff] %v7083_v39  ;;  %8821 = vst [vmem:[#allocation29_spill] sm:$0xff] %v7085_v61  ;;  %v2462_v39 = vsel %vm2451_vm8, %v2459_v53, %v2461_v42  ;;  %v2463_v61 = vrot.slane %v6228_v49, 5 }
 0x22b   :  { %v7089_v43 = vpop.f32.mrf.mxu1  ;;  %v7091_v59 = vpop.f32.mrf.mxu0  ;;  %4566 = vmatmul.mubr.msk.f32.gmra.mxu1 %vm1015_vm4, %v2460_v16 }
 0x22c   :  { %8822 = vst [vmem:[#allocation30_spill] sm:$0xff] %v7089_v43  ;;  %8823 = vst [vmem:[#allocation31_spill] sm:$0xff] %v7091_v59  ;;  %2621 = vmatprep.mubr.f32.mxu1 %v8785_v1 }
 0x22d   :  { %v7095_v57 = vpop.f32.mrf.mxu1  ;;  %v7097_v28 = vpop.f32.mrf.mxu0 }
 0x22e   :  { %8824 = vst [vmem:[#allocation32_spill] sm:$0xff] %v7095_v57  ;;  %8825 = vst [vmem:[#allocation33_spill] sm:$0xff] %v7097_v28  ;;  %v2464_v57 = vsel %vm2451_vm8, %v2461_v42, %v2463_v61  ;;  %v2465_v28 = vrot.slane %v6256_v20, 5 }
 0x22f   :  { %v7101_v47 = vpop.f32.mrf.mxu1  ;;  %v7103_v26 = vpop.f32.mrf.mxu0  ;;  %4567 = vmatmul.mubr.msk.f32.gmra.mxu1 %vm1015_vm4, %v2462_v39 }
 0x230   :  { %8826 = vst [vmem:[#allocation34_spill] sm:$0xff] %v7101_v47  ;;  %8827 = vst [vmem:[#allocation35_spill] sm:$0xff] %v7103_v26  ;;  %2627 = vmatprep.mubr.f32.mxu1 %v8785_v1 }
 0x231   :  { %v7107_v44 = vpop.f32.mrf.mxu1  ;;  %v7109_v16 = vpop.f32.mrf.mxu0 }
 0x232   :  { %8828 = vst [vmem:[#allocation36_spill] sm:$0xff] %v7107_v44  ;;  %8829 = vst [vmem:[#allocation37_spill] sm:$0xff] %v7109_v16  ;;  %v2466_v44 = vsel %vm2451_vm8, %v2463_v61, %v2465_v28  ;;  %v2467_v16 = vrot.slane %v6284_v35, 5 }
 0x233   :  { %v7113_v59 = vpop.f32.mrf.mxu1  ;;  %v7115_v53 = vpop.f32.mrf.mxu0  ;;  %4568 = vmatmul.mubr.msk.f32.gmra.mxu1 %vm1015_vm4, %v2464_v57 }
 0x234   :  { %8830 = vst [vmem:[#allocation38_spill] sm:$0xff] %v7113_v59  ;;  %8831 = vst [vmem:[#allocation39_spill] sm:$0xff] %v7115_v53  ;;  %2633 = vmatprep.mubr.f32.mxu1 %v8785_v1 }
 0x235   :  { %v7119_v49 = vpop.f32.mrf.mxu1  ;;  %v7121_v39 = vpop.f32.mrf.mxu0 }
 0x236   :  { %8832 = vst [vmem:[#allocation40_spill] sm:$0xff] %v7119_v49  ;;  %8833 = vst [vmem:[#allocation41_spill] sm:$0xff] %v7121_v39  ;;  %v2468_v49 = vsel %vm2451_vm8, %v2465_v28, %v2467_v16  ;;  %v2469_v39 = vrot.slane %v6312_v9, 5 }
 0x237   :  { %v7125_v26 = vpop.f32.mrf.mxu1  ;;  %v7127_v42 = vpop.f32.mrf.mxu0  ;;  %4569 = vmatmul.mubr.msk.f32.gmra.mxu1 %vm1015_vm4, %v2466_v44 }
 0x238   :  { %8834 = vst [vmem:[#allocation42_spill] sm:$0xff] %v7125_v26  ;;  %8835 = vst [vmem:[#allocation43_spill] sm:$0xff] %v7127_v42  ;;  %2639 = vmatprep.mubr.f32.mxu1 %v8785_v1 }
 0x239   :  { %v7131_v20 = vpop.f32.mrf.mxu1  ;;  %v7133_v57 = vpop.f32.mrf.mxu0 }
 0x23a   :  { %8836 = vst [vmem:[#allocation44_spill] sm:$0xff] %v7131_v20  ;;  %8837 = vst [vmem:[#allocation45_spill] sm:$0xff] %v7133_v57  ;;  %v2470_v20 = vsel %vm2451_vm8, %v2467_v16, %v2469_v39  ;;  %v2471_v57 = vrot.slane %v6340_v11, 5 }
 0x23b   :  { %v7137_v53 = vpop.f32.mrf.mxu1  ;;  %v7139_v61 = vpop.f32.mrf.mxu0  ;;  %4570 = vmatmul.mubr.msk.f32.gmra.mxu1 %vm1015_vm4, %v2468_v49 }
 0x23c   :  { %8838 = vst [vmem:[#allocation46_spill] sm:$0xff] %v7137_v53  ;;  %8839 = vst [vmem:[#allocation47_spill] sm:$0xff] %v7139_v61  ;;  %2645 = vmatprep.mubr.f32.mxu1 %v8785_v1 }
 0x23d   :  { %v7143_v35 = vpop.f32.mrf.mxu1  ;;  %v7145_v44 = vpop.f32.mrf.mxu0 }
 0x23e   :  { %8840 = vst [vmem:[#allocation48_spill] sm:$0xff] %v7143_v35  ;;  %8841 = vst [vmem:[#allocation49_spill] sm:$0xff] %v7145_v44  ;;  %v2472_v35 = vsel %vm2451_vm8, %v2469_v39, %v2471_v57  ;;  %v2473_v44 = vrot.slane %v6356_v51, 5 }
 0x23f   :  { %v7149_v42 = vpop.f32.mrf.mxu1  ;;  %v7151_v28 = vpop.f32.mrf.mxu0  ;;  %4571 = vmatmul.mubr.msk.f32.gmra.mxu1 %vm1015_vm4, %v2470_v20 }
 0x240   :  { %8842 = vst [vmem:[#allocation50_spill] sm:$0xff] %v7151_v28  ;;  %2651 = vmatprep.mubr.f32.mxu1 %v8785_v1  ;;  %v2474_v28 = vsel %vm2451_vm8, %v2471_v57, %v2473_v44 }
 0x241   :  { %v7155_v9 = vpop.f32.mrf.mxu1  ;;  %v7157_v49 = vpop.f32.mrf.mxu0 }
 0x242   :  { %8843 = vst [vmem:[#allocation51_spill] sm:$0xff] %v7157_v49  ;;  %v2475_v49 = vrot.slane %v6372_v6, 5 }
 0x243   :  { %v7161_v61 = vpop.f32.mrf.mxu1  ;;  %v7163_v16 = vpop.f32.mrf.mxu0  ;;  %4572 = vmatmul.mubr.msk.f32.gmra.mxu1 %vm1015_vm4, %v2472_v35 }
 0x244   :  { %8844 = vst [vmem:[#allocation52_spill] sm:$0xff] %v7163_v16  ;;  %2657 = vmatprep.mubr.f32.mxu1 %v8785_v1  ;;  %v2476_v16 = vsel %vm2451_vm8, %v2473_v44, %v2475_v49 }
 0x245   :  { %v7167_v11 = vpop.f32.mrf.mxu1  ;;  %v7169_v20 = vpop.f32.mrf.mxu0 }
 0x246   :  { %8845 = vst [vmem:[#allocation53_spill] sm:$0xff] %v7169_v20  ;;  %v2477_v20 = vrot.slane %v6388_v22, 5 }
 0x247   :  { %v7173_v53 = vpop.f32.mrf.mxu1  ;;  %v7175_v39 = vpop.f32.mrf.mxu0  ;;  %4573 = vmatmul.mubr.msk.f32.gmra.mxu1 %vm1015_vm4, %v2474_v28 }
 0x248   :  { %8846 = vst [vmem:[#allocation54_spill] sm:$0xff] %v7175_v39  ;;  %2663 = vmatprep.mubr.f32.mxu1 %v8785_v1  ;;  %v2478_v39 = vsel %vm2451_vm8, %v2475_v49, %v2477_v20 }
 0x249   :  { %v7179_v51 = vpop.f32.mrf.mxu1  ;;  %v7181_v35 = vpop.f32.mrf.mxu0 }
 0x24a   :  { %8847 = vst [vmem:[#allocation55_spill] sm:$0xff] %v7181_v35  ;;  %v2479_v35 = vrot.slane %v6404_v2, 5 }
 0x24b   :  { %v7185_v26 = vpop.f32.mrf.mxu1  ;;  %v7187_v57 = vpop.f32.mrf.mxu0  ;;  %4574 = vmatmul.mubr.msk.f32.gmra.mxu1 %vm1015_vm4, %v2476_v16 }
 0x24c   :  { %8848 = vst [vmem:[#allocation56_spill] sm:$0xff] %v7187_v57  ;;  %2669 = vmatprep.mubr.f32.mxu1 %v8785_v1  ;;  %v2480_v57 = vsel %vm2451_vm8, %v2477_v20, %v2479_v35 }
 0x24d   :  { %v7191_v6 = vpop.f32.mrf.mxu1  ;;  %v7193_v28 = vpop.f32.mrf.mxu0 }
 0x24e   :  { %8849 = vst [vmem:[#allocation57_spill] sm:$0xff] %v7193_v28  ;;  %v2481_v28 = vrot.slane %v6420_v30, 5 }
 0x24f   :  { %v7197_v59 = vpop.f32.mrf.mxu1  ;;  %v7199_v44 = vpop.f32.mrf.mxu0  ;;  %4575 = vmatmul.mubr.msk.f32.gmra.mxu1 %vm1015_vm4, %v2478_v39 }
 0x250   :  { %8850 = vst [vmem:[#allocation58_spill] sm:$0xff] %v7199_v44  ;;  %2675 = vmatprep.mubr.f32.mxu1 %v8785_v1  ;;  %v2482_v44 = vsel %vm2451_vm8, %v2479_v35, %v2481_v28 }
 0x251   :  { %v7203_v22 = vpop.f32.mrf.mxu1  ;;  %v7205_v16 = vpop.f32.mrf.mxu0 }
 0x252   :  { %8851 = vst [vmem:[#allocation59_spill] sm:$0xff] %v7203_v22  ;;  %8852 = vst [vmem:[#allocation60_spill] sm:$0xff] %v7205_v16  ;;  %v2483_v16 = vrot.slane %v6436_v62, 5 }
 0x253   :  { %v7209_v47 = vpop.f32.mrf.mxu1  ;;  %v7211_v49 = vpop.f32.mrf.mxu0  ;;  %4576 = vmatmul.mubr.msk.f32.gmra.mxu1 %vm1015_vm4, %v2480_v57 }
 0x254   :  { %8853 = vst [vmem:[#allocation61_spill] sm:$0xff] %v7211_v49  ;;  %2681 = vmatprep.mubr.f32.mxu1 %v8785_v1  ;;  %v2484_v49 = vsel %vm2451_vm8, %v2481_v28, %v2483_v16 }
 0x255   :  { %v7215_v2 = vpop.f32.mrf.mxu1  ;;  %v7217_v39 = vpop.f32.mrf.mxu0 }
 0x256   :  { %8854 = vst [vmem:[#allocation62_spill] sm:$0xff] %v7215_v2  ;;  %8855 = vst [vmem:[#allocation63_spill] sm:$0xff] %v7217_v39  ;;  %v2485_v39 = vrot.slane %v6452_v25, 5 }
 0x257   :  { %v7221_v22 = vpop.f32.mrf.mxu1  ;;  %v7223_v20 = vpop.f32.mrf.mxu0  ;;  %4577 = vmatmul.mubr.msk.f32.gmra.mxu1 %vm1015_vm4, %v2482_v44 }
 0x258   :  { %8856 = vst [vmem:[#allocation64_spill] sm:$0xff] %v7223_v20  ;;  %2687 = vmatprep.mubr.f32.mxu1 %v8785_v1  ;;  %v2486_v20 = vsel %vm2451_vm8, %v2483_v16, %v2485_v39 }
 0x259   :  { %v7227_v30 = vpop.f32.mrf.mxu1  ;;  %v7229_v57 = vpop.f32.mrf.mxu0 }
 0x25a   :  { %8857 = vst [vmem:[#allocation65_spill] sm:$0xff] %v7227_v30  ;;  %8858 = vst [vmem:[#allocation66_spill] sm:$0xff] %v7229_v57  ;;  %v2487_v57 = vrot.slane %v6468_v55, 5 }
 0x25b   :  { %v7233_v2 = vpop.f32.mrf.mxu1  ;;  %v7235_v35 = vpop.f32.mrf.mxu0  ;;  %4578 = vmatmul.mubr.msk.f32.gmra.mxu1 %vm1015_vm4, %v2484_v49 }
 0x25c   :  { %8859 = vst [vmem:[#allocation67_spill] sm:$0xff] %v7235_v35  ;;  %2693 = vmatprep.mubr.f32.mxu1 %v8785_v1  ;;  %v2488_v35 = vsel %vm2451_vm8, %v2485_v39, %v2487_v57 }
 0x25d   :  { %v7239_v62 = vpop.f32.mrf.mxu1  ;;  %v7241_v44 = vpop.f32.mrf.mxu0 }
 0x25e   :  { %8860 = vst [vmem:[#allocation68_spill] sm:$0xff] %v7239_v62  ;;  %8861 = vst [vmem:[#allocation69_spill] sm:$0xff] %v7241_v44  ;;  %v2489_v44 = vrot.slane %v6484_v63, 5 }
 0x25f   :  { %v7245_v30 = vpop.f32.mrf.mxu1  ;;  %v7247_v28 = vpop.f32.mrf.mxu0  ;;  %4579 = vmatmul.mubr.msk.f32.gmra.mxu1 %vm1015_vm4, %v2486_v20 }
 0x260   :  { %8862 = vst [vmem:[#allocation70_spill] sm:$0xff] %v7247_v28  ;;  %2699 = vmatprep.mubr.f32.mxu1 %v8785_v1  ;;  %v2490_v28 = vsel %vm2451_vm8, %v2487_v57, %v2489_v44 }
 0x261   :  { %v7251_v25 = vpop.f32.mrf.mxu1  ;;  %v7253_v49 = vpop.f32.mrf.mxu0 }
 0x262   :  { %8863 = vst [vmem:[#allocation71_spill] sm:$0xff] %v7251_v25  ;;  %8864 = vst [vmem:[#allocation72_spill] sm:$0xff] %v7253_v49  ;;  %v2491_v49 = vrot.slane %v6497_v31, 5 }
 0x263   :  { %v7257_v62 = vpop.f32.mrf.mxu1  ;;  %v7259_v16 = vpop.f32.mrf.mxu0  ;;  %4580 = vmatmul.mubr.msk.f32.gmra.mxu1 %vm1015_vm4, %v2488_v35 }
 0x264   :  { %8865 = vst [vmem:[#allocation73_spill] sm:$0xff] %v7259_v16  ;;  %2705 = vmatprep.mubr.f32.mxu1 %v8785_v1  ;;  %v2492_v16 = vsel %vm2451_vm8, %v2489_v44, %v2491_v49 }
 0x265   :  { %v7263_v55 = vpop.f32.mrf.mxu1  ;;  %v7265_v20 = vpop.f32.mrf.mxu0 }
 0x266   :  { %8866 = vst [vmem:[#allocation74_spill] sm:$0xff] %v7263_v55  ;;  %8867 = vst [vmem:[#allocation75_spill] sm:$0xff] %v7265_v20 }
 0x267   :  { %v7269_v25 = vpop.f32.mrf.mxu1  ;;  %v7271_v39 = vpop.f32.mrf.mxu0  ;;  %4581 = vmatmul.mubr.msk.f32.gmra.mxu1 %vm1015_vm4, %v2490_v28 }
 0x268   :  { %8868 = vst [vmem:[#allocation76_spill] sm:$0xff] %v7271_v39  ;;  %2711 = vmatprep.mubr.f32.mxu1 %v8785_v1 }
 0x269   :  { %v7275_v63 = vpop.f32.mrf.mxu1  ;;  %v7277_v35 = vpop.f32.mrf.mxu0 }
 0x26a   :  { %8869 = vst [vmem:[#allocation77_spill] sm:$0xff] %v7275_v63  ;;  %8870 = vst [vmem:[#allocation78_spill] sm:$0xff] %v7277_v35 }
 0x26b   :  { %v7280_v55 = vpop.f32.mrf.mxu1  ;;  %v7282_v20 = vpop.f32.mrf.mxu0  ;;  %4582 = vmatmul.mubr.msk.f32.gmra.mxu1 %vm1015_vm4, %v2492_v16 }
 0x26c   :  { %8871 = vst [vmem:[#allocation79_spill] sm:$0xff] %v7282_v20 }
 0x26d   :  { %v7285_v31 = vpop.f32.mrf.mxu1  ;;  %v7287_v57 = vpop.f32.mrf.mxu0 }
 0x26e   :  { %8872 = vst [vmem:[#allocation80_spill] sm:$0xff] %v7285_v31  ;;  %8873 = vst [vmem:[#allocation81_spill] sm:$0xff] %v7287_v57 }
 0x26f   :  { %v7289_v39 = vpop.f32.mrf.mxu1  ;;  %v7291_v28 = vpop.f32.mrf.mxu0 }
 0x270   :  { %8874 = vst [vmem:[#allocation82_spill] sm:$0xff] %v7291_v28 }
 0x271   :  { %v7293_v1 = vpop.f32.mrf.mxu1  ;;  %v7295_v63 = vpop.f32.mrf.mxu0 }
 0x272   :  { %8875 = vst [vmem:[#allocation83_spill] sm:$0xff] %v7293_v1  ;;  %8876 = vst [vmem:[#allocation84_spill] sm:$0xff] %v7295_v63 }
 0x273   :  { %v7297_v35 = vpop.f32.mrf.mxu1  ;;  %v7299_v44 = vpop.f32.mrf.mxu0 }
 0x274   :  { %8877 = vst [vmem:[#allocation85_spill] sm:$0xff] %v7299_v44 }
 0x275   :  { %v7301_v49 = vpop.f32.mrf.mxu1  ;;  %v7303_v20 = vpop.f32.mrf.mxu0 }
 0x276   :  { %8878 = vst [vmem:[#allocation86_spill] sm:$0xff] %v7301_v49  ;;  %8879 = vst [vmem:[#allocation87_spill] sm:$0xff] %v7303_v20 }
 0x277   :  { %v7305_v16 = vpop.f32.mrf.mxu1  ;;  %v7307_v31 = vpop.f32.mrf.mxu0 }
 0x278   :  { %8880 = vst [vmem:[#allocation88_spill] sm:$0xff] %v7305_v16  ;;  %8881 = vst [vmem:[#allocation89_spill] sm:$0xff] %v7307_v31 }
 0x279   :  { %v7309_v57 = vpop.f32.mrf.mxu1  ;;  %v7311_v43 = vpop.f32.mrf.mxu0 }
 0x27a   :  { %8882 = vst [vmem:[#allocation90_spill] sm:$0xff] %v7309_v57  ;;  %8883 = vst [vmem:[#allocation91_spill] sm:$0xff] %v7311_v43 }
 0x27b   :  { %v7313_v28 = vpop.f32.mrf.mxu1  ;;  %v7315_v1 = vpop.f32.mrf.mxu0 }
 0x27c   :  { %8884 = vst [vmem:[#allocation92_spill] sm:$0xff] %v7313_v28  ;;  %8885 = vst [vmem:[#allocation93_spill] sm:$0xff] %v7315_v1  ;;  %v1348_v1 = vadd.f32 %v7149_v42, %v6864_v46  ;;  %v1356_v46 = vadd.f32 %v7167_v11, %v6888_v8 }
 0x27d   :  { %v7317_v63 = vpop.f32.mrf.mxu1  ;;  %v7319_v14 = vpop.f32.mrf.mxu0 }
 0x27e   :  { %8886 = vst [vmem:[#allocation94_spill] sm:$0xff] %v7317_v63  ;;  %8887 = vst [vmem:[#allocation95_spill] sm:$0xff] %v7319_v14  ;;  %v1752_v8 = vadd.f32 %v6890_v12, %v1356_v46  ;;  %v1372_v12 = vadd.f32 %v7197_v59, %v6928_v60 }
 0x27f   :  { %v7321_v44 = vpop.f32.mrf.mxu1  ;;  %v7325_v20 = vpop.f32.mrf.mxu0 }
 0x280   :  { %8889 = vst [vmem:[#allocation97_spill] sm:$0xff] %v7325_v20  ;;  %v1350_v20 = vadd.f32 %v7155_v9, %v6872_v21  ;;  %v1360_v21 = vadd.f32 %v7173_v53, %v6896_v45  ;;  %v1368_v53 = vadd.f32 %v7191_v6, %v6920_v10  ;;  %v1378_v6 = vadd.f32 %v7209_v47, %v6944_v23 }
 0x281   :  { %v7323_v49 = vpop.f32.mrf.mxu1  ;;  %v7331_v57 = vpop.f32.mrf.mxu0  ;;  %v1757_v46 = vadd.f32 %v6930_v32, %v1372_v12  ;;  %v1390_v32 = vadd.f32 %v7233_v2, %v6976_v19 }
 0x282   :  { %8888 = vst [vmem:[#allocation96_spill] sm:$0xff] %v7323_v49  ;;  %8891 = vst [vmem:[#allocation99_spill] sm:$0xff] %v7331_v57  ;;  %v1749_v57 = vadd.f32 %v6866_v50, %v1348_v1  ;;  %v1362_v50 = vadd.f32 %v7179_v51, %v6904_v41  ;;  %v1753_v45 = vadd.f32 %v6898_v4, %v1360_v21 }
 0x283   :  { %v7327_v16 = vpop.f32.mrf.mxu1  ;;  %v7339_v14 = vpop.f32.mrf.mxu0 }
 0x284   :  { %8894 = vst [vmem:[#allocation102_spill] sm:$0xff] %v7339_v14  ;;  %v1750_v14 = vadd.f32 %v6874_v40, %v1350_v20  ;;  %v1366_v40 = vadd.f32 %v7185_v26, %v6912_v38  ;;  %v1754_v41 = vadd.f32 %v6906_v36, %v1362_v50 }
 0x285   :  { %v7329_v31 = vpop.f32.mrf.mxu1 }
 0x286   :  { %8890 = vst [vmem:[#allocation98_spill] sm:$0xff] %v7329_v31  ;;  %v1354_v31 = vadd.f32 %v7161_v61, %v6880_v54  ;;  %v1755_v38 = vadd.f32 %v6914_v5, %v1366_v40 }
 0x287   :  { %v7333_v43 = vpop.f32.mrf.mxu1 }
 0x288   :  { %8892 = vst [vmem:[#allocation100_spill] sm:$0xff] %v7333_v43  ;;  %v7350_v43 = vpop.f32.mrf.mxu0  ;;  %v1751_v54 = vadd.f32 %v6882_v56, %v1354_v31 }
 0x289   :  { %v7335_v28 = vpop.f32.mrf.mxu1  ;;  %8897 = vst [vmem:[#allocation105_spill] sm:$0xff] %v7350_v43 }
 0x28a   :  { %8893 = vst [vmem:[#allocation101_spill] sm:$0xff] %v7335_v28  ;;  %v7362_v61 = vpop.f32.mrf.mxu0 }
 0x28b   :  { %v7341_v63 = vpop.f32.mrf.mxu1  ;;  %8898 = vst [vmem:[#allocation106_spill] sm:$0xff] %v7362_v61  ;;  %v8938_v61 = vld [vmem:[#allocation43_spill] sm:$0xff] }
 0x28c   :  { %8895 = vst [vmem:[#allocation103_spill] sm:$0xff] %v7341_v63 }
 0x28d   :  { %v7345_v49 = vpop.f32.mrf.mxu1 }
 0x28e   :  { %8896 = vst [vmem:[#allocation104_spill] sm:$0xff] %v7345_v49  ;;  %v8993_v49 = vld [vmem:[#allocation29_spill] sm:$0xff] }
 0x28f   :  { %v1953_v28 = vpop.f32.mrf.mxu1 }
 0x290   :  { %v7354_v42 = vadd.f32 %v1953_v28, %v1749_v57  ;;  %v1756_v28 = vadd.f32 %v6922_v3, %v1368_v53  ;;  %v1759_v3 = vadd.f32 %v6946_v29, %v1378_v6  ;;  %v1396_v29 = vadd.f32 %v7245_v30, %v6992_v24 }
 0x291   :  { %v1955_v63 = vpop.f32.mrf.mxu1 }
 0x292   :  { %v7359_v9 = vadd.f32 %v1955_v63, %v1750_v14  ;;  %v7374_v14 = vpop.f32.mrf.mxu0  ;;  %v1765_v2 = vadd.f32 %v6994_v48, %v1396_v29  ;;  %v1414_v48 = vadd.f32 %v7280_v55, %v7039_v33  ;;  %v1426_v55 = vadd.f32 %v7297_v35, %v7065_v13  ;;  %v8919_v35 = vld [vmem:[#allocation92_spill] sm:$0xff] }
 0x293   :  { %v1959_v1 = vpop.f32.mrf.mxu1  ;;  %8899 = vst [vmem:[#allocation107_spill] sm:$0xff] %v7374_v14  ;;  %v8956_v14 = vld [vmem:[#allocation59_spill] sm:$0xff] }
 0x294   :  { %v7366_v43 = vadd.f32 %v1959_v1, %v1751_v54  ;;  %v7386_v26 = vpop.f32.mrf.mxu0  ;;  %v1384_v54 = vadd.f32 %v7221_v22, %v6960_v52  ;;  %v1763_v22 = vadd.f32 %v6978_v58, %v1390_v32  ;;  %v1408_v58 = vadd.f32 %v7269_v25, %v7024_v34 }
 0x295   :  { %v1961_v11 = vpop.f32.mrf.mxu1  ;;  %8900 = vst [vmem:[#allocation108_spill] sm:$0xff] %v7386_v26  ;;  %v1771_v25 = vadd.f32 %v7041_v0, %v1414_v48  ;;  %v8915_v0 = vld [vmem:[#allocation88_spill] sm:$0xff] }
 0x296   :  { %v7371_v20 = vadd.f32 %v1961_v11, %v1752_v8  ;;  %v7396_v60 = vpop.f32.mrf.mxu0  ;;  %v1761_v8 = vadd.f32 %v6962_v37, %v1384_v54  ;;  %v1402_v37 = vadd.f32 %v7257_v62, %v7008_v27  ;;  %v8911_v62 = vld [vmem:[#allocation17_spill] sm:$0xff] }
 0x297   :  { %v1965_v56 = vpop.f32.mrf.mxu1  ;;  %8901 = vst [vmem:[#allocation109_spill] sm:$0xff] %v7396_v60  ;;  %v1769_v6 = vadd.f32 %v8911_v62, %v1408_v58 }
 0x298   :  { %v7378_v63 = vadd.f32 %v1965_v56, %v1753_v45  ;;  %v7405_v1 = vpop.f32.mrf.mxu0  ;;  %v1767_v30 = vadd.f32 %v7010_v15, %v1402_v37  ;;  %v1420_v15 = vadd.f32 %v7289_v39, %v7053_v7  ;;  %v1432_v39 = vadd.f32 %v8915_v0, %v7077_v17 }
 0x299   :  { %v1967_v51 = vpop.f32.mrf.mxu1  ;;  %8902 = vst [vmem:[#allocation110_spill] sm:$0xff] %v7405_v1 }
 0x29a   :  { %v7383_v31 = vadd.f32 %v1967_v51, %v1754_v41  ;;  %v7414_v11 = vpop.f32.mrf.mxu0 }
 0x29b   :  { %v1971_v4 = vpop.f32.mrf.mxu1  ;;  %8905 = vst [vmem:[#allocation113_spill] sm:$0xff] %v7414_v11 }
 0x29c   :  { %v7388_v57 = vadd.f32 %v1971_v4, %v1755_v38  ;;  %v7423_v56 = vpop.f32.mrf.mxu0 }
 0x29d   :  { %v1973_v10 = vpop.f32.mrf.mxu1  ;;  %8907 = vst [vmem:[#allocation115_spill] sm:$0xff] %v7423_v56 }
 0x29e   :  { %v7393_v36 = vadd.f32 %v1973_v10, %v1756_v28  ;;  %v7432_v51 = vpop.f32.mrf.mxu0 }
 0x29f   :  { %v1977_v59 = vpop.f32.mrf.mxu1  ;;  %8909 = vst [vmem:[#allocation117_spill] sm:$0xff] %v7432_v51 }
 0x2a0   :  { %v7398_v21 = vadd.f32 %v1977_v59, %v1757_v46  ;;  %v7441_v4 = vpop.f32.mrf.mxu0 }
 0x2a1   :  { %v7400_v5 = vpop.f32.mrf.mxu1  ;;  %8910 = vst [vmem:[#allocation118_spill] sm:$0xff] %v7441_v4 }
 0x2a2   :  { %v7450_v46 = vpop.f32.mrf.mxu0 }
 0x2a3   :  { %v1983_v50 = vpop.f32.mrf.mxu1  ;;  %8912 = vst [vmem:[#allocation17_spill] sm:$0xff] %v7450_v46 }
 0x2a4   :  { %v7407_v23 = vadd.f32 %v1983_v50, %v1759_v3  ;;  %v7459_v3 = vpop.f32.mrf.mxu0 }
 0x2a5   :  { %v7409_v47 = vpop.f32.mrf.mxu1  ;;  %8913 = vst [vmem:[#allocation119_spill] sm:$0xff] %v7459_v3 }
 0x2a6   :  { %8903 = vst [vmem:[#allocation111_spill] sm:$0xff] %v7407_v23  ;;  %8904 = vst [vmem:[#allocation112_spill] sm:$0xff] %v7409_v47 }
 0x2a7   :  { %v1989_v40 = vpop.f32.mrf.mxu1 }
 0x2a8   :  { %v7416_v45 = vadd.f32 %v1989_v40, %v1761_v8  ;;  %v1773_v8 = vadd.f32 %v7055_v18, %v1420_v15  ;;  %v7468_v40 = vpop.f32.mrf.mxu0  ;;  %v8918_v18 = vld [vmem:[#allocation30_spill] sm:$0xff] }
 0x2a9   :  { %v7418_v52 = vpop.f32.mrf.mxu1  ;;  %8914 = vst [vmem:[#allocation120_spill] sm:$0xff] %v7468_v40  ;;  %v3081_v15 = vld [vmem:[%s8777_s6 + $0x8] sm:$0xff] }
 0x2aa   :  { %8906 = vst [vmem:[#allocation114_spill] sm:$0xff] %v7416_v45  ;;  %4603 = vmatprep.mubr.msk.f32.mxu1 %vm3100_vm9, %v3081_v15  ;;  %v8931_v15 = vld [vmem:[#allocation100_spill] sm:$0xff] }
 0x2ab   :  { %v1995_v53 = vpop.f32.mrf.mxu1 }
 0x2ac   :  { %v7425_v41 = vadd.f32 %v1995_v53, %v1763_v22  ;;  %v8916_v53 = vld [vmem:[#allocation24_spill] sm:$0xff] }
 0x2ad   :  { %v7427_v19 = vpop.f32.mrf.mxu1  ;;  %v1775_v37 = vadd.f32 %v8916_v53, %v1426_v55  ;;  %v8923_v55 = vld [vmem:[#allocation31_spill] sm:$0xff] }
 0x2ae   :  { %8908 = vst [vmem:[#allocation116_spill] sm:$0xff] %v7425_v41 }
 0x2af   :  { %v2001_v12 = vpop.f32.mrf.mxu1 }
 0x2b0   :  { %v7434_v38 = vadd.f32 %v2001_v12, %v1765_v2  ;;  %v7477_v2 = vpop.f32.mrf.mxu0 }
 0x2b1   :  { %v7436_v24 = vpop.f32.mrf.mxu1  ;;  %8917 = vst [vmem:[#allocation88_spill] sm:$0xff] %v7477_v2 }
 0x2b2   :  { %v7486_v62 = vpop.f32.mrf.mxu0 }
 0x2b3   :  { %v2007_v28 = vpop.f32.mrf.mxu1  ;;  %8921 = vst [vmem:[#allocation24_spill] sm:$0xff] %v7486_v62  ;;  %v8988_v62 = vld [vmem:[#allocation94_spill] sm:$0xff] }
 0x2b4   :  { %v7443_v10 = vadd.f32 %v2007_v28, %v1767_v30  ;;  %v1438_v30 = vadd.f32 %v8919_v35, %v8918_v18  ;;  %v8920_v28 = vld [vmem:[#allocation27_spill] sm:$0xff] }
 0x2b5   :  { %v7445_v27 = vpop.f32.mrf.mxu1  ;;  %v1777_v48 = vadd.f32 %v8920_v28, %v1432_v39  ;;  %v8926_v18 = vld [vmem:[#allocation35_spill] sm:$0xff] }
 0x2b7   :  { %v2013_v59 = vpop.f32.mrf.mxu1 }
 0x2b8   :  { %v7452_v54 = vadd.f32 %v2013_v59, %v1769_v6 }
 0x2b9   :  { %v7454_v34 = vpop.f32.mrf.mxu1 }
 0x2bb   :  { %v2019_v50 = vpop.f32.mrf.mxu1 }
 0x2bc   :  { %v7461_v32 = vadd.f32 %v2019_v50, %v1771_v25  ;;  %v8922_v25 = vld [vmem:[#allocation34_spill] sm:$0xff] }
 0x2bd   :  { %v7463_v33 = vpop.f32.mrf.mxu1  ;;  %v1444_v50 = vadd.f32 %v7321_v44, %v8922_v25 }
 0x2bf   :  { %v2025_v29 = vpop.f32.mrf.mxu1  ;;  %v1781_v35 = vadd.f32 %v8926_v18, %v1444_v50  ;;  %v8936_v50 = vld [vmem:[#allocation46_spill] sm:$0xff] }
 0x2c0   :  { %v7470_v22 = vadd.f32 %v2025_v29, %v1773_v8  ;;  %v1779_v8 = vadd.f32 %v8923_v55, %v1438_v30  ;;  %v7499_v29 = vpop.f32.mrf.mxu0  ;;  %v8932_v55 = vld [vmem:[#allocation39_spill] sm:$0xff] }
 0x2c1   :  { %v7472_v7 = vpop.f32.mrf.mxu1  ;;  %8924 = vst [vmem:[#allocation30_spill] sm:$0xff] %v7499_v29 }
 0x2c2   :  { %v7508_v28 = vpop.f32.mrf.mxu0 }
 0x2c3   :  { %v2031_v12 = vpop.f32.mrf.mxu1  ;;  %8927 = vst [vmem:[#allocation92_spill] sm:$0xff] %v7508_v28  ;;  %v8989_v28 = vld [vmem:[#allocation25_spill] sm:$0xff] }
 0x2c4   :  { %v7479_v58 = vadd.f32 %v2031_v12, %v1775_v37  ;;  %v8925_v37 = vld [vmem:[#allocation38_spill] sm:$0xff] }
 0x2c5   :  { %v7481_v13 = vpop.f32.mrf.mxu1  ;;  %v1450_v12 = vadd.f32 %v7327_v16, %v8925_v37  ;;  %v8937_v37 = vld [vmem:[#allocation103_spill] sm:$0xff] }
 0x2c6   :  { %v1462_v18 = vadd.f32 %v8937_v37, %v8936_v50  ;;  %v3267_v37 = vld [vmem:[%s8779_s8 + $0x170] sm:$0xff] }
 0x2c7   :  { %v2037_v6 = vpop.f32.mrf.mxu1 }
 0x2c8   :  { %v7488_v59 = vadd.f32 %v2037_v6, %v1777_v48  ;;  %v8930_v6 = vld [vmem:[#allocation42_spill] sm:$0xff] }
 0x2c9   :  { %v7490_v17 = vpop.f32.mrf.mxu1  ;;  %v1456_v25 = vadd.f32 %v8931_v15, %v8930_v6 }
 0x2cb   :  { %v2043_v0 = vpop.f32.mrf.mxu1 }
 0x2cc   :  { %v7501_v39 = vadd.f32 %v2043_v0, %v1779_v8  ;;  %v1783_v8 = vadd.f32 %v8932_v55, %v1450_v12  ;;  %v7517_v0 = vpop.f32.mrf.mxu0  ;;  %v8942_v12 = vld [vmem:[#allocation47_spill] sm:$0xff] }
 0x2cd   :  { %v7503_v53 = vpop.f32.mrf.mxu1  ;;  %8933 = vst [vmem:[#allocation31_spill] sm:$0xff] %v7517_v0  ;;  %v1787_v15 = vadd.f32 %v8942_v12, %v1462_v18  ;;  %v3268_v55 = vld [vmem:[%s8779_s8 + $0x178] sm:$0xff]  ;;  %v8946_v18 = vld [vmem:[#allocation50_spill] sm:$0xff] }
 0x2ce   :  { %v3282_v12 = vld [vmem:[%s8779_s8 + $0x1e8] sm:$0xff] }
 0x2cf   :  { %v2049_v48 = vpop.f32.mrf.mxu1  ;;  %v8990_v0 = vld [vmem:[#allocation86_spill] sm:$0xff] }
 0x2d0   :  { %v7510_v44 = vadd.f32 %v2049_v48, %v1781_v35  ;;  %v1785_v35 = vadd.f32 %v8938_v61, %v1456_v25  ;;  %v7526_v48 = vpop.f32.mrf.mxu0 }
 0x2d1   :  { %v7512_v30 = vpop.f32.mrf.mxu1  ;;  %8939 = vst [vmem:[#allocation42_spill] sm:$0xff] %v7526_v48  ;;  %v1428_v48 = vadd.f32 %v8990_v0, %v8989_v28  ;;  %v8998_v28 = vld [vmem:[#allocation18_spill] sm:$0xff]  ;;  %v8999_v0 = vld [vmem:[#allocation77_spill] sm:$0xff] }
 0x2d2   :  { %8928 = vst [vmem:[#allocation27_spill] sm:$0xff] %v7510_v44  ;;  %8929 = vst [vmem:[#allocation34_spill] sm:$0xff] %v7512_v30 }
 0x2d3   :  { %v2055_v1 = vpop.f32.mrf.mxu1 }
 0x2d4   :  { %v7519_v11 = vadd.f32 %v2055_v1, %v1783_v8  ;;  %v3284_v1 = vld [vmem:[%s8779_s8 + $0x1f8] sm:$0xff]  ;;  %v7539_v8 = vpop.f32.mrf.mxu0 }
 0x2d5   :  { %v7521_v16 = vpop.f32.mrf.mxu1  ;;  %8943 = vst [vmem:[#allocation46_spill] sm:$0xff] %v7539_v8  ;;  %4683 = vmatprep.subr.mxu0 %v3284_v1 }
 0x2d6   :  { %8934 = vst [vmem:[#allocation38_spill] sm:$0xff] %v7519_v11  ;;  %8935 = vst [vmem:[#allocation35_spill] sm:$0xff] %v7521_v16  ;;  %4684 = vmatpush3.msra.mxu0 %v3268_v55  ;;  %v3266_v55 = vld [vmem:[%s8779_s8 + $0x168] sm:$0xff] }
 0x2d7   :  { %v2061_v44 = vpop.f32.mrf.mxu1 }
 0x2d8   :  { %v7528_v56 = vadd.f32 %v2061_v44, %v1785_v35  ;;  %v3283_v44 = vld [vmem:[%s8779_s8 + $0x1f0] sm:$0xff]  ;;  %v2395_v35 = vadd.f32 %v8946_v18, %v7354_v42  ;;  %v3281_v42 = vld [vmem:[%s8779_s8 + $0x1e0] sm:$0xff] }
 0x2d9   :  { %v7530_v6 = vpop.f32.mrf.mxu1  ;;  %4685 = vmatprep.subr.mxu0 %v3283_v44  ;;  %v8949_v44 = vld [vmem:[#allocation51_spill] sm:$0xff]  ;;  %v3265_v18 = vld [vmem:[%s8779_s8 + $0x160] sm:$0xff] }
 0x2da   :  { %8940 = vst [vmem:[#allocation100_spill] sm:$0xff] %v7528_v56  ;;  %8941 = vst [vmem:[#allocation39_spill] sm:$0xff] %v7530_v6  ;;  %4686 = vmatpush3.msra.mxu0 %v3267_v37  ;;  %v2396_v11 = vadd.f32 %v8949_v44, %v7359_v9  ;;  %v8955_v56 = vld [vmem:[#allocation5_spill] sm:$0xff]  ;;  %v8986_v6 = vld [vmem:[#allocation90_spill] sm:$0xff] }
 0x2db   :  { %v2067_v61 = vpop.f32.mrf.mxu1  ;;  %4687 = vmatprep.subr.mxu0 %v3282_v12  ;;  %v3280_v12 = vld [vmem:[%s8779_s8 + $0x1d8] sm:$0xff]  ;;  %v1374_v51 = vadd.f32 %v8956_v14, %v8955_v56 }
 0x2dc   :  { %v7541_v25 = vadd.f32 %v2067_v61, %v1787_v15  ;;  %v7556_v15 = vpop.f32.mrf.mxu0  ;;  %4688 = vmatpush3.msra.mxu0 %v3266_v55  ;;  %v3264_v55 = vld [vmem:[%s8779_s8 + $0x158] sm:$0xff] }
 0x2dd   :  { %v7546_v50 = vpop.f32.mrf.mxu1  ;;  %8947 = vst [vmem:[#allocation47_spill] sm:$0xff] %v7556_v15  ;;  %4689 = vmatprep.subr.mxu0 %v3281_v42  ;;  %v8961_v14 = vld [vmem:[#allocation55_spill] sm:$0xff] }
 0x2de   :  { %8944 = vst [vmem:[#allocation103_spill] sm:$0xff] %v7541_v25  ;;  %8945 = vst [vmem:[#allocation43_spill] sm:$0xff] %v7546_v50  ;;  %4690 = vmatpush3.msra.mxu0 %v3265_v18  ;;  %v7581_v44 = vpop.f32.mrf.mxu0  ;;  %v2400_v56 = vadd.f32 %v8961_v14, %v7383_v31  ;;  %v8992_v15 = vld [vmem:[#allocation83_spill] sm:$0xff] }
 0x2df   :  { %v2599_v1 = vpop.f32.mrf.mxu1  ;;  %4691 = vmatprep.subr.mxu0 %v3280_v12  ;;  %v3262_v12 = vld [vmem:[%s8779_s8 + $0x148] sm:$0xff] }
 0x2e0   :  { %v7561_v61 = vadd.f32 %v2599_v1, %v2395_v35  ;;  %v8951_v1 = vld [vmem:[#allocation52_spill] sm:$0xff]  ;;  %4692 = vmatpush3.msra.mxu0 %v3264_v55  ;;  %v7608_v55 = vpop.f32.mrf.mxu0 }
 0x2e1   :  { %v2601_v37 = vpop.f32.mrf.mxu1  ;;  %v2397_v9 = vadd.f32 %v8951_v1, %v7366_v43  ;;  %8952 = vst [vmem:[#allocation52_spill] sm:$0xff] %v7581_v44  ;;  %v8954_v43 = vld [vmem:[#allocation53_spill] sm:$0xff]  ;;  %8959 = vst [vmem:[#allocation5_spill] sm:$0xff] %v7608_v55 }
 0x2e2   :  { %8948 = vst [vmem:[#allocation50_spill] sm:$0xff] %v7561_v61  ;;  %v7574_v35 = vadd.f32 %v2601_v37, %v2396_v11  ;;  %v3279_v61 = vld [vmem:[%s8779_s8 + $0x1d0] sm:$0xff]  ;;  %v2398_v18 = vadd.f32 %v8954_v43, %v7371_v20  ;;  %v3278_v1 = vld [vmem:[%s8779_s8 + $0x1c8] sm:$0xff]  ;;  %v3277_v20 = vld [vmem:[%s8779_s8 + $0x1c0] sm:$0xff]  ;;  %v7628_v31 = vpop.f32.mrf.mxu0 }
 0x2e3   :  { %v2605_v42 = vpop.f32.mrf.mxu1  ;;  %v3263_v11 = vld [vmem:[%s8779_s8 + $0x150] sm:$0xff]  ;;  %4693 = vmatprep.subr.mxu0 %v3279_v61  ;;  %v3261_v43 = vld [vmem:[%s8779_s8 + $0x140] sm:$0xff]  ;;  %8965 = vst [vmem:[#allocation55_spill] sm:$0xff] %v7628_v31 }
 0x2e4   :  { %8950 = vst [vmem:[#allocation51_spill] sm:$0xff] %v7574_v35  ;;  %v7589_v37 = vadd.f32 %v2605_v42, %v2397_v9  ;;  %v8958_v9 = vld [vmem:[#allocation54_spill] sm:$0xff]  ;;  %4694 = vmatpush3.msra.mxu0 %v3263_v11  ;;  %v3260_v11 = vld [vmem:[%s8779_s8 + $0x138] sm:$0xff] }
 0x2e5   :  { %v2607_v35 = vpop.f32.mrf.mxu1  ;;  %v2399_v42 = vadd.f32 %v8958_v9, %v7378_v63  ;;  %4695 = vmatprep.subr.mxu0 %v3278_v1  ;;  %v3276_v63 = vld [vmem:[%s8779_s8 + $0x1b8] sm:$0xff] }
 0x2e6   :  { %8953 = vst [vmem:[#allocation121_spill] sm:$0xff] %v7589_v37  ;;  %v7601_v30 = vadd.f32 %v2607_v35, %v2398_v18  ;;  %4696 = vmatpush3.msra.mxu0 %v3262_v12  ;;  %v8962_v18 = vld [vmem:[#allocation6_spill] sm:$0xff]  ;;  %v8995_v31 = vld [vmem:[#allocation20_spill] sm:$0xff] }
 0x2e7   :  { %v2611_v61 = vpop.f32.mrf.mxu1  ;;  %4697 = vmatprep.subr.mxu0 %v3277_v20  ;;  %v1758_v1 = vadd.f32 %v8962_v18, %v1374_v51  ;;  %v8967_v20 = vld [vmem:[#allocation57_spill] sm:$0xff] }
 0x2e8   :  { %8957 = vst [vmem:[#allocation53_spill] sm:$0xff] %v7601_v30  ;;  %v7613_v37 = vadd.f32 %v2611_v61, %v2399_v42  ;;  %v8964_v42 = vld [vmem:[#allocation56_spill] sm:$0xff]  ;;  %4698 = vmatpush3.msra.mxu0 %v3261_v43  ;;  %v2402_v26 = vadd.f32 %v8967_v20, %v7393_v36 }
 0x2e9   :  { %v2613_v35 = vpop.f32.mrf.mxu1  ;;  %v2401_v61 = vadd.f32 %v8964_v42, %v7388_v57  ;;  %4699 = vmatprep.subr.mxu0 %v3276_v63  ;;  %v2081_v14 = vadd.f32 %v7400_v5, %v1758_v1  ;;  %v7639_v57 = vpop.f32.mrf.mxu0  ;;  %v8972_v63 = vld [vmem:[#allocation60_spill] sm:$0xff] }
 0x2ea   :  { %8960 = vst [vmem:[#allocation59_spill] sm:$0xff] %v7613_v37  ;;  %v7624_v9 = vadd.f32 %v2613_v35, %v2400_v56  ;;  %4700 = vmatpush3.msra.mxu0 %v3260_v11  ;;  %v8969_v56 = vld [vmem:[#allocation58_spill] sm:$0xff]  ;;  %8970 = vst [vmem:[#allocation57_spill] sm:$0xff] %v7639_v57  ;;  %v1410_v57 = vadd.f32 %v8999_v0, %v8998_v28  ;;  %v9008_v28 = vld [vmem:[#allocation21_spill] sm:$0xff] }
 0x2eb   :  { %v2617_v12 = vpop.f32.mrf.mxu1  ;;  %v2403_v35 = vadd.f32 %v8969_v56, %v7398_v21  ;;  %v2404_v42 = vadd.f32 %v8972_v63, %v2081_v14 }
 0x2ec   :  { %8963 = vst [vmem:[#allocation54_spill] sm:$0xff] %v7624_v9  ;;  %v7631_v30 = vadd.f32 %v2617_v12, %v2401_v61  ;;  %v7646_v61 = vpop.f32.mrf.mxu0 }
 0x2ed   :  { %v2619_v25 = vpop.f32.mrf.mxu1  ;;  %8974 = vst [vmem:[#allocation122_spill] sm:$0xff] %v7646_v61  ;;  %v9003_v61 = vld [vmem:[#allocation9_spill] sm:$0xff] }
 0x2ee   :  { %8966 = vst [vmem:[#allocation6_spill] sm:$0xff] %v7631_v30  ;;  %v7635_v51 = vadd.f32 %v2619_v25, %v2402_v26  ;;  %v7652_v26 = vpop.f32.mrf.mxu0 }
 0x2ef   :  { %v2623_v43 = vpop.f32.mrf.mxu1  ;;  %8977 = vst [vmem:[#allocation125_spill] sm:$0xff] %v7652_v26 }
 0x2f0   :  { %8968 = vst [vmem:[#allocation56_spill] sm:$0xff] %v7635_v51  ;;  %v7641_v18 = vadd.f32 %v2623_v43, %v2403_v35  ;;  %v7658_v12 = vpop.f32.mrf.mxu0  ;;  %v8985_v51 = vld [vmem:[#allocation28_spill] sm:$0xff] }
 0x2f1   :  { %v2625_v5 = vpop.f32.mrf.mxu1  ;;  %8980 = vst [vmem:[#allocation128_spill] sm:$0xff] %v7658_v12  ;;  %v1434_v2 = vadd.f32 %v8986_v6, %v8985_v51  ;;  %v8996_v6 = vld [vmem:[#allocation80_spill] sm:$0xff] }
 0x2f2   :  { %8971 = vst [vmem:[#allocation58_spill] sm:$0xff] %v7641_v18  ;;  %v7644_v1 = vadd.f32 %v2625_v5, %v2404_v42  ;;  %v7664_v56 = vpop.f32.mrf.mxu0  ;;  %v8987_v18 = vld [vmem:[#allocation32_spill] sm:$0xff]  ;;  %v1416_v51 = vadd.f32 %v8996_v6, %v8995_v31  ;;  %v9005_v6 = vld [vmem:[#allocation15_spill] sm:$0xff] }
 0x2f3   :  { %v7648_v36 = vpop.f32.mrf.mxu1  ;;  %v1778_v44 = vadd.f32 %v8993_v49, %v1434_v2  ;;  %v9001_v2 = vld [vmem:[#allocation7_spill] sm:$0xff] }
 0x2f4   :  { %8973 = vst [vmem:[#allocation60_spill] sm:$0xff] %v7644_v1  ;;  %8975 = vst [vmem:[#allocation123_spill] sm:$0xff] %v7648_v36  ;;  %v7670_v63 = vpop.f32.mrf.mxu0  ;;  %v1440_v1 = vadd.f32 %v8988_v62, %v8987_v18  ;;  %v8991_v36 = vld [vmem:[#allocation22_spill] sm:$0xff]  ;;  %v1772_v0 = vadd.f32 %v9008_v28, %v1416_v51 }
 0x2f5   :  { %v7650_v11 = vpop.f32.mrf.mxu1  ;;  %v2101_v18 = vadd.f32 %v7490_v17, %v1778_v44 }
 0x2f6   :  { %8976 = vst [vmem:[#allocation124_spill] sm:$0xff] %v7650_v11  ;;  %v7676_v4 = vpop.f32.mrf.mxu0  ;;  %v1422_v11 = vadd.f32 %v8992_v15, %v8991_v36  ;;  %v9000_v15 = vld [vmem:[#allocation23_spill] sm:$0xff] }
 0x2f7   :  { %v7654_v25 = vpop.f32.mrf.mxu1 }
 0x2f8   :  { %8978 = vst [vmem:[#allocation126_spill] sm:$0xff] %v7654_v25  ;;  %v7682_v46 = vpop.f32.mrf.mxu0  ;;  %v8994_v25 = vld [vmem:[#allocation33_spill] sm:$0xff]  ;;  %v1774_v36 = vadd.f32 %v9000_v15, %v1422_v11  ;;  %v9009_v15 = vld [vmem:[#allocation91_spill] sm:$0xff] }
 0x2f9   :  { %v7656_v21 = vpop.f32.mrf.mxu1  ;;  %v1780_v23 = vadd.f32 %v8994_v25, %v1440_v1  ;;  %v9002_v1 = vld [vmem:[#allocation62_spill] sm:$0xff] }
 0x2fa   :  { %8979 = vst [vmem:[#allocation127_spill] sm:$0xff] %v7656_v21  ;;  %v7688_v3 = vpop.f32.mrf.mxu0  ;;  %v1380_v25 = vadd.f32 %v9002_v1, %v9001_v2  ;;  %v2097_v11 = vadd.f32 %v7472_v7, %v1774_v36  ;;  %v9011_v2 = vld [vmem:[#allocation13_spill] sm:$0xff]  ;;  %v9012_v1 = vld [vmem:[#allocation71_spill] sm:$0xff] }
 0x2fb   :  { %v7660_v20 = vpop.f32.mrf.mxu1  ;;  %v2103_v45 = vadd.f32 %v7503_v53, %v1780_v23  ;;  %v9007_v23 = vld [vmem:[#allocation93_spill] sm:$0xff]  ;;  %v1398_v26 = vadd.f32 %v9012_v1, %v9011_v2  ;;  %v9016_v36 = vld [vmem:[#allocation11_spill] sm:$0xff] }
 0x2fc   :  { %8981 = vst [vmem:[#allocation129_spill] sm:$0xff] %v7660_v20  ;;  %v3005_v50 = vpop.f32.mrf.mxu0  ;;  %v8997_v20 = vld [vmem:[#allocation26_spill] sm:$0xff]  ;;  %v2425_v53 = vadd.f32 %v9007_v23, %v7501_v39  ;;  %v2095_v39 = vadd.f32 %v7463_v33, %v1772_v0  ;;  %v9015_v23 = vld [vmem:[#allocation87_spill] sm:$0xff]  ;;  %v9019_v2 = vld [vmem:[#allocation85_spill] sm:$0xff] }
 0x2fd   :  { %v7662_v14 = vpop.f32.mrf.mxu1  ;;  %v1776_v62 = vadd.f32 %v8997_v20, %v1428_v48  ;;  %v9006_v48 = vld [vmem:[#allocation74_spill] sm:$0xff] }
 0x2fe   :  { %8982 = vst [vmem:[#allocation130_spill] sm:$0xff] %v7662_v14  ;;  %v3007_v55 = vpop.f32.mrf.mxu0  ;;  %v1404_v20 = vadd.f32 %v9006_v48, %v9005_v6  ;;  %v9014_v6 = vld [vmem:[#allocation89_spill] sm:$0xff] }
 0x2ff   :  { %v7666_v35 = vpop.f32.mrf.mxu1  ;;  %v2099_v49 = vadd.f32 %v7481_v13, %v1776_v62  ;;  %v2424_v13 = vadd.f32 %v9009_v15, %v2101_v18  ;;  %v9010_v62 = vld [vmem:[#allocation95_spill] sm:$0xff]  ;;  %v2423_v48 = vadd.f32 %v9014_v6, %v7488_v59  ;;  %v9017_v18 = vld [vmem:[#allocation68_spill] sm:$0xff] }
 0x300   :  { %8983 = vst [vmem:[#allocation131_spill] sm:$0xff] %v7666_v35  ;;  %v9004_v35 = vld [vmem:[#allocation65_spill] sm:$0xff]  ;;  %v3011_v17 = vpop.f32.mrf.mxu0  ;;  %v2426_v41 = vadd.f32 %v9010_v62, %v2103_v45  ;;  %v1392_v15 = vadd.f32 %v9017_v18, %v9016_v36  ;;  %v9018_v45 = vld [vmem:[#allocation16_spill] sm:$0xff] }
 0x301   :  { %v7668_v43 = vpop.f32.mrf.mxu1  ;;  %v1386_v31 = vadd.f32 %v9004_v35, %v9003_v61  ;;  %v9013_v61 = vld [vmem:[#allocation19_spill] sm:$0xff]  ;;  %v2422_v51 = vadd.f32 %v9015_v23, %v2099_v49  ;;  %v1768_v62 = vadd.f32 %v9018_v45, %v1404_v20 }
 0x302   :  { %8984 = vst [vmem:[#allocation132_spill] sm:$0xff] %v7668_v43  ;;  %v1770_v35 = vadd.f32 %v9013_v61, %v1410_v57  ;;  %v3013_v12 = vpop.f32.mrf.mxu0  ;;  %v2421_v57 = vadd.f32 %v9019_v2, %v7479_v58  ;;  %v9032_v2 = vld [vmem:[#allocation72_spill] sm:$0xff] }
 0x303   :  { %v7672_v42 = vpop.f32.mrf.mxu1  ;;  %v2091_v58 = vadd.f32 %v7445_v27, %v1768_v62 }
 0x304   :  { %v2093_v59 = vadd.f32 %v7454_v34, %v1770_v35  ;;  %v9024_v34 = vld [vmem:[#allocation12_spill] sm:$0xff] }
 0x305   :  { %v7674_v5 = vpop.f32.mrf.mxu1 }
 0x307   :  { %v7678_v37 = vpop.f32.mrf.mxu1 }
 0x309   :  { %v7680_v60 = vpop.f32.mrf.mxu1 }
 0x30b   :  { %v7684_v9 = vpop.f32.mrf.mxu1 }
 0x30d   :  { %v7686_v16 = vpop.f32.mrf.mxu1 }
 0x30f   :  { %v7690_v30 = vpop.f32.mrf.mxu1 }
 0x311   :  { %v2673_v40 = vpop.f32.mrf.mxu1 }
 0x313   :  { %v2677_v29 = vpop.f32.mrf.mxu1 }
 0x315   :  { %v2679_v8 = vpop.f32.mrf.mxu1 }
 0x317   :  { %v2683_v21 = vpop.f32.mrf.mxu1 }
 0x318   :  { %v2746_v1 = vadd.f32 %v2683_v21, %v2423_v48  ;;  %v9023_v21 = vld [vmem:[#allocation81_spill] sm:$0xff] }
 0x319   :  { %v2685_v14 = vpop.f32.mrf.mxu1  ;;  %v2418_v48 = vadd.f32 %v9023_v21, %v2095_v39  ;;  %v9043_v21 = vld [vmem:[#allocation66_spill] sm:$0xff] }
 0x31a   :  { %v2747_v28 = vadd.f32 %v2685_v14, %v2424_v13  ;;  %v9021_v14 = vld [vmem:[#allocation14_spill] sm:$0xff]  ;;  %v2744_v13 = vadd.f32 %v2677_v29, %v2421_v57  ;;  %v3068_v29 = vadd.f32 %v3005_v50, %v2746_v1 }
 0x31b   :  { %v2689_v44 = vpop.f32.mrf.mxu1  ;;  %v2741_v35 = vadd.f32 %v7686_v16, %v2418_v48 }
 0x31c   :  { %v2748_v43 = vadd.f32 %v2689_v44, %v2425_v53  ;;  %v9020_v53 = vld [vmem:[#allocation84_spill] sm:$0xff]  ;;  %v2745_v44 = vadd.f32 %v2679_v8, %v2422_v51  ;;  %v3069_v36 = vadd.f32 %v3007_v55, %v2747_v28  ;;  %v7747_v8 = vpop.f32.mrf.mxu0  ;;  %v9027_v55 = vld [vmem:[#allocation10_spill] sm:$0xff] }
 0x31d   :  { %v2691_v47 = vpop.f32.mrf.mxu1  ;;  %v2420_v33 = vadd.f32 %v9020_v53, %v2097_v11  ;;  %v1764_v11 = vadd.f32 %v9024_v34, %v1392_v15  ;;  %v1762_v39 = vadd.f32 %v9027_v55, %v1386_v31  ;;  %v9028_v51 = vld [vmem:[#allocation76_spill] sm:$0xff]  ;;  %v9045_v34 = vld [vmem:[#allocation57_spill] sm:$0xff] }
 0x31e   :  { %v2749_v7 = vadd.f32 %v2691_v47, %v2426_v41  ;;  %v1766_v47 = vadd.f32 %v9021_v14, %v1398_v26  ;;  %v9022_v41 = vld [vmem:[#allocation82_spill] sm:$0xff]  ;;  %v3070_v20 = vadd.f32 %v3011_v17, %v2748_v43  ;;  %v9025_v26 = vld [vmem:[#allocation79_spill] sm:$0xff]  ;;  %v2415_v28 = vadd.f32 %v9028_v51, %v7452_v54  ;;  %v9030_v31 = vld [vmem:[#allocation8_spill] sm:$0xff]  ;;  %v7768_v45 = vpop.f32.mrf.mxu0 }
 0x31f   :  { %v7735_v61 = vpop.f32.mrf.mxu1  ;;  %v2419_v0 = vadd.f32 %v9022_v41, %v7470_v22  ;;  %v2743_v23 = vadd.f32 %v2673_v40, %v2420_v33  ;;  %v9026_v17 = vld [vmem:[#allocation78_spill] sm:$0xff]  ;;  %v3067_v40 = vadd.f32 %v7688_v3, %v2745_v44  ;;  %v1760_v15 = vadd.f32 %v9030_v31, %v1380_v25  ;;  %v9031_v54 = vld [vmem:[#allocation73_spill] sm:$0xff]  ;;  %v9039_v41 = vld [vmem:[#allocation116_spill] sm:$0xff] }
 0x320   :  { %v3071_v49 = vadd.f32 %v3013_v12, %v2749_v7  ;;  %v2417_v12 = vadd.f32 %v9025_v26, %v7461_v32  ;;  %v2089_v43 = vadd.f32 %v7436_v24, %v1766_v47  ;;  %v2416_v27 = vadd.f32 %v9026_v17, %v2093_v59  ;;  %v9029_v7 = vld [vmem:[#allocation75_spill] sm:$0xff]  ;;  %v9033_v25 = vld [vmem:[#allocation70_spill] sm:$0xff]  ;;  %v9056_v31 = vld [vmem:[#allocation52_spill] sm:$0xff] }
 0x321   :  { %v7742_v6 = vpop.f32.mrf.mxu1  ;;  %v2742_v22 = vadd.f32 %v7690_v30, %v2419_v0  ;;  %v3066_v30 = vadd.f32 %v7682_v46, %v2744_v13  ;;  %v2087_v24 = vadd.f32 %v7427_v19, %v1764_v11  ;;  %v2414_v18 = vadd.f32 %v9029_v7, %v2091_v58  ;;  %v9046_v26 = vld [vmem:[#allocation114_spill] sm:$0xff]  ;;  %v9049_v17 = vld [vmem:[#allocation55_spill] sm:$0xff]  ;;  %v9054_v7 = vld [vmem:[#allocation61_spill] sm:$0xff] }
 0x322   :  { %3116 = vmatprep.subr.mxu1 %v3071_v49  ;;  %v2740_v32 = vadd.f32 %v7684_v9, %v2417_v12  ;;  %v2739_v16 = vadd.f32 %v7680_v60, %v2416_v27  ;;  %v3065_v3 = vadd.f32 %v7676_v4, %v2743_v23  ;;  %v2413_v9 = vadd.f32 %v9031_v54, %v7443_v10  ;;  %v9034_v10 = vld [vmem:[#allocation128_spill] sm:$0xff]  ;;  %v9044_v23 = vld [vmem:[#allocation130_spill] sm:$0xff] }
 0x323   :  { %3117 = vmatpush1.msra.mxu1 %v3070_v20  ;;  %v7761_v50 = vpop.f32.mrf.mxu1  ;;  %v2738_v46 = vadd.f32 %v7678_v37, %v2415_v28  ;;  %v3064_v62 = vadd.f32 %v7670_v63, %v2742_v22  ;;  %v2085_v19 = vadd.f32 %v7418_v52, %v1762_v39  ;;  %v2412_v57 = vadd.f32 %v9032_v2, %v2089_v43  ;;  %v9035_v63 = vld [vmem:[#allocation112_spill] sm:$0xff]  ;;  %v9036_v52 = vld [vmem:[#allocation69_spill] sm:$0xff]  ;;  %v9042_v20 = vld [vmem:[#allocation122_spill] sm:$0xff] }
 0x324   :  { %3118 = vmatprep.subr.mxu1 %v3069_v36  ;;  %v2737_v60 = vadd.f32 %v7674_v5, %v2414_v18  ;;  %v3063_v4 = vadd.f32 %v7664_v56, %v2741_v35  ;;  %v2411_v1 = vadd.f32 %v9033_v25, %v7434_v38  ;;  %v2736_v59 = vadd.f32 %v7672_v42, %v2413_v9  ;;  %v9037_v49 = vld [vmem:[#allocation132_spill] sm:$0xff]  ;;  %v9038_v5 = vld [vmem:[#allocation125_spill] sm:$0xff]  ;;  %v7788_v56 = vpop.f32.mrf.mxu0  ;;  %v9040_v38 = vld [vmem:[#allocation67_spill] sm:$0xff] }
 0x325   :  { %3119 = vmatpush1.msra.mxu1 %v3068_v29  ;;  %v3062_v53 = vadd.f32 %v9034_v10, %v2740_v32  ;;  %v7782_v37 = vpop.f32.mrf.mxu1  ;;  %v2083_v33 = vadd.f32 %v9035_v63, %v1760_v15  ;;  %v2410_v44 = vadd.f32 %v9036_v52, %v2087_v24  ;;  %v2735_v14 = vadd.f32 %v9037_v49, %v2412_v57  ;;  %v9041_v42 = vld [vmem:[#allocation131_spill] sm:$0xff]  ;;  %v9047_v12 = vld [vmem:[#allocation64_spill] sm:$0xff]  ;;  %v9048_v29 = vld [vmem:[#allocation129_spill] sm:$0xff] }
 0x326   :  { %3120 = vmatprep.subr.mxu1 %v3067_v40  ;;  %v3061_v47 = vadd.f32 %v9038_v5, %v2739_v16  ;;  %v2409_v0 = vadd.f32 %v9040_v38, %v9039_v41  ;;  %v2734_v13 = vadd.f32 %v9041_v42, %v2411_v1  ;;  %v3060_v58 = vadd.f32 %v9042_v20, %v2738_v46  ;;  %v9050_v40 = vld [vmem:[#allocation63_spill] sm:$0xff]  ;;  %v9052_v28 = vld [vmem:[#allocation5_spill] sm:$0xff]  ;;  %v9055_v16 = vld [vmem:[#allocation126_spill] sm:$0xff] }
 0x327   :  { %3121 = vmatpush1.msra.mxu1 %v3066_v30  ;;  %v2408_v48 = vadd.f32 %v9043_v21, %v2085_v19  ;;  %v2733_v36 = vadd.f32 %v9044_v23, %v2410_v44  ;;  %v3059_v11 = vadd.f32 %v9045_v34, %v2737_v60  ;;  %v2407_v22 = vadd.f32 %v9047_v12, %v9046_v26  ;;  %v7801_v35 = vpop.f32.mrf.mxu1  ;;  %v9051_v39 = vld [vmem:[#allocation127_spill] sm:$0xff]  ;;  %v7806_v30 = vpop.f32.mrf.mxu0  ;;  %v9057_v54 = vld [vmem:[#allocation48_spill] sm:$0xff]  ;;  %v9062_v25 = vld [vmem:[#allocation46_spill] sm:$0xff] }
 0x328   :  { %3122 = vmatprep.subr.mxu1 %v3065_v3  ;;  %v2732_v43 = vadd.f32 %v9048_v29, %v2409_v0  ;;  %v3058_v27 = vadd.f32 %v9049_v17, %v2736_v59  ;;  %v2406_v55 = vadd.f32 %v9050_v40, %v2083_v33  ;;  %v3057_v32 = vadd.f32 %v9052_v28, %v2735_v14  ;;  %v9053_v24 = vld [vmem:[#allocation111_spill] sm:$0xff]  ;;  %v9058_v9 = vld [vmem:[#allocation104_spill] sm:$0xff]  ;;  %v9065_v33 = vld [vmem:[#allocation42_spill] sm:$0xff] }
 0x329   :  { %3123 = vmatpush1.msra.mxu1 %v3064_v62  ;;  %v2731_v51 = vadd.f32 %v9051_v39, %v2408_v48  ;;  %v2405_v18 = vadd.f32 %v9054_v7, %v9053_v24  ;;  %v2730_v3 = vadd.f32 %v9055_v16, %v2407_v22  ;;  %v3056_v15 = vadd.f32 %v9056_v31, %v2734_v13  ;;  %v9059_v62 = vld [vmem:[#allocation124_spill] sm:$0xff]  ;;  %v9060_v2 = vld [vmem:[#allocation47_spill] sm:$0xff]  ;;  %v2709_v59 = vpop.f32.mrf.mxu1  ;;  %v7821_v44 = vpop.f32.mrf.mxu0  ;;  %v9069_v38 = vld [vmem:[#allocation49_spill] sm:$0xff] }
 0x32a   :  { %3124 = vmatprep.subr.mxu1 %v3063_v4  ;;  %v1464_v46 = vadd.f32 %v9058_v9, %v9057_v54  ;;  %v2729_v19 = vadd.f32 %v9059_v62, %v2406_v55  ;;  %v3055_v57 = vadd.f32 %v9060_v2, %v2733_v36  ;;  %v9061_v60 = vld [vmem:[#allocation123_spill] sm:$0xff]  ;;  %v3054_v1 = vadd.f32 %v9062_v25, %v2732_v43  ;;  %v9063_v10 = vld [vmem:[#allocation44_spill] sm:$0xff]  ;;  %v9071_v20 = vld [vmem:[#allocation30_spill] sm:$0xff] }
 0x32b   :  { %3125 = vmatpush1.msra.mxu1 %v3062_v53  ;;  %v2728_v4 = vadd.f32 %v9061_v60, %v2405_v18  ;;  %v9064_v53 = vld [vmem:[#allocation101_spill] sm:$0xff]  ;;  %v3053_v52 = vadd.f32 %v9065_v33, %v2731_v51  ;;  %v9066_v49 = vld [vmem:[#allocation31_spill] sm:$0xff]  ;;  %v9067_v5 = vld [vmem:[#allocation40_spill] sm:$0xff]  ;;  %v2713_v21 = vpop.f32.mrf.mxu1  ;;  %v3031_v17 = vpop.f32.mrf.mxu0 }
 0x32c   :  { %3126 = vmatprep.subr.mxu1 %v3061_v47  ;;  %v1458_v63 = vadd.f32 %v9064_v53, %v9063_v10  ;;  %v3052_v14 = vadd.f32 %v9066_v49, %v2730_v3  ;;  %v9068_v47 = vld [vmem:[#allocation98_spill] sm:$0xff]  ;;  %v1788_v0 = vadd.f32 %v9069_v38, %v1464_v46  ;;  %v9070_v42 = vld [vmem:[#allocation92_spill] sm:$0xff]  ;;  %v9074_v34 = vld [vmem:[#allocation45_spill] sm:$0xff] }
 0x32d   :  { %3127 = vmatpush1.msra.mxu1 %v3060_v58  ;;  %v1452_v41 = vadd.f32 %v9068_v47, %v9067_v5  ;;  %v3051_v13 = vadd.f32 %v9070_v42, %v2729_v19  ;;  %v3050_v58 = vadd.f32 %v9071_v20, %v2728_v4  ;;  %v9072_v48 = vld [vmem:[#allocation36_spill] sm:$0xff]  ;;  %v9075_v26 = vld [vmem:[#allocation43_spill] sm:$0xff]  ;;  %v9080_v39 = vld [vmem:[#allocation41_spill] sm:$0xff]  ;;  %v3035_v25 = vpop.f32.mrf.mxu0 }
 0x32e   :  { %3128 = vmatprep.subr.mxu1 %v3059_v11  ;;  %v9073_v23 = vld [vmem:[#allocation96_spill] sm:$0xff]  ;;  %v1786_v11 = vadd.f32 %v9074_v34, %v1458_v63  ;;  %v2111_v12 = vadd.f32 %v9075_v26, %v1788_v0  ;;  %v9081_v28 = vld [vmem:[#allocation39_spill] sm:$0xff]  ;;  %v9084_v16 = vld [vmem:[#allocation6_spill] sm:$0xff] }
 0x32f   :  { %3129 = vmatpush1.msra.mxu1 %v3058_v27  ;;  %v1446_v36 = vadd.f32 %v9073_v23, %v9072_v48  ;;  %v9076_v22 = vld [vmem:[#allocation60_spill] sm:$0xff]  ;;  %v9078_v27 = vld [vmem:[#allocation58_spill] sm:$0xff]  ;;  %v1784_v51 = vadd.f32 %v9080_v39, %v1452_v41  ;;  %v9085_v3 = vld [vmem:[#allocation119_spill] sm:$0xff] }
 0x330   :  { %3130 = vmatprep.subr.mxu1 %v3057_v32  ;;  %v9077_v29 = vld [vmem:[#allocation24_spill] sm:$0xff]  ;;  %v2109_v32 = vadd.f32 %v9081_v28, %v1786_v11  ;;  %v3046_v31 = vadd.f32 %v9085_v3, %v9084_v16  ;;  %v9086_v54 = vld [vmem:[#allocation37_spill] sm:$0xff]  ;;  %v9087_v46 = vld [vmem:[#allocation35_spill] sm:$0xff] }
 0x331   :  { %3131 = vmatpush1.msra.mxu1 %v3056_v15  ;;  %v3049_v43 = vadd.f32 %v9077_v29, %v9076_v22  ;;  %v9079_v40 = vld [vmem:[#allocation88_spill] sm:$0xff]  ;;  %v2715_v15 = vpop.f32.mrf.mxu1  ;;  %v1782_v9 = vadd.f32 %v9086_v54, %v1446_v36  ;;  %v2107_v62 = vadd.f32 %v9087_v46, %v1784_v51  ;;  %v9088_v19 = vld [vmem:[#allocation54_spill] sm:$0xff]  ;;  %v9089_v2 = vld [vmem:[#allocation17_spill] sm:$0xff] }
 0x332   :  { %3132 = vmatprep.subr.mxu1 %v3055_v57  ;;  %v3048_v55 = vadd.f32 %v9079_v40, %v9078_v27  ;;  %v9082_v24 = vld [vmem:[#allocation56_spill] sm:$0xff]  ;;  %v3045_v57 = vadd.f32 %v9089_v2, %v9088_v19  ;;  %v9090_v60 = vld [vmem:[#allocation109_spill] sm:$0xff]  ;;  %v9092_v10 = vld [vmem:[#allocation118_spill] sm:$0xff]  ;;  %v3037_v27 = vpop.f32.mrf.mxu0 }
 0x333   :  { %3133 = vmatpush1.msra.mxu1 %v3054_v1  ;;  %v9083_v7 = vld [vmem:[#allocation120_spill] sm:$0xff]  ;;  %v2434_v4 = vadd.f32 %v9090_v60, %v2111_v12  ;;  %v9091_v1 = vld [vmem:[#allocation59_spill] sm:$0xff]  ;;  %v9095_v49 = vld [vmem:[#allocation34_spill] sm:$0xff] }
 0x334   :  { %3134 = vmatprep.subr.mxu1 %v3053_v52  ;;  %v3047_v18 = vadd.f32 %v9083_v7, %v9082_v24  ;;  %v3044_v53 = vadd.f32 %v9092_v10, %v9091_v1  ;;  %v9093_v63 = vld [vmem:[#allocation103_spill] sm:$0xff]  ;;  %v9094_v33 = vld [vmem:[#allocation108_spill] sm:$0xff]  ;;  %v9096_v5 = vld [vmem:[#allocation53_spill] sm:$0xff] }
 0x335   :  { %3135 = vmatpush1.msra.mxu1 %v3052_v14  ;;  %v2433_v52 = vadd.f32 %v9094_v33, %v9093_v63  ;;  %v2105_v14 = vadd.f32 %v9095_v49, %v1782_v9  ;;  %v9097_v47 = vld [vmem:[#allocation117_spill] sm:$0xff]  ;;  %v9098_v38 = vld [vmem:[#allocation107_spill] sm:$0xff]  ;;  %v2757_v42 = vadd.f32 %v2715_v15, %v2434_v4  ;;  %v9101_v48 = vld [vmem:[#allocation100_spill] sm:$0xff] }
 0x336   :  { %3136 = vmatprep.subr.mxu1 %v3051_v13  ;;  %v3043_v41 = vadd.f32 %v9097_v47, %v9096_v5  ;;  %v2432_v0 = vadd.f32 %v9098_v38, %v2109_v32  ;;  %v9099_v13 = vld [vmem:[#allocation121_spill] sm:$0xff]  ;;  %v9100_v20 = vld [vmem:[#allocation115_spill] sm:$0xff]  ;;  %v9102_v23 = vld [vmem:[#allocation106_spill] sm:$0xff] }
 0x337   :  { %3137 = vmatpush1.msra.mxu1 %v3050_v58  ;;  %v3042_v58 = vadd.f32 %v9100_v20, %v9099_v13  ;;  %v2431_v36 = vadd.f32 %v9102_v23, %v9101_v48  ;;  %v2756_v34 = vadd.f32 %v2713_v21, %v2433_v52  ;;  %v9103_v11 = vld [vmem:[#allocation51_spill] sm:$0xff]  ;;  %v9104_v26 = vld [vmem:[#allocation113_spill] sm:$0xff]  ;;  %v9106_v40 = vld [vmem:[#allocation50_spill] sm:$0xff]  ;;  %v3079_v16 = vadd.f32 %v3037_v27, %v2757_v42 }
 0x338   :  { %3138 = vmatprep.subr.mxu1 %v3049_v43  ;;  %v3041_v12 = vadd.f32 %v9104_v26, %v9103_v11  ;;  %v9105_v22 = vld [vmem:[#allocation105_spill] sm:$0xff]  ;;  %v2755_v43 = vadd.f32 %v2709_v59, %v2432_v0  ;;  %v9108_v51 = vld [vmem:[#allocation38_spill] sm:$0xff]  ;;  %v9110_v7 = vld [vmem:[#allocation99_spill] sm:$0xff] }
 0x339   :  { %3139 = vmatpush1.msra.mxu1 %v3048_v55  ;;  %v2430_v29 = vadd.f32 %v9105_v22, %v2107_v62  ;;  %v9107_v55 = vld [vmem:[#allocation110_spill] sm:$0xff]  ;;  %v2754_v24 = vadd.f32 %v7801_v35, %v2431_v36  ;;  %v2428_v21 = vadd.f32 %v9110_v7, %v2105_v14  ;;  %v9111_v3 = vld [vmem:[#allocation27_spill] sm:$0xff]  ;;  %v3078_v54 = vadd.f32 %v3035_v25, %v2756_v34  ;;  %v3249_v4 = vld [vmem:[%s8779_s8 + $0xe0] sm:$0xff] }
 0x33a   :  { %3140 = vmatprep.subr.mxu1 %v3047_v18  ;;  %v3040_v39 = vadd.f32 %v9107_v55, %v9106_v40  ;;  %v9109_v28 = vld [vmem:[#allocation102_spill] sm:$0xff]  ;;  %v3077_v46 = vadd.f32 %v3031_v17, %v2755_v43  ;;  %v3233_v25 = vld [vmem:[%s8779_s8 + $0x60] sm:$0xff]  ;;  %v3248_v10 = vld [vmem:[%s8779_s8 + $0xd8] sm:$0xff] }
 0x33b   :  { %3141 = vmatpush1.msra.mxu1 %v3046_v31  ;;  %v2429_v32 = vadd.f32 %v9109_v28, %v9108_v51  ;;  %v2753_v18 = vadd.f32 %v7782_v37, %v2430_v29  ;;  %v9112_v31 = vld [vmem:[#allocation97_spill] sm:$0xff]  ;;  %v2751_v9 = vadd.f32 %v7742_v6, %v2428_v21  ;;  %v3076_v62 = vadd.f32 %v7821_v44, %v2754_v24  ;;  %v3082_v44 = vld [vmem:[%s8777_s6 + $0x10] sm:$0xff]  ;;  %v3232_v63 = vld [vmem:[%s8779_s8 + $0x58] sm:$0xff] }
 0x33c   :  { %3142 = vmatprep.subr.mxu1 %v3045_v57  ;;  %v2427_v59 = vadd.f32 %v9112_v31, %v9111_v3  ;;  %v3080_v6 = vld [vmem:[%s8777_s6] sm:$0xff]  ;;  %v3250_v17 = vld [vmem:[%s8779_s8 + $0xe8] sm:$0xff]  ;;  %v3247_v33 = vld [vmem:[%s8779_s8 + $0xd0] sm:$0xff] }
 0x33d   :  { %3143 = vmatpush1.msra.mxu1 %v3044_v53  ;;  %v2752_v15 = vadd.f32 %v7761_v50, %v2429_v32  ;;  %v3075_v37 = vadd.f32 %v7806_v30, %v2753_v18  ;;  %v3073_v2 = vadd.f32 %v7768_v45, %v2751_v9  ;;  %v3236_v45 = vld [vmem:[%s8779_s8 + $0x78] sm:$0xff]  ;;  %v3235_v30 = vld [vmem:[%s8779_s8 + $0x70] sm:$0xff]  ;;  %v3085_v57 = vld [vmem:[%s8777_s6 + $0x28] sm:$0xff] }
 0x33e   :  { %3144 = vmatprep.subr.mxu1 %v3043_v41  ;;  %v2750_v35 = vadd.f32 %v7735_v61, %v2427_v59  ;;  %v3252_v61 = vld [vmem:[%s8779_s8 + $0xf8] sm:$0xff]  ;;  %v3234_v60 = vld [vmem:[%s8779_s8 + $0x68] sm:$0xff]  ;;  %v3084_v1 = vld [vmem:[%s8777_s6 + $0x20] sm:$0xff] }
 0x33f   :  { %3145 = vmatpush1.msra.mxu1 %v3042_v58  ;;  %v3074_v19 = vadd.f32 %v7788_v56, %v2752_v15  ;;  %v3083_v56 = vld [vmem:[%s8777_s6 + $0x18] sm:$0xff]  ;;  %v3231_v52 = vld [vmem:[%s8779_s8 + $0x50] sm:$0xff]  ;;  %v3246_v14 = vld [vmem:[%s8779_s8 + $0xc8] sm:$0xff] }
 0x340   :  { %3146 = vmatprep.subr.mxu1 %v3041_v12  ;;  %v3072_v50 = vadd.f32 %v7747_v8, %v2750_v35  ;;  %v3251_v8 = vld [vmem:[%s8779_s8 + $0xf0] sm:$0xff]  ;;  %v3087_v53 = vld [vmem:[%s8777_s6 + $0x38] sm:$0xff]  ;;  %v3089_v5 = vld [vmem:[%s8777_s6 + $0x48] sm:$0xff] }
 0x341   :  { %3147 = vmatpush1.msra.mxu1 %v3040_v39  ;;  %v3086_v49 = vld [vmem:[%s8777_s6 + $0x30] sm:$0xff]  ;;  %v3230_v47 = vld [vmem:[%s8779_s8 + $0x48] sm:$0xff]  ;;  %v3245_v41 = vld [vmem:[%s8779_s8 + $0xc0] sm:$0xff] }
 0x342   :  { %3172 = vmatprep.subr.mxu1 %v3079_v16  ;;  %v3229_v38 = vld [vmem:[%s8779_s8 + $0x40] sm:$0xff]  ;;  %v3244_v42 = vld [vmem:[%s8779_s8 + $0xb8] sm:$0xff]  ;;  %v3243_v20 = vld [vmem:[%s8779_s8 + $0xb0] sm:$0xff] }
 0x343   :  { %3173 = vmatpush2.msra.mxu1 %v3078_v54  ;;  %v3088_v0 = vld [vmem:[%s8777_s6 + $0x40] sm:$0xff]  ;;  %v3228_v13 = vld [vmem:[%s8779_s8 + $0x38] sm:$0xff]  ;;  %v3227_v58 = vld [vmem:[%s8779_s8 + $0x30] sm:$0xff] }
 0x344   :  { %3174 = vmatprep.subr.mxu1 %v3077_v46  ;;  %v3242_v48 = vld [vmem:[%s8779_s8 + $0xa8] sm:$0xff]  ;;  %v3241_v36 = vld [vmem:[%s8779_s8 + $0xa0] sm:$0xff]  ;;  %v3240_v11 = vld [vmem:[%s8779_s8 + $0x98] sm:$0xff] }
 0x345   :  { %3175 = vmatpush2.msra.mxu1 %v3076_v62  ;;  %v3226_v23 = vld [vmem:[%s8779_s8 + $0x28] sm:$0xff]  ;;  %v3225_v34 = vld [vmem:[%s8779_s8 + $0x20] sm:$0xff]  ;;  %v3275_v26 = vld [vmem:[%s8779_s8 + $0x1b0] sm:$0xff] }
 0x346   :  { %3176 = vmatprep.subr.mxu1 %v3075_v37  ;;  %v3224_v12 = vld [vmem:[%s8779_s8 + $0x18] sm:$0xff]  ;;  %4701 = vmatprep.subr.mxu0 %v3275_v26  ;;  %v3259_v22 = vld [vmem:[%s8779_s8 + $0x130] sm:$0xff]  ;;  %v3274_v43 = vld [vmem:[%s8779_s8 + $0x1a8] sm:$0xff] }
 0x347   :  { %3177 = vmatpush2.msra.mxu1 %v3074_v19  ;;  %v3239_v29 = vld [vmem:[%s8779_s8 + $0x90] sm:$0xff]  ;;  %4702 = vmatpush3.msra.mxu0 %v3259_v22  ;;  %v3258_v40 = vld [vmem:[%s8779_s8 + $0x128] sm:$0xff]  ;;  %v3273_v39 = vld [vmem:[%s8779_s8 + $0x1a0] sm:$0xff] }
 0x348   :  { %3178 = vmatprep.subr.mxu1 %v3073_v2  ;;  %v3223_v27 = vld [vmem:[%s8779_s8 + $0x10] sm:$0xff]  ;;  %4703 = vmatprep.subr.mxu0 %v3274_v43  ;;  %v3238_v55 = vld [vmem:[%s8779_s8 + $0x88] sm:$0xff]  ;;  %v3257_v28 = vld [vmem:[%s8779_s8 + $0x120] sm:$0xff] }
 0x349   :  { %3179 = vmatpush2.msra.mxu1 %v3072_v50  ;;  %4704 = vmatpush3.msra.mxu0 %v3258_v40  ;;  %v3222_v51 = vld [vmem:[%s8779_s8 + $0x8] sm:$0xff]  ;;  %v3237_v32 = vld [vmem:[%s8779_s8 + $0x80] sm:$0xff]  ;;  %v3272_v24 = vld [vmem:[%s8779_s8 + $0x198] sm:$0xff] }
 0x34a   :  { %3181 = vmatmul.mubr.f32.vlgmr.msra.gmra.mxu1 %v3080_v6  ;;  %4727 = vmatprep.subr.mxu1 %v3252_v61  ;;  %v3221_v7 = vld [vmem:[%s8779_s8] sm:$0xff]  ;;  %v3256_v21 = vld [vmem:[%s8779_s8 + $0x118] sm:$0xff]  ;;  %v3271_v16 = vld [vmem:[%s8779_s8 + $0x190] sm:$0xff] }
 0x34b   :  { %4604 = vmatprep.mubr.msk.f32.mxu1 %vm3100_vm9, %v3083_v56  ;;  %4728 = vmatpush3.msra.mxu1 %v3236_v45  ;;  %v3669_v18 = vld [vmem:[%s8779_s8 + $0x3f8] sm:$0xff]  ;;  %v3255_v3 = vld [vmem:[%s8779_s8 + $0x110] sm:$0xff]  ;;  %v3270_v31 = vld [vmem:[%s8779_s8 + $0x188] sm:$0xff] }
 0x34c   :  { %4729 = vmatprep.subr.mxu1 %v3251_v8  ;;  %4705 = vmatprep.subr.mxu0 %v3273_v39  ;;  %v3254_v59 = vld [vmem:[%s8779_s8 + $0x108] sm:$0xff]  ;;  %v3269_v15 = vld [vmem:[%s8779_s8 + $0x180] sm:$0xff]  ;;  %v3522_v9 = vld [vmem:[%s8779_s8 + $0x2f8] sm:$0xff] }
 0x34d   :  { %4730 = vmatpush3.msra.mxu1 %v3235_v30  ;;  %4706 = vmatpush3.msra.mxu0 %v3257_v28  ;;  %v3253_v54 = vld [vmem:[%s8779_s8 + $0x100] sm:$0xff]  ;;  %v3091_v62 = vld [vmem:[%s8778_s7 + $0x8] sm:$0xff]  ;;  %v3092_v2 = vld [vmem:[%s8778_s7 + $0x10] sm:$0xff] }
 0x34e   :  { %3187 = vmatmul.mubr.f32.gmra.mxu1 %v3082_v44  ;;  %4731 = vmatprep.subr.mxu1 %v3250_v17  ;;  %v3090_v46 = vld [vmem:[%s8778_s7] sm:$0xff]  ;;  %v3093_v61 = vld [vmem:[%s8778_s7 + $0x18] sm:$0xff]  ;;  %v3663_v22 = vld [vmem:[%s8779_s8 + $0x3c8] sm:$0xff] }
 0x34f   :  { %4605 = vmatprep.mubr.msk.f32.mxu1 %vm3100_vm9, %v3085_v57  ;;  %4732 = vmatpush3.msra.mxu1 %v3234_v60  ;;  %v3653_v44 = vld [vmem:[%s8779_s8 + $0x378] sm:$0xff]  ;;  %v3668_v60 = vld [vmem:[%s8779_s8 + $0x3f0] sm:$0xff]  ;;  %v3647_v40 = vld [vmem:[%s8779_s8 + $0x348] sm:$0xff] }
 0x350   :  { %4733 = vmatprep.subr.mxu1 %v3249_v4  ;;  %4707 = vmatprep.subr.mxu0 %v3272_v24  ;;  %v3652_v4 = vld [vmem:[%s8779_s8 + $0x370] sm:$0xff]  ;;  %v3662_v39 = vld [vmem:[%s8779_s8 + $0x3c0] sm:$0xff]  ;;  %v3518_v24 = vld [vmem:[%s8779_s8 + $0x2d8] sm:$0xff] }
 0x351   :  { %4734 = vmatpush3.msra.mxu1 %v3233_v25  ;;  %4708 = vmatpush3.msra.mxu0 %v3256_v21 }
 0x352   :  { %3193 = vmatmul.mubr.f32.gmra.mxu1 %v3084_v1  ;;  %4735 = vmatprep.subr.mxu1 %v3248_v10  ;;  %v3667_v10 = vld [vmem:[%s8779_s8 + $0x3e8] sm:$0xff] }
 0x353   :  { %4606 = vmatprep.mubr.msk.f32.mxu1 %vm3100_vm9, %v3087_v53  ;;  %4736 = vmatpush3.msra.mxu1 %v3232_v63  ;;  %v3651_v53 = vld [vmem:[%s8779_s8 + $0x368] sm:$0xff] }
 0x354   :  { %4737 = vmatprep.subr.mxu1 %v3247_v33  ;;  %4709 = vmatprep.subr.mxu0 %v3271_v16  ;;  %v3661_v16 = vld [vmem:[%s8779_s8 + $0x3b8] sm:$0xff] }
 0x355   :  { %4738 = vmatpush3.msra.mxu1 %v3231_v52  ;;  %4710 = vmatpush3.msra.mxu0 %v3255_v3  ;;  %v3666_v52 = vld [vmem:[%s8779_s8 + $0x3e0] sm:$0xff]  ;;  %v3096_v3 = vld [vmem:[%s8778_s7 + $0x30] sm:$0xff] }
 0x356   :  { %3199 = vmatmul.mubr.f32.gmra.mxu1 %v3086_v49  ;;  %4739 = vmatprep.subr.mxu1 %v3246_v14 }
 0x357   :  { %4607 = vmatprep.mubr.msk.f32.mxu1 %vm3100_vm9, %v3089_v5  ;;  %4740 = vmatpush3.msra.mxu1 %v3230_v47  ;;  %v3650_v5 = vld [vmem:[%s8779_s8 + $0x360] sm:$0xff] }
 0x358   :  { %4741 = vmatprep.subr.mxu1 %v3245_v41  ;;  %4711 = vmatprep.subr.mxu0 %v3270_v31 }
 0x359   :  { %4742 = vmatpush3.msra.mxu1 %v3229_v38  ;;  %4712 = vmatpush3.msra.mxu0 %v3254_v59  ;;  %v3506_v38 = vld [vmem:[%s8779_s8 + $0x278] sm:$0xff]  ;;  %v3517_v59 = vld [vmem:[%s8779_s8 + $0x2d0] sm:$0xff] }
 0x35a   :  { %3205 = vmatmul.mubr.f32.gmra.mxu1 %v3088_v0  ;;  %4743 = vmatprep.subr.mxu1 %v3244_v42  ;;  %v3665_v0 = vld [vmem:[%s8779_s8 + $0x3d8] sm:$0xff]  ;;  %v3095_v42 = vld [vmem:[%s8778_s7 + $0x28] sm:$0xff] }
 0x35b   :  { %4744 = vmatpush3.msra.mxu1 %v3228_v13  ;;  %4713 = vmatprep.subr.mxu0 %v3269_v15  ;;  %v3645_v15 = vld [vmem:[%s8779_s8 + $0x338] sm:$0xff] }
 0x35c   :  { %4745 = vmatprep.subr.mxu1 %v3243_v20  ;;  %4714 = vmatpush3.msra.mxu0 %v3253_v54 }
 0x35d   :  { %4746 = vmatpush3.msra.mxu1 %v3227_v58  ;;  %4771 = vmatprep.subr.mxu0 %v3522_v9  ;;  %v3521_v58 = vld [vmem:[%s8779_s8 + $0x2f0] sm:$0xff] }
 0x35e   :  { %4747 = vmatprep.subr.mxu1 %v3242_v48  ;;  %v3649_v48 = vld [vmem:[%s8779_s8 + $0x358] sm:$0xff] }
 0x35f   :  { %4748 = vmatpush3.msra.mxu1 %v3226_v23  ;;  %v3505_v23 = vld [vmem:[%s8779_s8 + $0x270] sm:$0xff] }
 0x360   :  { %4749 = vmatprep.subr.mxu1 %v3241_v36  ;;  %v3664_v36 = vld [vmem:[%s8779_s8 + $0x3d0] sm:$0xff] }
 0x361   :  { %4750 = vmatpush3.msra.mxu1 %v3225_v34  ;;  %v3520_v34 = vld [vmem:[%s8779_s8 + $0x2e8] sm:$0xff] }
 0x362   :  { %4751 = vmatprep.subr.mxu1 %v3240_v11  ;;  %v3648_v11 = vld [vmem:[%s8779_s8 + $0x350] sm:$0xff] }
 0x363   :  { %4752 = vmatpush3.msra.mxu1 %v3224_v12  ;;  %v3504_v12 = vld [vmem:[%s8779_s8 + $0x268] sm:$0xff] }
 0x364   :  { %4753 = vmatprep.subr.mxu1 %v3239_v29  ;;  %v3094_v29 = vld [vmem:[%s8778_s7 + $0x20] sm:$0xff] }
 0x365   :  { %4754 = vmatpush3.msra.mxu1 %v3223_v27  ;;  %v3519_v27 = vld [vmem:[%s8779_s8 + $0x2e0] sm:$0xff] }
 0x366   :  { %4755 = vmatprep.subr.mxu1 %v3238_v55  ;;  %v3503_v55 = vld [vmem:[%s8779_s8 + $0x260] sm:$0xff] }
 0x367   :  { %4756 = vmatpush3.msra.mxu1 %v3222_v51  ;;  %v3097_v51 = vld [vmem:[%s8778_s7 + $0x38] sm:$0xff] }
 0x368   :  { %4757 = vmatprep.subr.mxu1 %v3237_v32 }
 0x369   :  { %4758 = vmatpush3.msra.mxu1 %v3221_v7  ;;  %v3646_v7 = vld [vmem:[%s8779_s8 + $0x340] sm:$0xff] }
 0x36a   :  { %4815 = vmatprep.subr.mxu1 %v3669_v18  ;;  %v3502_v18 = vld [vmem:[%s8779_s8 + $0x258] sm:$0xff] }
 0x40a   :  { %v3182_v35 = vpop.f32.mrf.mxu1 }
 0x40b   :  { %v3183_v37 = vadd.f32 %v3182_v35, %v3090_v46  ;;  %v3501_v46 = vld [vmem:[%s8779_s8 + $0x250] sm:$0xff] }
 0x40c   :  { %v3184_v19 = vpop.f32.mrf.mxu1  ;;  %v3660_v35 = vld [vmem:[%s8779_s8 + $0x3b0] sm:$0xff] }
 0x40d   :  { %v3185_v50 = vadd.f32 %v3184_v19, %v3091_v62  ;;  %v8069_v8 = vmax.f32 %v3183_v37, 0.0  ;;  %v3516_v19 = vld [vmem:[%s8779_s8 + $0x2c8] sm:$0xff] }
 0x40e   :  { %v3188_v6 = vpop.f32.mrf.mxu1 }
 0x40f   :  { %v8067_v56 = vmax.f32 %v3185_v50, 0.0  ;;  %v3189_v45 = vadd.f32 %v3188_v6, %v3092_v2  ;;  %v3295_v47 = vrot.slane %v8069_v8, 1  ;;  %v3817_v9 = vrot.slane %v8069_v8, 4  ;;  %v3644_v2 = vld [vmem:[%s8779_s8 + $0x330] sm:$0xff] }
 0x410   :  { %v3190_v30 = vpop.f32.mrf.mxu1 }
 0x411   :  { %v8074_v17 = vmax.f32 %v3189_v45, 0.0  ;;  %v3191_v57 = vadd.f32 %v3190_v30, %v3093_v61  ;;  %3470 = vmatprep.mubr.f32.mxu1 %v8067_v56  ;;  %v3298_v49 = vrot.slane %v8067_v56, 1  ;;  %v3500_v61 = vld [vmem:[%s8779_s8 + $0x248] sm:$0xff] }
 0x412   :  { %3471 = vmatmul.mubr.f32.vlgmr.msra.gmra.mxu1 %v8069_v8  ;;  %v3194_v25 = vpop.f32.mrf.mxu1  ;;  %v3659_v45 = vld [vmem:[%s8779_s8 + $0x3a8] sm:$0xff] }
 0x413   :  { %v8084_v1 = vmax.f32 %v3191_v57, 0.0  ;;  %4816 = vmatpush3.msra.mxu1 %v3653_v44  ;;  %v3296_v63 = vrot.slane %v8074_v17, 1  ;;  %v3195_v28 = vadd.f32 %v3194_v25, %v3094_v29  ;;  %v3818_v21 = vrot.slane %v8074_v17, 4  ;;  %v3099_v30 = vld [vmem:[%s8778_s7 + $0x48] sm:$0xff]  ;;  %v3098_v25 = vld [vmem:[%s8778_s7 + $0x40] sm:$0xff] }
 0x414   :  { %4817 = vmatprep.subr.mxu1 %v3668_v60  ;;  %v3196_v33 = vpop.f32.mrf.mxu1  ;;  %v3515_v60 = vld [vmem:[%s8779_s8 + $0x2c0] sm:$0xff] }
 0x415   :  { %4818 = vmatpush3.msra.mxu1 %v3652_v4  ;;  %v3299_v14 = vrot.slane %v8084_v1, 1  ;;  %3475 = vmatprep.mubr.f32.mxu1 %v8084_v1  ;;  %v3297_v20 = vsel %vm973_vm3, %v3295_v47, %v3296_v63  ;;  %v3197_v26 = vadd.f32 %v3196_v33, %v3095_v42  ;;  %v8192_v62 = vmax.f32 %v3195_v28, 0.0  ;;  %v3643_v4 = vld [vmem:[%s8779_s8 + $0x328] sm:$0xff]  ;;  %v3514_v47 = vld [vmem:[%s8779_s8 + $0x2b8] sm:$0xff]  ;;  %v3654_v28 = vld [vmem:[%s8779_s8 + $0x380] sm:$0xff] }
 0x416   :  { %4819 = vmatprep.subr.mxu1 %v3667_v10  ;;  %3476 = vmatmul.mubr.f32.gmra.mxu1 %v8074_v17  ;;  %v3200_v13 = vpop.f32.mrf.mxu1  ;;  %v8204_v6 = vsel %vm2128_vm6, %v3817_v9, %v3818_v21  ;;  %v3499_v10 = vld [vmem:[%s8779_s8 + $0x240] sm:$0xff]  ;;  %v3657_v42 = vld [vmem:[%s8779_s8 + $0x398] sm:$0xff] }
 0x417   :  { %4820 = vmatpush3.msra.mxu1 %v3651_v53  ;;  %v3300_v41 = vsel %vm973_vm3, %v3298_v49, %v3299_v14  ;;  %v8161_v32 = vmax.f32 %v3197_v26, 0.0  ;;  %v3201_v37 = vadd.f32 %v3200_v13, %v3096_v3  ;;  %v3658_v53 = vld [vmem:[%s8779_s8 + $0x3a0] sm:$0xff]  ;;  %v3512_v26 = vld [vmem:[%s8779_s8 + $0x2a8] sm:$0xff] }
 0x418   :  { %4821 = vmatprep.subr.mxu1 %v3666_v52  ;;  %3385 = vmatprep.mubr.f32.mxu0 %v3300_v41  ;;  %v3202_v43 = vpop.f32.mrf.mxu1  ;;  %v3642_v41 = vld [vmem:[%s8779_s8 + $0x320] sm:$0xff] }
 0x419   :  { %4822 = vmatpush3.msra.mxu1 %v3650_v5  ;;  %3386 = vmatmul.mubr.f32.vlgmr.msra.gmra.mxu0 %v3297_v20  ;;  %v3203_v54 = vadd.f32 %v3202_v43, %v3097_v51  ;;  %v3303_v50 = vrot.slane %v8161_v32, 1  ;;  %v8232_v33 = vmax.f32 %v3201_v37, 0.0  ;;  %v3301_v5 = vrot.slane %v8192_v62, 1  ;;  %v3496_v43 = vld [vmem:[%s8779_s8 + $0x228] sm:$0xff]  ;;  %v3495_v51 = vld [vmem:[%s8779_s8 + $0x220] sm:$0xff] }
 0x41a   :  { %4772 = vmatpush3.msra.mxu0 %v3506_v38  ;;  %4823 = vmatprep.subr.mxu1 %v3665_v0  ;;  %v3206_v31 = vpop.f32.mrf.mxu1  ;;  %v3638_v3 = vld [vmem:[%s8779_s8 + $0x300] sm:$0xff]  ;;  %v3678_v9 = vrot.slane %v8161_v32, 3  ;;  %v3526_v37 = vrot.slane %v8067_v56, 2 }
 0x41b   :  { %4773 = vmatprep.subr.mxu0 %v3521_v58  ;;  %4824 = vmatpush3.msra.mxu1 %v3649_v48  ;;  %v8215_v57 = vmax.f32 %v3203_v54, 0.0  ;;  %v3304_v49 = vsel %vm973_vm3, %v3299_v14, %v3303_v50  ;;  %v3207_v38 = vadd.f32 %v3206_v31, %v3098_v25  ;;  %v3498_v14 = vld [vmem:[%s8779_s8 + $0x238] sm:$0xff]  ;;  %v3302_v20 = vsel %vm973_vm3, %v3296_v63, %v3301_v5  ;;  %v3513_v58 = vld [vmem:[%s8779_s8 + $0x2b0] sm:$0xff] }
 0x41c   :  { %4774 = vmatpush3.msra.mxu0 %v3505_v23  ;;  %4825 = vmatprep.subr.mxu1 %v3664_v36  ;;  %v3208_v44 = vpop.f32.mrf.mxu1  ;;  %v3641_v48 = vld [vmem:[%s8779_s8 + $0x318] sm:$0xff]  ;;  %v3305_v23 = vrot.slane %v8232_v33, 1  ;;  %v3497_v36 = vld [vmem:[%s8779_s8 + $0x230] sm:$0xff]  ;;  %v3673_v31 = vrot.slane %v8067_v56, 3  ;;  %v3670_v54 = vrot.slane %v8069_v8, 3 }
 0x41d   :  { %4775 = vmatprep.subr.mxu0 %v3520_v34  ;;  %4826 = vmatpush3.msra.mxu1 %v3648_v11  ;;  %v3209_v52 = vadd.f32 %v3208_v44, %v3099_v30  ;;  %v3307_v0 = vrot.slane %v8215_v57, 1  ;;  %v3656_v63 = vld [vmem:[%s8779_s8 + $0x390] sm:$0xff]  ;;  %v8271_v34 = vmax.f32 %v3207_v38, 0.0  ;;  %v3682_v30 = vrot.slane %v8215_v57, 3  ;;  %v3508_v44 = vld [vmem:[%s8779_s8 + $0x288] sm:$0xff]  ;;  %v3816_v38 = vld [vmem:[%s8779_s8 + $0x4f8] sm:$0xff] }
 0x41e   :  { %4776 = vmatpush3.msra.mxu0 %v3504_v12  ;;  %4827 = vmatprep.subr.mxu1 %v3663_v22  ;;  %v3640_v12 = vld [vmem:[%s8779_s8 + $0x310] sm:$0xff]  ;;  %v3306_v22 = vsel %vm973_vm3, %v3301_v5, %v3305_v23  ;;  %v3531_v5 = vrot.slane %v8161_v32, 2 }
 0x41f   :  { %4777 = vmatprep.subr.mxu0 %v3519_v27  ;;  %4828 = vmatpush3.msra.mxu1 %v3647_v40  ;;  %v8252_v13 = vmax.f32 %v3209_v52, 0.0  ;;  %v3308_v11 = vsel %vm973_vm3, %v3303_v50, %v3307_v0  ;;  %v3655_v27 = vld [vmem:[%s8779_s8 + $0x388] sm:$0xff]  ;;  %v3511_v40 = vld [vmem:[%s8779_s8 + $0x2a0] sm:$0xff]  ;;  %v3676_v50 = vrot.slane %v8192_v62, 3  ;;  %v9113_v52 = vmov 0.0  }
 0x420   :  { %4778 = vmatpush3.msra.mxu0 %v3503_v55  ;;  %4829 = vmatprep.subr.mxu1 %v3662_v39  ;;  %v3639_v55 = vld [vmem:[%s8779_s8 + $0x308] sm:$0xff]  ;;  %v3309_v39 = vrot.slane %v8271_v34, 1 }
 0x421   :  { %4779 = vmatprep.subr.mxu0 %v3518_v24  ;;  %4830 = vmatpush3.msra.mxu1 %v3646_v7  ;;  %v3311_v29 = vrot.slane %v8252_v13, 1  ;;  %v3674_v24 = vrot.slane %v8084_v1, 3 }
 0x422   :  { %4780 = vmatpush3.msra.mxu0 %v3502_v18  ;;  %4831 = vmatprep.subr.mxu1 %v3661_v16  ;;  %v3510_v18 = vld [vmem:[%s8779_s8 + $0x298] sm:$0xff]  ;;  %v3671_v16 = vrot.slane %v8074_v17, 3 }
 0x423   :  { %4781 = vmatprep.subr.mxu0 %v3517_v59  ;;  %4832 = vmatpush3.msra.mxu1 %v3645_v15  ;;  %v3312_v7 = vsel %vm973_vm3, %v3307_v0, %v3311_v29  ;;  %v3527_v59 = vrot.slane %v8084_v1, 2  ;;  %v3310_v15 = vsel %vm973_vm3, %v3305_v23, %v3309_v39  ;;  %v3680_v0 = vrot.slane %v8232_v33, 3  ;;  %v3799_v23 = vld [vmem:[%s8779_s8 + $0x470] sm:$0xff] }
 0x424   :  { %4782 = vmatpush3.msra.mxu0 %v3501_v46  ;;  %4833 = vmatprep.subr.mxu1 %v3660_v35  ;;  %v3675_v46 = vsel %vm1805_vm7, %v3673_v31, %v3674_v24  ;;  %v3494_v35 = vld [vmem:[%s8779_s8 + $0x218] sm:$0xff]  ;;  %v3677_v25 = vsel %vm1805_vm7, %v3671_v16, %v3676_v50  ;;  %v3539_v39 = vrot.slane %v8252_v13, 2  ;;  %v3795_v31 = vld [vmem:[%s8779_s8 + $0x450] sm:$0xff] }
 0x425   :  { %4783 = vmatprep.subr.mxu0 %v3516_v19  ;;  %4834 = vmatpush3.msra.mxu1 %v3644_v2  ;;  %v3672_v19 = vsel %vm1805_vm7, %v3670_v54, %v3671_v16  ;;  %v3509_v2 = vld [vmem:[%s8779_s8 + $0x290] sm:$0xff]  ;;  %v3537_v16 = vrot.slane %v8271_v34, 2  ;;  %v3794_v54 = vld [vmem:[%s8779_s8 + $0x448] sm:$0xff] }
 0x426   :  { %4784 = vmatpush3.msra.mxu0 %v3500_v61  ;;  %4835 = vmatprep.subr.mxu1 %v3659_v45  ;;  %v3528_v61 = vsel %vm1482_vm5, %v3526_v37, %v3527_v59  ;;  %v3493_v45 = vld [vmem:[%s8779_s8 + $0x210] sm:$0xff]  ;;  %v3793_v37 = vld [vmem:[%s8779_s8 + $0x440] sm:$0xff] }
 0x427   :  { %4785 = vmatprep.subr.mxu0 %v3515_v60  ;;  %4836 = vmatpush3.msra.mxu1 %v3643_v4  ;;  %v3679_v60 = vsel %vm1805_vm7, %v3674_v24, %v3678_v9  ;;  %v3492_v4 = vld [vmem:[%s8779_s8 + $0x208] sm:$0xff]  ;;  %v3796_v24 = vld [vmem:[%s8779_s8 + $0x458] sm:$0xff] }
 0x428   :  { %4786 = vmatpush3.msra.mxu0 %v3499_v10  ;;  %4837 = vmatprep.subr.mxu1 %v3658_v53  ;;  %v3507_v10 = vld [vmem:[%s8779_s8 + $0x280] sm:$0xff]  ;;  %v3524_v53 = vrot.slane %v8074_v17, 2 }
 0x429   :  { %3390 = vmatprep.mubr.f32.mxu0 %v3304_v49  ;;  %3480 = vmatprep.mubr.f32.mxu1 %v8161_v32  ;;  %v3491_v49 = vld [vmem:[%s8779_s8 + $0x200] sm:$0xff] }
 0x42a   :  { %4787 = vmatprep.subr.mxu0 %v3514_v47  ;;  %4838 = vmatpush3.msra.mxu1 %v3642_v41  ;;  %v3683_v47 = vsel %vm1805_vm7, %v3678_v9, %v3682_v30  ;;  %v3523_v41 = vrot.slane %v8069_v8, 2  ;;  %v3815_v8 = vld [vmem:[%s8779_s8 + $0x4f0] sm:$0xff]  ;;  %v3820_v9 = vrot.slane %v8067_v56, 4  ;;  %v3808_v56 = vld [vmem:[%s8779_s8 + $0x4b8] sm:$0xff] }
 0x42b   :  { %3391 = vmatmul.mubr.f32.gmra.mxu0 %v3302_v20  ;;  %3481 = vmatmul.mubr.f32.gmra.mxu1 %v8192_v62 }
 0x42c   :  { %4788 = vmatpush3.msra.mxu0 %v3498_v14  ;;  %4839 = vmatprep.subr.mxu1 %v3657_v42  ;;  %v3800_v14 = vld [vmem:[%s8779_s8 + $0x478] sm:$0xff]  ;;  %v3686_v42 = vrot.slane %v8252_v13, 3  ;;  %v3525_v20 = vsel %vm1482_vm5, %v3523_v41, %v3524_v53  ;;  %v3825_v41 = vrot.slane %v8161_v32, 4  ;;  %v3827_v32 = vrot.slane %v8232_v33, 4 }
 0x42d   :  { %4789 = vmatprep.subr.mxu0 %v3513_v58  ;;  %4840 = vmatpush3.msra.mxu1 %v3641_v48  ;;  %v3529_v58 = vrot.slane %v8192_v62, 2  ;;  %v3532_v48 = vsel %vm1482_vm5, %v3527_v59, %v3531_v5  ;;  %v3821_v59 = vrot.slane %v8084_v1, 4  ;;  %v3809_v1 = vld [vmem:[%s8779_s8 + $0x4c0] sm:$0xff] }
 0x42e   :  { %4790 = vmatpush3.msra.mxu0 %v3497_v36  ;;  %4841 = vmatprep.subr.mxu1 %v3656_v63  ;;  %v3535_v36 = vrot.slane %v8215_v57, 2  ;;  %v3814_v63 = vld [vmem:[%s8779_s8 + $0x4e8] sm:$0xff] }
 0x42f   :  { %3395 = vmatprep.mubr.f32.mxu0 %v3308_v11  ;;  %3485 = vmatprep.mubr.f32.mxu1 %v8215_v57  ;;  %v3681_v11 = vsel %vm1805_vm7, %v3676_v50, %v3680_v0  ;;  %v3530_v29 = vsel %vm1482_vm5, %v3524_v53, %v3529_v58  ;;  %v3791_v50 = vld [vmem:[%s8779_s8 + $0x430] sm:$0xff]  ;;  %v3802_v53 = vld [vmem:[%s8779_s8 + $0x488] sm:$0xff] }
 0x430   :  { %4791 = vmatprep.subr.mxu0 %v3512_v26  ;;  %4842 = vmatpush3.msra.mxu1 %v3640_v12  ;;  %v3684_v26 = vrot.slane %v8271_v34, 3  ;;  %v3798_v12 = vld [vmem:[%s8779_s8 + $0x468] sm:$0xff] }
 0x431   :  { %3396 = vmatmul.mubr.f32.gmra.mxu0 %v3306_v22  ;;  %3486 = vmatmul.mubr.f32.gmra.mxu1 %v8232_v33  ;;  %v3687_v22 = vsel %vm1805_vm7, %v3682_v30, %v3686_v42  ;;  %v3805_v30 = vld [vmem:[%s8779_s8 + $0x4a0] sm:$0xff] }
 0x432   :  { %4792 = vmatpush3.msra.mxu0 %v3496_v43  ;;  %4843 = vmatprep.subr.mxu1 %v3655_v27  ;;  %v3813_v43 = vld [vmem:[%s8779_s8 + $0x4e0] sm:$0xff]  ;;  %v3533_v27 = vrot.slane %v8232_v33, 2 }
 0x433   :  { %4793 = vmatprep.subr.mxu0 %v3511_v40  ;;  %4844 = vmatpush3.msra.mxu1 %v3639_v55  ;;  %v3536_v40 = vsel %vm1482_vm5, %v3531_v5, %v3535_v36  ;;  %v3797_v55 = vld [vmem:[%s8779_s8 + $0x460] sm:$0xff] }
 0x434   :  { %4794 = vmatpush3.msra.mxu0 %v3495_v51  ;;  %4845 = vmatprep.subr.mxu1 %v3654_v28  ;;  %v3812_v51 = vld [vmem:[%s8779_s8 + $0x4d8] sm:$0xff]  ;;  %v3685_v28 = vsel %vm1805_vm7, %v3680_v0, %v3684_v26  ;;  %v3801_v5 = vld [vmem:[%s8779_s8 + $0x480] sm:$0xff]  ;;  %v3826_v0 = vsel %vm2128_vm6, %v3821_v59, %v3825_v41 }
 0x435   :  { %3400 = vmatprep.mubr.f32.mxu0 %v3312_v7  ;;  %4795 = vmatprep.subr.mxu0 %v3510_v18  ;;  %v3534_v7 = vsel %vm1482_vm5, %v3529_v58, %v3533_v27  ;;  %v3811_v18 = vld [vmem:[%s8779_s8 + $0x4d0] sm:$0xff] }
 0x436   :  { %4846 = vmatpush3.msra.mxu1 %v3638_v3  ;;  %3760 = vmatprep.mubr.f32.mxu1 %v3675_v46  ;;  %v3540_v3 = vsel %vm1482_vm5, %v3535_v36, %v3539_v39  ;;  %v3538_v46 = vsel %vm1482_vm5, %v3533_v27, %v3537_v16 }
 0x437   :  { %3401 = vmatmul.mubr.f32.gmra.mxu0 %v3310_v15  ;;  %3761 = vmatmul.mubr.f32.vlgmr.msra.gmra.mxu1 %v3672_v19  ;;  %v3810_v15 = vld [vmem:[%s8779_s8 + $0x4c8] sm:$0xff]  ;;  %v3792_v19 = vld [vmem:[%s8779_s8 + $0x438] sm:$0xff] }
 0x438   :  { %4796 = vmatpush3.msra.mxu0 %v3494_v35  ;;  %3613 = vmatprep.mubr.f32.mxu0 %v3528_v61  ;;  %v3822_v35 = vsel %vm2128_vm6, %v3820_v9, %v3821_v59  ;;  %v3806_v61 = vld [vmem:[%s8779_s8 + $0x4a8] sm:$0xff] }
 0x439   :  { %4797 = vmatprep.subr.mxu0 %v3509_v2  ;;  %3765 = vmatprep.mubr.f32.mxu1 %v3679_v60  ;;  %v3807_v2 = vld [vmem:[%s8779_s8 + $0x4b0] sm:$0xff]  ;;  %v3804_v60 = vld [vmem:[%s8779_s8 + $0x498] sm:$0xff] }
 0x43a   :  { %4798 = vmatpush3.msra.mxu0 %v3493_v45  ;;  %5183 = vmatprep.subr.mxu1 %v9113_v52  ;;  %v3790_v45 = vld [vmem:[%s8779_s8 + $0x428] sm:$0xff] }
 0x43b   :  { %4799 = vmatprep.subr.mxu0 %v3508_v44  ;;  %3766 = vmatmul.mubr.f32.gmra.mxu1 %v3677_v25  ;;  %v3789_v44 = vld [vmem:[%s8779_s8 + $0x420] sm:$0xff]  ;;  %v3803_v25 = vld [vmem:[%s8779_s8 + $0x490] sm:$0xff] }
 0x43c   :  { %4800 = vmatpush3.msra.mxu0 %v3492_v4  ;;  %3770 = vmatprep.mubr.f32.mxu1 %v3683_v47  ;;  %v3788_v4 = vld [vmem:[%s8779_s8 + $0x418] sm:$0xff]  ;;  %v3785_v47 = vld [vmem:[%s8779_s8 + $0x400] sm:$0xff] }
 0x43d   :  { %4801 = vmatprep.subr.mxu0 %v3507_v10  ;;  %v3787_v10 = vld [vmem:[%s8779_s8 + $0x410] sm:$0xff] }
 0x43e   :  { %4802 = vmatpush3.msra.mxu0 %v3491_v49  ;;  %v3786_v49 = vld [vmem:[%s8779_s8 + $0x408] sm:$0xff] }
 0x43f   :  { %3614 = vmatmul.mubr.f32.vlgmr.msra.gmra.mxu0 %v3525_v20  ;;  %4859 = vmatprep.subr.mxu0 %v3816_v38  ;;  %v3823_v38 = vrot.slane %v8192_v62, 4  ;;  %v3833_v62 = vrot.slane %v8252_v13, 4 }
 0x440   :  { %3618 = vmatprep.mubr.f32.mxu0 %v3532_v48  ;;  %4860 = vmatpush3.msra.mxu0 %v3800_v14  ;;  %v3829_v14 = vrot.slane %v8215_v57, 4 }
 0x441   :  { %4861 = vmatprep.subr.mxu0 %v3815_v8  ;;  %3771 = vmatmul.mubr.f32.gmra.mxu1 %v3681_v11  ;;  %v3824_v42 = vsel %vm2128_vm6, %v3818_v21, %v3823_v38  ;;  %v3831_v8 = vrot.slane %v8271_v34, 4 }
 0x442   :  { %4862 = vmatpush3.msra.mxu0 %v3799_v23  ;;  %3775 = vmatprep.mubr.f32.mxu1 %v3687_v22  ;;  %v3830_v20 = vsel %vm2128_vm6, %v3825_v41, %v3829_v14  ;;  %v3834_v57 = vsel %vm2128_vm6, %v3829_v14, %v3833_v62 }
 0x443   :  { %3619 = vmatmul.mubr.f32.gmra.mxu0 %v3530_v29  ;;  %4863 = vmatprep.subr.mxu0 %v3814_v63  ;;  %v3832_v17 = vsel %vm2128_vm6, %v3827_v32, %v3831_v8 }
 0x444   :  { %4864 = vmatpush3.msra.mxu0 %v3798_v12  ;;  %3623 = vmatprep.mubr.f32.mxu0 %v3536_v40 }
 0x445   :  { %4865 = vmatprep.subr.mxu0 %v3813_v43  ;;  %3776 = vmatmul.mubr.f32.gmra.mxu1 %v3685_v28 }
 0x446   :  { %4866 = vmatpush3.msra.mxu0 %v3797_v55  ;;  %5191 = vmatprep.mubr.msk.f32.mxu1 %vm5370_vm1, %v9113_v52 }
 0x447   :  { %3624 = vmatmul.mubr.f32.gmra.mxu0 %v3534_v7  ;;  %4867 = vmatprep.subr.mxu0 %v3812_v51 }
 0x448   :  { %4868 = vmatpush3.msra.mxu0 %v3796_v24  ;;  %3628 = vmatprep.mubr.f32.mxu0 %v3540_v3 }
 0x449   :  { %4869 = vmatprep.subr.mxu0 %v3811_v18 }
 0x44a   :  { %4870 = vmatpush3.msra.mxu0 %v3795_v31 }
 0x44b   :  { %3629 = vmatmul.mubr.f32.gmra.mxu0 %v3538_v46  ;;  %4871 = vmatprep.subr.mxu0 %v3810_v15 }
 0x44c   :  { %4872 = vmatpush3.msra.mxu0 %v3794_v54  ;;  %3907 = vmatprep.mubr.f32.mxu0 %v3822_v35 }
 0x44d   :  { %4873 = vmatprep.subr.mxu0 %v3809_v1 }
 0x44e   :  { %4874 = vmatpush3.msra.mxu0 %v3793_v37 }
 0x44f   :  { %4875 = vmatprep.subr.mxu0 %v3808_v56 }
 0x450   :  { %4876 = vmatpush3.msra.mxu0 %v3792_v19 }
 0x451   :  { %4877 = vmatprep.subr.mxu0 %v3807_v2 }
 0x452   :  { %4878 = vmatpush3.msra.mxu0 %v3791_v50 }
 0x453   :  { %4879 = vmatprep.subr.mxu0 %v3806_v61 }
 0x454   :  { %4880 = vmatpush3.msra.mxu0 %v3790_v45 }
 0x455   :  { %4881 = vmatprep.subr.mxu0 %v3805_v30 }
 0x456   :  { %4882 = vmatpush3.msra.mxu0 %v3789_v44 }
 0x457   :  { %4883 = vmatprep.subr.mxu0 %v3804_v60 }
 0x458   :  { %4884 = vmatpush3.msra.mxu0 %v3788_v4 }
 0x459   :  { %4885 = vmatprep.subr.mxu0 %v3803_v25 }
 0x45a   :  { %4886 = vmatpush3.msra.mxu0 %v3787_v10 }
 0x45b   :  { %4887 = vmatprep.subr.mxu0 %v3802_v53 }
 0x45c   :  { %4888 = vmatpush3.msra.mxu0 %v3786_v49 }
 0x45d   :  { %4889 = vmatprep.subr.mxu0 %v3801_v5 }
 0x45e   :  { %4890 = vmatpush3.msra.mxu0 %v3785_v47 }
 0x45f   :  { %3908 = vmatmul.mubr.f32.vlgmr.msra.gmra.mxu0 %v8204_v6  ;;  %5194 = vmatprep.subr.mxu0 %v9113_v52  ;;  %v3828_v6 = vsel %vm2128_vm6, %v3823_v38, %v3827_v32 }
 0x460   :  { %3912 = vmatprep.mubr.f32.mxu0 %v3826_v0 }
 0x463   :  { %3913 = vmatmul.mubr.f32.gmra.mxu0 %v3824_v42 }
 0x464   :  { %3917 = vmatprep.mubr.f32.mxu0 %v3830_v20 }
 0x467   :  { %3918 = vmatmul.mubr.f32.gmra.mxu0 %v3828_v6 }
 0x468   :  { %3922 = vmatprep.mubr.f32.mxu0 %v3834_v57 }
 0x46b   :  { %3923 = vmatmul.mubr.f32.gmra.mxu0 %v3832_v17 }
 0x46c   :  { %5226 = vmatprep.mubr.msk.f32.mxu0 %vm5370_vm1, %v9113_v52 }
 0x4d2   :  { %v4759_v48 = vpop.f32.mrf.mxu1 }
 0x4d4   :  { %v4760_v36 = vpop.f32.mrf.mxu1 }
 0x4d5   :  { %v4761_v41 = vadd.f32 %v4760_v36, %v4759_v48 }
 0x4d6   :  { %v4762_v11 = vpop.f32.mrf.mxu1 }
 0x4d8   :  { %v4763_v26 = vpop.f32.mrf.mxu1 }
 0x4d9   :  { %v4715_v21 = vpop.f32.mrf.mxu0  ;;  %v4764_v53 = vadd.f32 %v4763_v26, %v4762_v11 }
 0x4db   :  { %v4716_v33 = vpop.f32.mrf.mxu0 }
 0x4dc   :  { %v4717_v4 = vadd.f32 %v4716_v33, %v4715_v21 }
 0x4de   :  { %v3473_v20 = vadd.f32 %v4761_v41, %v4717_v4  ;;  %v4026_v4 = vld [vmem:[%s8782_s11] sm:$0xff] }
 0x4eb   :  { %v4718_v58 = vpop.f32.mrf.mxu0  ;;  %v4765_v12 = vpop.f32.mrf.mxu1 }
 0x4ed   :  { %v4719_v13 = vpop.f32.mrf.mxu0  ;;  %v4766_v43 = vpop.f32.mrf.mxu1 }
 0x4ee   :  { %v4767_v2 = vadd.f32 %v4766_v43, %v4765_v12  ;;  %v4720_v30 = vadd.f32 %v4719_v13, %v4718_v58  ;;  %v4041_v43 = vld [vmem:[%s8782_s11 + $0x78] sm:$0xff] }
 0x4ef   :  { %5195 = vmatpush3.msra.mxu0 %v4041_v43  ;;  %v4208_v43 = vld [vmem:[%s8782_s11 + $0x128] sm:$0xff] }
 0x4f0   :  { %v3478_v0 = vadd.f32 %v4764_v53, %v4720_v30  ;;  %5196 = vmatprep.subr.mxu0 %v9113_v52  ;;  %v4115_v30 = vld [vmem:[%s8782_s11 + $0x90] sm:$0xff] }
 0x4f1   :  { %v4721_v23 = vpop.f32.mrf.mxu0  ;;  %v4768_v40 = vpop.f32.mrf.mxu1 }
 0x4f3   :  { %v4722_v63 = vpop.f32.mrf.mxu0  ;;  %v4769_v39 = vpop.f32.mrf.mxu1 }
 0x4f4   :  { %v4770_v35 = vadd.f32 %v4769_v39, %v4768_v40  ;;  %v4723_v50 = vadd.f32 %v4722_v63, %v4721_v23  ;;  %v4040_v40 = vld [vmem:[%s8782_s11 + $0x70] sm:$0xff]  ;;  %v4039_v39 = vld [vmem:[%s8782_s11 + $0x68] sm:$0xff] }
 0x4f5   :  { %5197 = vmatpush3.msra.mxu0 %v4040_v40  ;;  %v4207_v40 = vld [vmem:[%s8782_s11 + $0x120] sm:$0xff] }
 0x4f6   :  { %v3483_v49 = vadd.f32 %v4767_v2, %v4723_v50  ;;  %5198 = vmatprep.subr.mxu0 %v9113_v52  ;;  %v4117_v2 = vld [vmem:[%s8782_s11 + $0xa0] sm:$0xff]  ;;  %v4029_v50 = vld [vmem:[%s8782_s11 + $0x18] sm:$0xff] }
 0x4f7   :  { %v4724_v34 = vpop.f32.mrf.mxu0  ;;  %v4847_v51 = vpop.f32.mrf.mxu1  ;;  %5199 = vmatpush3.msra.mxu0 %v4039_v39  ;;  %v4206_v39 = vld [vmem:[%s8782_s11 + $0x118] sm:$0xff] }
 0x4f8   :  { %5200 = vmatprep.subr.mxu0 %v9113_v52 }
 0x4f9   :  { %v4725_v22 = vpop.f32.mrf.mxu0  ;;  %v4848_v24 = vpop.f32.mrf.mxu1 }
 0x4fa   :  { %v4726_v37 = vadd.f32 %v4725_v22, %v4724_v34  ;;  %v4849_v11 = vadd.f32 %v4848_v24, %v4847_v51  ;;  %v4126_v51 = vld [vmem:[%s8782_s11 + $0xe8] sm:$0xff]  ;;  %v4125_v24 = vld [vmem:[%s8782_s11 + $0xe0] sm:$0xff] }
 0x4fb   :  { %v4850_v18 = vpop.f32.mrf.mxu1 }
 0x4fc   :  { %v3488_v44 = vadd.f32 %v4770_v35, %v4726_v37  ;;  %v4119_v35 = vld [vmem:[%s8782_s11 + $0xb0] sm:$0xff]  ;;  %v4031_v37 = vld [vmem:[%s8782_s11 + $0x28] sm:$0xff] }
 0x4fd   :  { %v4851_v3 = vpop.f32.mrf.mxu1 }
 0x4fe   :  { %v4852_v21 = vadd.f32 %v4851_v3, %v4850_v18  ;;  %v4124_v18 = vld [vmem:[%s8782_s11 + $0xd8] sm:$0xff]  ;;  %v4123_v3 = vld [vmem:[%s8782_s11 + $0xd0] sm:$0xff] }
 0x4ff   :  { %v4803_v29 = vpop.f32.mrf.mxu0 }
 0x501   :  { %v4804_v27 = vpop.f32.mrf.mxu0  ;;  %v4853_v59 = vpop.f32.mrf.mxu1 }
 0x502   :  { %v4805_v14 = vadd.f32 %v4804_v27, %v4803_v29  ;;  %v3932_v29 = vld [vmem:[%s8780_s9] sm:$0xff]  ;;  %v4128_v27 = vld [vmem:[%s8782_s11 + $0xf8] sm:$0xff] }
 0x503   :  { %v4806_v55 = vpop.f32.mrf.mxu0  ;;  %v4854_v9 = vpop.f32.mrf.mxu1 }
 0x504   :  { %v4855_v62 = vadd.f32 %v4854_v9, %v4853_v59  ;;  %v3634_v33 = vadd.f32 %v4805_v14, %v3473_v20  ;;  %v4122_v59 = vld [vmem:[%s8782_s11 + $0xc8] sm:$0xff]  ;;  %v4033_v9 = vld [vmem:[%s8782_s11 + $0x38] sm:$0xff] }
 0x505   :  { %v4807_v28 = vpop.f32.mrf.mxu0  ;;  %v4856_v56 = vpop.f32.mrf.mxu1 }
 0x506   :  { %v4808_v5 = vadd.f32 %v4807_v28, %v4806_v55  ;;  %v3781_v26 = vadd.f32 %v4849_v11, %v3634_v33  ;;  %v4127_v55 = vld [vmem:[%s8782_s11 + $0xf0] sm:$0xff]  ;;  %v4038_v28 = vld [vmem:[%s8782_s11 + $0x60] sm:$0xff]  ;;  %v4214_v33 = vld [vmem:[%s8782_s11 + $0x158] sm:$0xff] }
 0x507   :  { %v4809_v7 = vpop.f32.mrf.mxu0  ;;  %v4857_v25 = vpop.f32.mrf.mxu1  ;;  %5201 = vmatpush3.msra.mxu0 %v4038_v28  ;;  %v4212_v11 = vld [vmem:[%s8782_s11 + $0x148] sm:$0xff]  ;;  %v4205_v28 = vld [vmem:[%s8782_s11 + $0x110] sm:$0xff] }
 0x508   :  { %v4858_v32 = vadd.f32 %v4857_v25, %v4856_v56  ;;  %v3635_v8 = vadd.f32 %v4808_v5, %v3478_v0  ;;  %5202 = vmatprep.subr.mxu0 %v9113_v52  ;;  %v4118_v56 = vld [vmem:[%s8782_s11 + $0xa8] sm:$0xff]  ;;  %v4113_v25 = vld [vmem:[%s8782_s11 + $0x80] sm:$0xff] }
 0x509   :  { %v4810_v16 = vpop.f32.mrf.mxu0 }
 0x50a   :  { %v4811_v60 = vadd.f32 %v4810_v16, %v4809_v7  ;;  %v3782_v48 = vadd.f32 %v4852_v21, %v3635_v8  ;;  %v4037_v7 = vld [vmem:[%s8782_s11 + $0x58] sm:$0xff]  ;;  %v4036_v16 = vld [vmem:[%s8782_s11 + $0x50] sm:$0xff]  ;;  %v4304_v21 = vld [vmem:[%s8782_s11 + $0x1e0] sm:$0xff] }
 0x50b   :  { %v4812_v31 = vpop.f32.mrf.mxu0  ;;  %5203 = vmatpush3.msra.mxu0 %v4037_v7  ;;  %v4306_v8 = vld [vmem:[%s8782_s11 + $0x1f0] sm:$0xff]  ;;  %v4204_v7 = vld [vmem:[%s8782_s11 + $0x108] sm:$0xff] }
 0x50c   :  { %v3636_v42 = vadd.f32 %v4811_v60, %v3483_v49  ;;  %5204 = vmatprep.subr.mxu0 %v9113_v52  ;;  %v4114_v60 = vld [vmem:[%s8782_s11 + $0x88] sm:$0xff] }
 0x50d   :  { %v4813_v15 = vpop.f32.mrf.mxu0  ;;  %5205 = vmatpush3.msra.mxu0 %v4036_v16  ;;  %v4203_v16 = vld [vmem:[%s8782_s11 + $0x100] sm:$0xff] }
 0x50e   :  { %v4814_v61 = vadd.f32 %v4813_v15, %v4812_v31  ;;  %v3783_v13 = vadd.f32 %v4855_v62, %v3636_v42  ;;  %v4035_v31 = vld [vmem:[%s8782_s11 + $0x48] sm:$0xff]  ;;  %5206 = vmatprep.subr.mxu0 %v9113_v52  ;;  %v4034_v15 = vld [vmem:[%s8782_s11 + $0x40] sm:$0xff]  ;;  %v4218_v42 = vld [vmem:[%s8782_s11 + $0x178] sm:$0xff] }
 0x50f   :  { %5207 = vmatpush3.msra.mxu0 %v4035_v31  ;;  %v4307_v62 = vld [vmem:[%s8782_s11 + $0x1f8] sm:$0xff] }
 0x510   :  { %v3637_v47 = vadd.f32 %v4814_v61, %v3488_v44  ;;  %5208 = vmatprep.subr.mxu0 %v9113_v52  ;;  %v4116_v61 = vld [vmem:[%s8782_s11 + $0x98] sm:$0xff]  ;;  %v4027_v44 = vld [vmem:[%s8782_s11 + $0x8] sm:$0xff] }
 0x511   :  { %5209 = vmatpush3.msra.mxu0 %v4034_v15 }
 0x512   :  { %v3784_v57 = vadd.f32 %v4858_v32, %v3637_v47  ;;  %5210 = vmatprep.subr.mxu0 %v9113_v52 }
 0x513   :  { %5211 = vmatpush3.msra.mxu0 %v4033_v9 }
 0x514   :  { %5212 = vmatprep.subr.mxu0 %v9113_v52 }
 0x51f   :  { %v4891_v54 = vpop.f32.mrf.mxu0 }
 0x521   :  { %v4892_v46 = vpop.f32.mrf.mxu0 }
 0x522   :  { %v4893_v34 = vadd.f32 %v4892_v46, %v4891_v54  ;;  %v4121_v54 = vld [vmem:[%s8782_s11 + $0xc0] sm:$0xff]  ;;  %v4120_v46 = vld [vmem:[%s8782_s11 + $0xb8] sm:$0xff] }
 0x523   :  { %v4894_v1 = vpop.f32.mrf.mxu0 }
 0x524   :  { %v3928_v22 = vadd.f32 %v4893_v34, %v3781_v26  ;;  %v4301_v34 = vld [vmem:[%s8782_s11 + $0x1c8] sm:$0xff]  ;;  %v4210_v26 = vld [vmem:[%s8782_s11 + $0x138] sm:$0xff] }
 0x525   :  { %v4895_v19 = vpop.f32.mrf.mxu0 }
 0x526   :  { %v4896_v23 = vadd.f32 %v4895_v19, %v4894_v1  ;;  %v4032_v1 = vld [vmem:[%s8782_s11 + $0x30] sm:$0xff]  ;;  %v4030_v19 = vld [vmem:[%s8782_s11 + $0x20] sm:$0xff] }
 0x527   :  { %v4897_v45 = vpop.f32.mrf.mxu0  ;;  %5213 = vmatpush3.msra.mxu0 %v4032_v1  ;;  %v4610_v1 = vld [vmem:[%s8783_s12] ss:$0 sm:$0xff] }
 0x528   :  { %v3929_v12 = vadd.f32 %v4896_v23, %v3782_v48  ;;  %5214 = vmatprep.subr.mxu0 %v9113_v52  ;;  %v4213_v23 = vld [vmem:[%s8782_s11 + $0x150] sm:$0xff]  ;;  %v4211_v48 = vld [vmem:[%s8782_s11 + $0x140] sm:$0xff] }
 0x529   :  { %v4898_v10 = vpop.f32.mrf.mxu0  ;;  %5215 = vmatpush3.msra.mxu0 %v4031_v37 }
 0x52a   :  { %v4899_v17 = vadd.f32 %v4898_v10, %v4897_v45  ;;  %5216 = vmatprep.subr.mxu0 %v9113_v52  ;;  %v4028_v45 = vld [vmem:[%s8782_s11 + $0x10] sm:$0xff]  ;;  %v4608_v10 = vld [vmem:[%s8781_s10] ss:$0 sm:$0xff] }
 0x52b   :  { %v4900_v38 = vpop.f32.mrf.mxu0  ;;  %5217 = vmatpush3.msra.mxu0 %v4030_v19 }
 0x52c   :  { %v3930_v36 = vadd.f32 %v4899_v17, %v3783_v13  ;;  %5218 = vmatprep.subr.mxu0 %v9113_v52  ;;  %v4305_v17 = vld [vmem:[%s8782_s11 + $0x1e8] sm:$0xff]  ;;  %v4303_v13 = vld [vmem:[%s8782_s11 + $0x1d8] sm:$0xff] }
 0x52d   :  { %v4901_v6 = vpop.f32.mrf.mxu0  ;;  %5219 = vmatpush3.msra.mxu0 %v4029_v50 }
 0x52e   :  { %v4902_v58 = vadd.f32 %v4901_v6, %v4900_v38  ;;  %5220 = vmatprep.subr.mxu0 %v9113_v52  ;;  %v4217_v6 = vld [vmem:[%s8782_s11 + $0x170] sm:$0xff] }
 0x52f   :  { %5221 = vmatpush3.msra.mxu0 %v4028_v45 }
 0x530   :  { %v3931_v63 = vadd.f32 %v4902_v58, %v3784_v57  ;;  %5222 = vmatprep.subr.mxu0 %v9113_v52  ;;  %v4216_v57 = vld [vmem:[%s8782_s11 + $0x168] sm:$0xff]  ;;  %v4215_v58 = vld [vmem:[%s8782_s11 + $0x160] sm:$0xff] }
 0x531   :  { %5223 = vmatpush3.msra.mxu0 %v4027_v44 }
 0x532   :  { %5184 = vmatpush3.msra.mxu1 %v3931_v63  ;;  %5224 = vmatprep.subr.mxu0 %v9113_v52  ;;  %v4302_v63 = vld [vmem:[%s8782_s11 + $0x1d0] sm:$0xff] }
 0x533   :  { %5185 = vmatprep.subr.mxu1 %v9113_v52  ;;  %5225 = vmatpush3.msra.mxu0 %v4026_v4 }
 0x534   :  { %5186 = vmatpush3.msra.mxu1 %v3930_v36  ;;  %5264 = vmatprep.subr.mxu0 %v9113_v52  ;;  %v4300_v36 = vld [vmem:[%s8782_s11 + $0x1c0] sm:$0xff] }
 0x535   :  { %5187 = vmatprep.subr.mxu1 %v9113_v52 }
 0x536   :  { %5188 = vmatpush3.msra.mxu1 %v3929_v12  ;;  %v4299_v12 = vld [vmem:[%s8782_s11 + $0x1b8] sm:$0xff] }
 0x537   :  { %5189 = vmatprep.subr.mxu1 %v9113_v52 }
 0x538   :  { %5190 = vmatpush3.msra.mxu1 %v3928_v22  ;;  %v4209_v22 = vld [vmem:[%s8782_s11 + $0x130] sm:$0xff] }
 0x539   :  { %5192 = vmatmul.mubr.msk.f32.vlgmr.msra.gmra.mxu1 %vm3100_vm9, %v3932_v29  ;;  %5229 = vmatprep.subr.mxu1 %v9113_v52  ;;  %v4298_v29 = vld [vmem:[%s8782_s11 + $0x1b0] sm:$0xff] }
 0x53a   :  { %5261 = vmatprep.mubr.msk.f32.mxu1 %vm5370_vm1, %v9113_v52  ;;  %5230 = vmatpush3.msra.mxu1 %v4128_v27  ;;  %v4297_v27 = vld [vmem:[%s8782_s11 + $0x1a8] sm:$0xff] }
 0x53b   :  { %5231 = vmatprep.subr.mxu1 %v9113_v52 }
 0x53c   :  { %5232 = vmatpush3.msra.mxu1 %v4127_v55  ;;  %v4296_v55 = vld [vmem:[%s8782_s11 + $0x1a0] sm:$0xff] }
 0x53d   :  { %5233 = vmatprep.subr.mxu1 %v9113_v52 }
 0x53e   :  { %5234 = vmatpush3.msra.mxu1 %v4126_v51  ;;  %v4295_v51 = vld [vmem:[%s8782_s11 + $0x198] sm:$0xff] }
 0x53f   :  { %5235 = vmatprep.subr.mxu1 %v9113_v52 }
 0x540   :  { %5236 = vmatpush3.msra.mxu1 %v4125_v24  ;;  %v4294_v24 = vld [vmem:[%s8782_s11 + $0x190] sm:$0xff] }
 0x541   :  { %5237 = vmatprep.subr.mxu1 %v9113_v52 }
 0x542   :  { %5238 = vmatpush3.msra.mxu1 %v4124_v18  ;;  %v4293_v18 = vld [vmem:[%s8782_s11 + $0x188] sm:$0xff] }
 0x543   :  { %5239 = vmatprep.subr.mxu1 %v9113_v52 }
 0x544   :  { %5240 = vmatpush3.msra.mxu1 %v4123_v3  ;;  %v4292_v3 = vld [vmem:[%s8782_s11 + $0x180] sm:$0xff] }
 0x545   :  { %5241 = vmatprep.subr.mxu1 %v9113_v52 }
 0x546   :  { %5242 = vmatpush3.msra.mxu1 %v4122_v59 }
 0x547   :  { %5243 = vmatprep.subr.mxu1 %v9113_v52 }
 0x548   :  { %5244 = vmatpush3.msra.mxu1 %v4121_v54 }
 0x549   :  { %5245 = vmatprep.subr.mxu1 %v9113_v52 }
 0x54a   :  { %5246 = vmatpush3.msra.mxu1 %v4120_v46 }
 0x54b   :  { %5247 = vmatprep.subr.mxu1 %v9113_v52 }
 0x54c   :  { %5248 = vmatpush3.msra.mxu1 %v4119_v35 }
 0x54d   :  { %5249 = vmatprep.subr.mxu1 %v9113_v52 }
 0x54e   :  { %5250 = vmatpush3.msra.mxu1 %v4118_v56 }
 0x54f   :  { %5251 = vmatprep.subr.mxu1 %v9113_v52 }
 0x550   :  { %5252 = vmatpush3.msra.mxu1 %v4117_v2 }
 0x551   :  { %5253 = vmatprep.subr.mxu1 %v9113_v52 }
 0x552   :  { %5254 = vmatpush3.msra.mxu1 %v4116_v61 }
 0x553   :  { %5255 = vmatprep.subr.mxu1 %v9113_v52 }
 0x554   :  { %5256 = vmatpush3.msra.mxu1 %v4115_v30 }
 0x555   :  { %5257 = vmatprep.subr.mxu1 %v9113_v52 }
 0x556   :  { %5258 = vmatpush3.msra.mxu1 %v4114_v60 }
 0x557   :  { %5259 = vmatprep.subr.mxu1 %v9113_v52 }
 0x558   :  { %5260 = vmatpush3.msra.mxu1 %v4113_v25 }
 0x559   :  { %5299 = vmatprep.subr.mxu1 %v9113_v52 }
 0x5f9   :  { %v4009_v53 = vpop.f32.mrf.mxu1 }
 0x5fa   :  { %v4010_v49 = vadd.f32 %v4608_v10, %v4009_v53 }
 0x5fb   :  { %v5193_v5 = vpop.f32.mrf.mxu1 }
 0x5fc   :  { %v4013_v47 = vmax.f32 %v4010_v49, 0.0 }
 0x5fe   :  { %v4014_v41 = vsub.f32 0.0, %v4013_v47 }
 0x600   :  { %v4015_v38 = vmul.f32 1.442695, %v4014_v41 }
 0x602   :  { %5343 = vpow2.f32 %v4015_v38 }
 0x60f   :  { %v5344_v0 = vpop.eup %5343 }
 0x610   :  { %v4017_v14 = vadd.f32 1.0, %v5344_v0 }
 0x612   :  { %5345 = vrcp.f32 %v4017_v14 }
 0x61f   :  { %v8632_v32 = vpop.eup %5345 }
 0x620   :  { %5227 = vmatmul.mubr.f32.vlgmr.msra.gmra.mxu0 %v8632_v32  ;;  %v4130_v20 = vrot.slane %v8632_v32, 2  ;;  %v4219_v31 = vrot.slane %v8632_v32, 4  ;;  %v4308_v59 = vrot.slane %v8632_v32, 6 }
 0x621   :  { %5265 = vmatpush3.msra.mxu0 %v4218_v42  ;;  %5296 = vmatprep.mubr.msk.f32.mxu0 %vm5370_vm1, %v9113_v52 }
 0x622   :  { %5262 = vmatmul.mubr.f32.vlgmr.msra.gmra.mxu1 %v4130_v20  ;;  %5266 = vmatprep.subr.mxu0 %v9113_v52 }
 0x623   :  { %5300 = vmatpush3.msra.mxu1 %v4307_v62  ;;  %5267 = vmatpush3.msra.mxu0 %v4217_v6 }
 0x624   :  { %5301 = vmatprep.subr.mxu1 %v9113_v52  ;;  %5268 = vmatprep.subr.mxu0 %v9113_v52 }
 0x625   :  { %5302 = vmatpush3.msra.mxu1 %v4306_v8  ;;  %5269 = vmatpush3.msra.mxu0 %v4216_v57 }
 0x626   :  { %5303 = vmatprep.subr.mxu1 %v9113_v52  ;;  %5270 = vmatprep.subr.mxu0 %v9113_v52 }
 0x627   :  { %5304 = vmatpush3.msra.mxu1 %v4305_v17  ;;  %5271 = vmatpush3.msra.mxu0 %v4215_v58 }
 0x628   :  { %5305 = vmatprep.subr.mxu1 %v9113_v52  ;;  %5272 = vmatprep.subr.mxu0 %v9113_v52 }
 0x629   :  { %5306 = vmatpush3.msra.mxu1 %v4304_v21  ;;  %5273 = vmatpush3.msra.mxu0 %v4214_v33 }
 0x62a   :  { %5307 = vmatprep.subr.mxu1 %v9113_v52  ;;  %5274 = vmatprep.subr.mxu0 %v9113_v52 }
 0x62b   :  { %5308 = vmatpush3.msra.mxu1 %v4303_v13  ;;  %5275 = vmatpush3.msra.mxu0 %v4213_v23 }
 0x62c   :  { %5309 = vmatprep.subr.mxu1 %v9113_v52  ;;  %5276 = vmatprep.subr.mxu0 %v9113_v52 }
 0x62d   :  { %5310 = vmatpush3.msra.mxu1 %v4302_v63  ;;  %5277 = vmatpush3.msra.mxu0 %v4212_v11 }
 0x62e   :  { %5311 = vmatprep.subr.mxu1 %v9113_v52  ;;  %5278 = vmatprep.subr.mxu0 %v9113_v52 }
 0x62f   :  { %5312 = vmatpush3.msra.mxu1 %v4301_v34  ;;  %5279 = vmatpush3.msra.mxu0 %v4211_v48 }
 0x630   :  { %5313 = vmatprep.subr.mxu1 %v9113_v52  ;;  %5280 = vmatprep.subr.mxu0 %v9113_v52 }
 0x631   :  { %5314 = vmatpush3.msra.mxu1 %v4300_v36  ;;  %5281 = vmatpush3.msra.mxu0 %v4210_v26 }
 0x632   :  { %5315 = vmatprep.subr.mxu1 %v9113_v52  ;;  %5282 = vmatprep.subr.mxu0 %v9113_v52 }
 0x633   :  { %5316 = vmatpush3.msra.mxu1 %v4299_v12  ;;  %5283 = vmatpush3.msra.mxu0 %v4209_v22 }
 0x634   :  { %5317 = vmatprep.subr.mxu1 %v9113_v52  ;;  %5284 = vmatprep.subr.mxu0 %v9113_v52 }
 0x635   :  { %5318 = vmatpush3.msra.mxu1 %v4298_v29  ;;  %5285 = vmatpush3.msra.mxu0 %v4208_v43 }
 0x636   :  { %5319 = vmatprep.subr.mxu1 %v9113_v52  ;;  %5286 = vmatprep.subr.mxu0 %v9113_v52 }
 0x637   :  { %5320 = vmatpush3.msra.mxu1 %v4297_v27  ;;  %5287 = vmatpush3.msra.mxu0 %v4207_v40 }
 0x638   :  { %5321 = vmatprep.subr.mxu1 %v9113_v52  ;;  %5288 = vmatprep.subr.mxu0 %v9113_v52 }
 0x639   :  { %5322 = vmatpush3.msra.mxu1 %v4296_v55  ;;  %5289 = vmatpush3.msra.mxu0 %v4206_v39 }
 0x63a   :  { %5323 = vmatprep.subr.mxu1 %v9113_v52  ;;  %5290 = vmatprep.subr.mxu0 %v9113_v52 }
 0x63b   :  { %5324 = vmatpush3.msra.mxu1 %v4295_v51  ;;  %5291 = vmatpush3.msra.mxu0 %v4205_v28 }
 0x63c   :  { %5325 = vmatprep.subr.mxu1 %v9113_v52  ;;  %5292 = vmatprep.subr.mxu0 %v9113_v52 }
 0x63d   :  { %5326 = vmatpush3.msra.mxu1 %v4294_v24  ;;  %5293 = vmatpush3.msra.mxu0 %v4204_v7 }
 0x63e   :  { %5327 = vmatprep.subr.mxu1 %v9113_v52  ;;  %5294 = vmatprep.subr.mxu0 %v9113_v52 }
 0x63f   :  { %5328 = vmatpush3.msra.mxu1 %v4293_v18  ;;  %5295 = vmatpush3.msra.mxu0 %v4203_v16 }
 0x640   :  { %5329 = vmatprep.subr.mxu1 %v9113_v52  ;;  %5331 = vmatprep.mubr.msk.f32.mxu1 %vm5370_vm1, %v9113_v52 }
 0x641   :  { %5330 = vmatpush3.msra.mxu1 %v4292_v3  ;;  %5297 = vmatmul.mubr.f32.vlgmr.msra.gmra.mxu0 %v4219_v31 }
 0x642   :  { %5332 = vmatmul.mubr.f32.vlgmr.msra.gmra.mxu1 %v4308_v59 }
 0x6e0   :  { %v4108_v15 = vpop.f32.mrf.mxu0 }
 0x6e1   :  { %v4112_v35 = vadd.f32 %v4610_v1, %v4108_v15 }
 0x6e2   :  { %v4198_v54 = vpop.f32.mrf.mxu1  ;;  %v5228_v9 = vpop.f32.mrf.mxu0 }
 0x6e3   :  { %v4202_v37 = vadd.f32 %v4198_v54, %v4112_v35 }
 0x6e4   :  { %v5263_v46 = vpop.f32.mrf.mxu1 }
 0x701   :  { %v4287_v56 = vpop.f32.mrf.mxu0 }
 0x702   :  { %v4291_v19 = vadd.f32 %v4287_v56, %v4202_v37  ;;  %v4376_v52 = vpop.f32.mrf.mxu1 }
 0x703   :  { %v5298_v2 = vpop.f32.mrf.mxu0 }
 0x704   :  { %v4380_v50 = vadd.f32 %v4376_v52, %v4291_v19  ;;  %v5333_v61 = vpop.f32.mrf.mxu1 }
 0x706   :  { %4382 = vst.msk [vmem:[#allocation2] sm:$0x3] %vm4381_vm10, %v4380_v50 }
 0x707   :  { %5358 = shalt.err (!%p5355_p4)
}
 0x708   :  { %4392 = dma.vmem_to_hbm [thread:$0]  %s4390_s15, 32, %s8784_s13, [#allocation3]  }
 0x709   :  { %5367 = dma.done.wait [#allocation3], 32  }
 0x70a   :  { %5368 = vsyncadd [#allocation3], 4294967264 }
 0x70b   :  { %4396 = vsyncpa [#allocation3], 1 }

</bundles_post_ra>
